<compile_context>
chip_gen: v7x
topology: tpu7x:2x2x1
jax: 0.10.0
libtpu: 0.0.40
codegen_flags: <defaults>
</compile_context>

<pallas_src>
from functools import partial

import jax
import jax.numpy as jnp
from jax import lax
from jax.experimental import pallas as pl
from jax.experimental.pallas import tpu as pltpu


# --------------------------------------------------------------------------
# Phase 1: per-anchor statistics (hard-positive distance, folded negative term)
# --------------------------------------------------------------------------
def _stats_kernel(ids_col_ref, ids_row_ref, sq_col_ref, sq_row_ref,
                  emb_i_ref, emb_j_ref, pos_ref, neg_ref,
                  pos_acc, sum_acc, max_acc, cnt_acc,
                  *, n_valid, precision):
    i = pl.program_id(0)                      # anchor (row) block
    j = pl.program_id(1)                      # column block (reduction axis)
    tm = emb_i_ref.shape[0]
    tn = emb_j_ref.shape[0]

    @pl.when(j == 0)
    def _():
        pos_acc[...] = jnp.zeros_like(pos_acc)
        sum_acc[...] = jnp.zeros_like(sum_acc)
        max_acc[...] = jnp.zeros_like(max_acc)
        cnt_acc[...] = jnp.zeros_like(cnt_acc)

    # Gram tile in NT form (contraction over D): no transpose of either block.
    dot = lax.dot_general(emb_i_ref[...], emb_j_ref[...],
                          (((1,), (1,)), ((), ())),
                          preferred_element_type=jnp.float32,
                          precision=precision)                       # (tm, tn)

    # pd[i, j] = ||e_i - e_j||^2, clamped at 0 (matches reference semantics).
    pd = jnp.maximum(sq_col_ref[...] + sq_row_ref[...] - 2.0 * dot, 0.0)

    # Masks built from (tm,1)/(1,tn) broadcasts -- no (tm,tn) iota slabs.
    row_g = i * tm + lax.broadcasted_iota(jnp.int32, (tm, 1), 0)
    col_g = j * tn + lax.broadcasted_iota(jnp.int32, (1, tn), 1)
    col_valid = col_g < n_valid                                      # (1, tn)
    not_eye = row_g != col_g                                         # (tm, tn)
    same = ids_col_ref[...] == ids_row_ref[...]                      # (tm, tn)

    pd_valid = jnp.where(col_valid, pd, 0.0)
    pos_t = jnp.max(jnp.where(not_eye & same & col_valid, pd, 0.0),
                    axis=1, keepdims=True)                           # (tm, 1)
    sum_t = jnp.sum(pd_valid, axis=1, keepdims=True)                 # (tm, 1)
    max_t = jnp.max(pd_valid, axis=1, keepdims=True)                 # (tm, 1)
    cnt_t = jnp.sum(jnp.where(same & col_valid, 1.0, 0.0),
                    axis=1, keepdims=True)                           # (tm, 1)

    pos_acc[...] = jnp.maximum(pos_acc[...], pos_t)
    sum_acc[...] += sum_t
    max_acc[...] = jnp.maximum(max_acc[...], max_t)
    cnt_acc[...] += cnt_t

    @pl.when(j == pl.num_programs(1) - 1)
    def _():
        pos_ref[...] = pos_acc[...]
        # neg[i] = mean_j(pd[i,j] + rowmax[i]*same[i,j])
        #        = (sum_j pd[i,j] + rowmax[i] * sum_j same[i,j]) / N
        neg_ref[...] = (sum_acc[...] + max_acc[...] * cnt_acc[...]) * (1.0 / n_valid)


# --------------------------------------------------------------------------
# Phase 2: loss = mean_{i,k} relu(pos[i] - neg[k] + margin)   (scalar in SMEM)
# --------------------------------------------------------------------------
def _loss_kernel(pos_ref, neg_ref, loss_ref, acc_ref, *, n_valid, margin):
    i = pl.program_id(0)
    j = pl.program_id(1)
    tm = pos_ref.shape[0]
    tn = neg_ref.shape[1]

    @pl.when(jnp.logical_and(i == 0, j == 0))
    def _():
        acc_ref[0] = 0.0

    row_g = i * tm + lax.broadcasted_iota(jnp.int32, (tm, 1), 0)
    col_g = j * tn + lax.broadcasted_iota(jnp.int32, (1, tn), 1)
    valid = (row_g < n_valid) & (col_g < n_valid)                    # (tm, tn)

    tri = jnp.maximum(pos_ref[...] - neg_ref[...] + margin, 0.0)     # (tm, tn)
    acc_ref[0] += jnp.sum(jnp.where(valid, tri, 0.0))

    @pl.when(jnp.logical_and(i == pl.num_programs(0) - 1,
                             j == pl.num_programs(1) - 1))
    def _():
        loss_ref[0, 0] = acc_ref[0] * (1.0 / float(n_valid * n_valid))


# --------------------------------------------------------------------------
# Wrapper
# --------------------------------------------------------------------------
def _default_block():
    # v5e's 4x128^2 MXU is fully fed at 128; v6e/v7x have 2x256^2 MXUs.
    try:
        kind = jax.devices()[0].device_kind.lower()
    except Exception:
        kind = ""
    if ("v5e" in kind) or ("v5 lite" in kind) or ("v5lite" in kind):
        return 128
    return 256


def _vmem_limit_bytes(blk, d, esize):
    # Generation-aware cap (v7x has 64 MiB / TC; v5e/v6e have 128 MiB).
    try:
        cap = int(pltpu.get_tpu_info().vmem_capacity_bytes)
    except Exception:
        cap = 64 * 1024 * 1024
    need = (4 * blk * max(d, 128) * esize        # 2 emb operands x 2 pipeline buffers
            + 10 * blk * blk * 4                 # in-kernel (blk, blk) temporaries
            + (4 << 20))                         # headroom
    return int(max(16 << 20, min(need, (cap * 3) // 4)))


def hard_negative_triplet_miner(ids, embeddings, margin=0.5, block=None):
    """Pallas equivalent of HardNegativeTripletMiner.forward -> (loss, None)."""
    n, d = embeddings.shape
    blk = block if block is not None else _default_block()
    npad = ((n + blk - 1) // blk) * blk
    pad = npad - n
    nblk = npad // blk

    # bf16 embeddings feed the MXU natively (half the HBM->VMEM DMA); anything
    # else goes in as f32 with HIGHEST matmul precision (deterministic, f32-accurate).
    if embeddings.dtype == jnp.bfloat16:
        emb_mat, precision = embeddings, None
    else:
        emb_mat, precision = embeddings.astype(jnp.float32), lax.Precision.HIGHEST

    # Squared norms computed once in f32 (O(N*D)), fed in both layouts so the
    # kernel never relayouts a norm vector.  Padded rows are zero; padded ids
    # are irrelevant because every column is masked by its global index.
    sq = jnp.sum(jnp.square(embeddings.astype(jnp.float32)), axis=1)
    ids_i32 = ids.astype(jnp.int32)
    if pad:
        emb_mat = jnp.pad(emb_mat, ((0, pad), (0, 0)))
        sq = jnp.pad(sq, (0, pad))
        ids_i32 = jnp.pad(ids_i32, (0, pad), constant_values=-1)

    ids_col = ids_i32.reshape(npad, 1)
    ids_row = ids_i32.reshape(1, npad)
    sq_col = sq.reshape(npad, 1)
    sq_row = sq.reshape(1, npad)

    esize = emb_mat.dtype.itemsize
    vmem_limit = _vmem_limit_bytes(blk, d, esize)

    cost = pl.CostEstimate(
        flops=2 * npad * npad * d + 12 * npad * npad,
        transcendentals=0,
        bytes_accessed=esize * npad * d * (nblk + 1) + 16 * npad,
    )

    pos, neg = pl.pallas_call(
        partial(_stats_kernel, n_valid=n, precision=precision),
        out_shape=(jax.ShapeDtypeStruct((npad, 1), jnp.float32),
                   jax.ShapeDtypeStruct((npad, 1), jnp.float32)),
        grid_spec=pltpu.PrefetchScalarGridSpec(
            num_scalar_prefetch=0,
            grid=(nblk, nblk),
            in_specs=[
                pl.BlockSpec((blk, 1), lambda i, j: (i, 0)),   # ids (anchor rows)
                pl.BlockSpec((1, blk), lambda i, j: (0, j)),   # ids (columns)
                pl.BlockSpec((blk, 1), lambda i, j: (i, 0)),   # ||e_i||^2
                pl.BlockSpec((1, blk), lambda i, j: (0, j)),   # ||e_j||^2
                pl.BlockSpec((blk, d), lambda i, j: (i, 0)),   # anchor embeddings
                pl.BlockSpec((blk, d), lambda i, j: (j, 0)),   # column embeddings
            ],
            out_specs=[
                pl.BlockSpec((blk, 1), lambda i, j: (i, 0)),   # pos
                pl.BlockSpec((blk, 1), lambda i, j: (i, 0)),   # neg
            ],
            scratch_shapes=[pltpu.VMEM((blk, 1), jnp.float32)] * 4,
        ),
        compiler_params=pltpu.CompilerParams(
            dimension_semantics=("parallel", "arbitrary"),
            vmem_limit_bytes=vmem_limit),
        cost_estimate=cost,
    )(ids_col, ids_row, sq_col, sq_row, emb_mat, emb_mat)

    # Tiny O(N) relayout so the loss kernel consumes neg as a lane-dense row.
    neg_row = neg.reshape(1, npad)

    loss = pl.pallas_call(
        partial(_loss_kernel, n_valid=n, margin=float(margin)),
        out_shape=jax.ShapeDtypeStruct((1, 1), jnp.float32),
        grid_spec=pltpu.PrefetchScalarGridSpec(
            num_scalar_prefetch=0,
            grid=(nblk, nblk),
            in_specs=[
                pl.BlockSpec((blk, 1), lambda i, j: (i, 0)),   # pos column block
                pl.BlockSpec((1, blk), lambda i, j: (0, j)),   # neg row block
            ],
            out_specs=pl.BlockSpec(memory_space=pltpu.MemorySpace.SMEM),
            scratch_shapes=[pltpu.SMEM((1,), jnp.float32)],
        ),
        compiler_params=pltpu.CompilerParams(
            dimension_semantics=("arbitrary", "arbitrary"),
            vmem_limit_bytes=vmem_limit),
    )(pos, neg_row)

    return loss[0, 0], None


# --------------------------------------------------------------------------
# Pure-JAX reference mirroring the PyTorch module (true-f32 matmul).
# --------------------------------------------------------------------------
def _reference(ids, embeddings, margin=0.5):
    e = embeddings.astype(jnp.float32)
    dot = jnp.matmul(e, e.T, precision=lax.Precision.HIGHEST)
    sq = jnp.diag(dot)
    pd = sq[None, :] - 2.0 * dot + sq[:, None]
    pd = jnp.where(pd < 0.0, 0.0, pd)
    n = ids.shape[0]
    eye = jnp.eye(n, dtype=bool)
    same = ids[None, :] == ids[:, None]
    mask_pos = (~eye) & same
    pos = jnp.max(mask_pos.astype(jnp.float32) * pd, axis=1, keepdims=True)      # (N,1)
    mask_neg = ids[None, :] != ids[:, None]
    rowmax = jnp.max(pd, axis=1, keepdims=True)
    neg = jnp.mean(pd + rowmax * (1.0 - mask_neg.astype(jnp.float32)), axis=1)   # (N,)
    loss = jnp.clip(pos - neg + margin, 0.0)
    return jnp.mean(loss)


if __name__ == "__main__":
    N, D = 8, 32  # small batch of embeddings
    key = jax.random.PRNGKey(0)
    k_emb, k_ids = jax.random.split(key)
    embeddings = jax.random.normal(k_emb, (N, D), dtype=jnp.float32)
    ids = jax.random.randint(k_ids, (N,), 0, 3, dtype=jnp.int32)

    loss, _ = hard_negative_triplet_miner(ids, embeddings, margin=0.5)
    loss = jax.block_until_ready(loss)

    ref = jax.block_until_ready(_reference(ids, embeddings, margin=0.5))
    assert jnp.allclose(loss, ref, rtol=1e-4, atol=1e-4), (loss, ref)

    print("KERNEL_OK")
</pallas_src>

<mosaic_0001>
module attributes {stable_mosaic.version = 11 : i64} {
  func.func @_stats_kernel(%arg0: i32, %arg1: i32, %arg2: memref<256x1xi32, #tpu.memory_space<vmem>>, %arg3: memref<1x256xi32, #tpu.memory_space<vmem>>, %arg4: memref<256x1xf32, #tpu.memory_space<vmem>>, %arg5: memref<1x256xf32, #tpu.memory_space<vmem>>, %arg6: memref<256x32xf32, #tpu.memory_space<vmem>>, %arg7: memref<256x32xf32, #tpu.memory_space<vmem>>, %arg8: memref<256x1xf32, #tpu.memory_space<vmem>>, %arg9: memref<256x1xf32, #tpu.memory_space<vmem>>, %arg10: memref<256x1xf32, #tpu.memory_space<vmem>>, %arg11: memref<256x1xf32, #tpu.memory_space<vmem>>, %arg12: memref<256x1xf32, #tpu.memory_space<vmem>>, %arg13: memref<256x1xf32, #tpu.memory_space<vmem>>) attributes {dimension_semantics = [#tpu.dimension_semantics<parallel>, #tpu.dimension_semantics<arbitrary>], iteration_bounds = array<i64: 1, 1>, scalar_prefetch = 0 : i64, scratch_operands = 4 : i64, tpu.core_type = #tpu.core_type<tc>, window_params = [{transform_indices = @transform_0, window_bounds = array<i64: 256, 1>}, {transform_indices = @transform_1, window_bounds = array<i64: 1, 256>}, {transform_indices = @transform_2, window_bounds = array<i64: 256, 1>}, {transform_indices = @transform_3, window_bounds = array<i64: 1, 256>}, {transform_indices = @transform_4, window_bounds = array<i64: 256, 32>}, {transform_indices = @transform_5, window_bounds = array<i64: 256, 32>}, {transform_indices = @transform_6, window_bounds = array<i64: 256, 1>}, {transform_indices = @transform_7, window_bounds = array<i64: 256, 1>}]} {
    %c0_i32 = arith.constant 0 : i32
    %0 = arith.cmpi eq, %arg1, %c0_i32 : i32
    %1 = arith.extui %0 : i1 to i32
    %c0_i32_0 = arith.constant 0 : i32
    %2 = arith.cmpi ne, %1, %c0_i32_0 : i32
    scf.if %2 {
      %cst_41 = arith.constant 0.000000e+00 : f32
      %71 = vector.broadcast %cst_41 : f32 to vector<256x1xf32>
      %c0_42 = arith.constant 0 : index
      %c0_43 = arith.constant 0 : index
      %72 = vector.load %arg10[%c0_42, %c0_43] : memref<256x1xf32, #tpu.memory_space<vmem>>, vector<256x1xf32>
      tpu.vector_store %arg10[%c0_42, %c0_43], %71 {strides = array<i32>} : memref<256x1xf32, #tpu.memory_space<vmem>>, vector<256x1xf32>,
      %cst_44 = arith.constant 0.000000e+00 : f32
      %73 = vector.broadcast %cst_44 : f32 to vector<256x1xf32>
      %c0_45 = arith.constant 0 : index
      %c0_46 = arith.constant 0 : index
      %74 = vector.load %arg11[%c0_45, %c0_46] : memref<256x1xf32, #tpu.memory_space<vmem>>, vector<256x1xf32>
      tpu.vector_store %arg11[%c0_45, %c0_46], %73 {strides = array<i32>} : memref<256x1xf32, #tpu.memory_space<vmem>>, vector<256x1xf32>,
      %cst_47 = arith.constant 0.000000e+00 : f32
      %75 = vector.broadcast %cst_47 : f32 to vector<256x1xf32>
      %c0_48 = arith.constant 0 : index
      %c0_49 = arith.constant 0 : index
      %76 = vector.load %arg12[%c0_48, %c0_49] : memref<256x1xf32, #tpu.memory_space<vmem>>, vector<256x1xf32>
      tpu.vector_store %arg12[%c0_48, %c0_49], %75 {strides = array<i32>} : memref<256x1xf32, #tpu.memory_space<vmem>>, vector<256x1xf32>,
      %cst_50 = arith.constant 0.000000e+00 : f32
      %77 = vector.broadcast %cst_50 : f32 to vector<256x1xf32>
      %c0_51 = arith.constant 0 : index
      %c0_52 = arith.constant 0 : index
      %78 = vector.load %arg13[%c0_51, %c0_52] : memref<256x1xf32, #tpu.memory_space<vmem>>, vector<256x1xf32>
      tpu.vector_store %arg13[%c0_51, %c0_52], %77 {strides = array<i32>} : memref<256x1xf32, #tpu.memory_space<vmem>>, vector<256x1xf32>,
    } else {
    }
    %c0 = arith.constant 0 : index
    %c0_1 = arith.constant 0 : index
    %3 = vector.load %arg6[%c0, %c0_1] : memref<256x32xf32, #tpu.memory_space<vmem>>, vector<256x32xf32>
    %c0_2 = arith.constant 0 : index
    %c0_3 = arith.constant 0 : index
    %4 = vector.load %arg7[%c0_2, %c0_3] : memref<256x32xf32, #tpu.memory_space<vmem>>, vector<256x32xf32>
    %cst = arith.constant dense<0.000000e+00> : vector<256x256xf32>
    %5 = tpu.matmul %3, %4, %cst {dimension_numbers = #tpu.dot_dimension_numbers<[1], [1], [0], [0], [0, 0, 1, 0], [], []>, precision = #tpu.contract_precision<fp32>} : vector<256x32xf32>, vector<256x32xf32>, vector<256x256xf32> -> vector<256x256xf32>
    %c0_4 = arith.constant 0 : index
    %c0_5 = arith.constant 0 : index
    %6 = vector.load %arg4[%c0_4, %c0_5] : memref<256x1xf32, #tpu.memory_space<vmem>>, vector<256x1xf32>
    %c0_6 = arith.constant 0 : index
    %c0_7 = arith.constant 0 : index
    %7 = vector.load %arg5[%c0_6, %c0_7] : memref<1x256xf32, #tpu.memory_space<vmem>>, vector<1x256xf32>
    %8 = vector.broadcast %6 : vector<256x1xf32> to vector<256x256xf32>
    %9 = vector.broadcast %7 : vector<1x256xf32> to vector<256x256xf32>
    %10 = arith.addf %8, %9 : vector<256x256xf32>
    %cst_8 = arith.constant 2.000000e+00 : f32
    %11 = vector.broadcast %cst_8 : f32 to vector<256x256xf32>
    %12 = arith.mulf %11, %5 : vector<256x256xf32>
    %13 = arith.subf %10, %12 : vector<256x256xf32>
    %cst_9 = arith.constant 0.000000e+00 : f32
    %14 = vector.broadcast %cst_9 : f32 to vector<256x256xf32>
    %15 = arith.maximumf %13, %14 : vector<256x256xf32>
    %c256_i32 = arith.constant 256 : i32
    %16 = arith.muli %arg0, %c256_i32 : i32
    %17 = tpu.iota {dimensions = array<i32: 0>} : vector<256x1xi32>
    %18 = vector.broadcast %16 : i32 to vector<256x1xi32>
    %19 = arith.addi %18, %17 : vector<256x1xi32>
    %c256_i32_10 = arith.constant 256 : i32
    %20 = arith.muli %arg1, %c256_i32_10 : i32
    %21 = tpu.iota {dimensions = array<i32: 1>} : vector<1x256xi32>
    %22 = vector.broadcast %20 : i32 to vector<1x256xi32>
    %23 = arith.addi %22, %21 : vector<1x256xi32>
    %c8_i32 = arith.constant 8 : i32
    %24 = vector.broadcast %c8_i32 : i32 to vector<1x256xi32>
    %25 = arith.cmpi slt, %23, %24 : vector<1x256xi32>
    %26 = vector.broadcast %19 : vector<256x1xi32> to vector<256x256xi32>
    %27 = vector.broadcast %23 : vector<1x256xi32> to vector<256x256xi32>
    %28 = arith.cmpi ne, %26, %27 : vector<256x256xi32>
    %c0_11 = arith.constant 0 : index
    %c0_12 = arith.constant 0 : index
    %29 = vector.load %arg2[%c0_11, %c0_12] : memref<256x1xi32, #tpu.memory_space<vmem>>, vector<256x1xi32>
    %c0_13 = arith.constant 0 : index
    %c0_14 = arith.constant 0 : index
    %30 = vector.load %arg3[%c0_13, %c0_14] : memref<1x256xi32, #tpu.memory_space<vmem>>, vector<1x256xi32>
    %31 = vector.broadcast %29 : vector<256x1xi32> to vector<256x256xi32>
    %32 = vector.broadcast %30 : vector<1x256xi32> to vector<256x256xi32>
    %33 = arith.cmpi eq, %31, %32 : vector<256x256xi32>
    %cst_15 = arith.constant 0.000000e+00 : f32
    %34 = vector.shape_cast %25 : vector<1x256xi1> to vector<1x256xi1>
    %35 = vector.broadcast %34 : vector<1x256xi1> to vector<256x256xi1>
    %36 = vector.broadcast %cst_15 : f32 to vector<256x256xf32>
    %37 = arith.select %35, %15, %36 : vector<256x256xi1>, vector<256x256xf32>
    %38 = arith.andi %28, %33 : vector<256x256xi1>
    %39 = vector.broadcast %25 : vector<1x256xi1> to vector<256x256xi1>
    %40 = arith.andi %38, %39 : vector<256x256xi1>
    %cst_16 = arith.constant 0.000000e+00 : f32
    %41 = vector.broadcast %cst_16 : f32 to vector<256x256xf32>
    %42 = arith.select %40, %15, %41 : vector<256x256xi1>, vector<256x256xf32>
    %cst_17 = arith.constant dense<0xFF800000> : vector<256xf32>
    %43 = vector.multi_reduction <maximumf>, %42, %cst_17 [1] : vector<256x256xf32> to vector<256xf32>
    %44 = vector.shape_cast %43 : vector<256xf32> to vector<256x1xf32>
    %cst_18 = arith.constant dense<0.000000e+00> : vector<256xf32>
    %45 = vector.multi_reduction <add>, %37, %cst_18 [1] : vector<256x256xf32> to vector<256xf32>
    %46 = vector.shape_cast %45 : vector<256xf32> to vector<256x1xf32>
    %cst_19 = arith.constant dense<0xFF800000> : vector<256xf32>
    %47 = vector.multi_reduction <maximumf>, %37, %cst_19 [1] : vector<256x256xf32> to vector<256xf32>
    %48 = vector.shape_cast %47 : vector<256xf32> to vector<256x1xf32>
    %49 = vector.broadcast %25 : vector<1x256xi1> to vector<256x256xi1>
    %50 = arith.andi %33, %49 : vector<256x256xi1>
    %cst_20 = arith.constant 1.000000e+00 : f32
    %cst_21 = arith.constant 0.000000e+00 : f32
    %51 = vector.broadcast %cst_20 : f32 to vector<256x256xf32>
    %52 = vector.broadcast %cst_21 : f32 to vector<256x256xf32>
    %53 = arith.select %50, %51, %52 : vector<256x256xi1>, vector<256x256xf32>
    %cst_22 = arith.constant dense<0.000000e+00> : vector<256xf32>
    %54 = vector.multi_reduction <add>, %53, %cst_22 [1] : vector<256x256xf32> to vector<256xf32>
    %55 = vector.shape_cast %54 : vector<256xf32> to vector<256x1xf32>
    %c0_23 = arith.constant 0 : index
    %c0_24 = arith.constant 0 : index
    %56 = vector.load %arg10[%c0_23, %c0_24] : memref<256x1xf32, #tpu.memory_space<vmem>>, vector<256x1xf32>
    %57 = arith.maximumf %56, %44 : vector<256x1xf32>
    %c0_25 = arith.constant 0 : index
    %c0_26 = arith.constant 0 : index
    %58 = vector.load %arg10[%c0_25, %c0_26] : memref<256x1xf32, #tpu.memory_space<vmem>>, vector<256x1xf32>
    tpu.vector_store %arg10[%c0_25, %c0_26], %57 {strides = array<i32>} : memref<256x1xf32, #tpu.memory_space<vmem>>, vector<256x1xf32>,
    %c0_27 = arith.constant 0 : index
    %c0_28 = arith.constant 0 : index
    %59 = vector.load %arg11[%c0_27, %c0_28] : memref<256x1xf32, #tpu.memory_space<vmem>>, vector<256x1xf32>
    %60 = arith.addf %59, %46 : vector<256x1xf32>
    %c0_29 = arith.constant 0 : index
    %c0_30 = arith.constant 0 : index
    %61 = vector.load %arg11[%c0_29, %c0_30] : memref<256x1xf32, #tpu.memory_space<vmem>>, vector<256x1xf32>
    tpu.vector_store %arg11[%c0_29, %c0_30], %60 {strides = array<i32>} : memref<256x1xf32, #tpu.memory_space<vmem>>, vector<256x1xf32>,
    %c0_31 = arith.constant 0 : index
    %c0_32 = arith.constant 0 : index
    %62 = vector.load %arg12[%c0_31, %c0_32] : memref<256x1xf32, #tpu.memory_space<vmem>>, vector<256x1xf32>
    %63 = arith.maximumf %62, %48 : vector<256x1xf32>
    %c0_33 = arith.constant 0 : index
    %c0_34 = arith.constant 0 : index
    %64 = vector.load %arg12[%c0_33, %c0_34] : memref<256x1xf32, #tpu.memory_space<vmem>>, vector<256x1xf32>
    tpu.vector_store %arg12[%c0_33, %c0_34], %63 {strides = array<i32>} : memref<256x1xf32, #tpu.memory_space<vmem>>, vector<256x1xf32>,
    %c0_35 = arith.constant 0 : index
    %c0_36 = arith.constant 0 : index
    %65 = vector.load %arg13[%c0_35, %c0_36] : memref<256x1xf32, #tpu.memory_space<vmem>>, vector<256x1xf32>
    %66 = arith.addf %65, %55 : vector<256x1xf32>
    %c0_37 = arith.constant 0 : index
    %c0_38 = arith.constant 0 : index
    %67 = vector.load %arg13[%c0_37, %c0_38] : memref<256x1xf32, #tpu.memory_space<vmem>>, vector<256x1xf32>
    tpu.vector_store %arg13[%c0_37, %c0_38], %66 {strides = array<i32>} : memref<256x1xf32, #tpu.memory_space<vmem>>, vector<256x1xf32>,
    %c0_i32_39 = arith.constant 0 : i32
    %68 = arith.cmpi eq, %arg1, %c0_i32_39 : i32
    %69 = arith.extui %68 : i1 to i32
    %c0_i32_40 = arith.constant 0 : i32
    %70 = arith.cmpi ne, %69, %c0_i32_40 : i32
    scf.if %70 {
      %c0_41 = arith.constant 0 : index
      %c0_42 = arith.constant 0 : index
      %71 = vector.load %arg10[%c0_41, %c0_42] : memref<256x1xf32, #tpu.memory_space<vmem>>, vector<256x1xf32>
      %c0_43 = arith.constant 0 : index
      %c0_44 = arith.constant 0 : index
      %72 = vector.load %arg8[%c0_43, %c0_44] : memref<256x1xf32, #tpu.memory_space<vmem>>, vector<256x1xf32>
      tpu.vector_store %arg8[%c0_43, %c0_44], %71 {strides = array<i32>} : memref<256x1xf32, #tpu.memory_space<vmem>>, vector<256x1xf32>,
      %c0_45 = arith.constant 0 : index
      %c0_46 = arith.constant 0 : index
      %73 = vector.load %arg11[%c0_45, %c0_46] : memref<256x1xf32, #tpu.memory_space<vmem>>, vector<256x1xf32>
      %c0_47 = arith.constant 0 : index
      %c0_48 = arith.constant 0 : index
      %74 = vector.load %arg12[%c0_47, %c0_48] : memref<256x1xf32, #tpu.memory_space<vmem>>, vector<256x1xf32>
      %c0_49 = arith.constant 0 : index
      %c0_50 = arith.constant 0 : index
      %75 = vector.load %arg13[%c0_49, %c0_50] : memref<256x1xf32, #tpu.memory_space<vmem>>, vector<256x1xf32>
      %76 = arith.mulf %74, %75 : vector<256x1xf32>
      %77 = arith.addf %73, %76 : vector<256x1xf32>
      %cst_51 = arith.constant 1.250000e-01 : f32
      %78 = vector.broadcast %cst_51 : f32 to vector<256x1xf32>
      %79 = arith.mulf %77, %78 : vector<256x1xf32>
      %c0_52 = arith.constant 0 : index
      %c0_53 = arith.constant 0 : index
      %80 = vector.load %arg9[%c0_52, %c0_53] : memref<256x1xf32, #tpu.memory_space<vmem>>, vector<256x1xf32>
      tpu.vector_store %arg9[%c0_52, %c0_53], %79 {strides = array<i32>} : memref<256x1xf32, #tpu.memory_space<vmem>>, vector<256x1xf32>,
    } else {
    }
    return
  }
  func.func @transform_0(%arg0: i32, %arg1: i32) -> (i32, i32) {
    %c0_i32 = arith.constant 0 : i32
    %c0_i32_0 = arith.constant 0 : i32
    return %arg0, %c0_i32 : i32, i32
  }
  func.func @transform_1(%arg0: i32, %arg1: i32) -> (i32, i32) {
    %c0_i32 = arith.constant 0 : i32
    %c0_i32_0 = arith.constant 0 : i32
    return %c0_i32, %arg1 : i32, i32
  }
  func.func @transform_2(%arg0: i32, %arg1: i32) -> (i32, i32) {
    %c0_i32 = arith.constant 0 : i32
    %c0_i32_0 = arith.constant 0 : i32
    return %arg0, %c0_i32 : i32, i32
  }
  func.func @transform_3(%arg0: i32, %arg1: i32) -> (i32, i32) {
    %c0_i32 = arith.constant 0 : i32
    %c0_i32_0 = arith.constant 0 : i32
    return %c0_i32, %arg1 : i32, i32
  }
  func.func @transform_4(%arg0: i32, %arg1: i32) -> (i32, i32) {
    %c0_i32 = arith.constant 0 : i32
    %c0_i32_0 = arith.constant 0 : i32
    return %arg0, %c0_i32 : i32, i32
  }
  func.func @transform_5(%arg0: i32, %arg1: i32) -> (i32, i32) {
    %c0_i32 = arith.constant 0 : i32
    %c0_i32_0 = arith.constant 0 : i32
    return %arg1, %c0_i32 : i32, i32
  }
  func.func @transform_6(%arg0: i32, %arg1: i32) -> (i32, i32) {
    %c0_i32 = arith.constant 0 : i32
    %c0_i32_0 = arith.constant 0 : i32
    return %arg0, %c0_i32 : i32, i32
  }
  func.func @transform_7(%arg0: i32, %arg1: i32) -> (i32, i32) {
    %c0_i32 = arith.constant 0 : i32
    %c0_i32_0 = arith.constant 0 : i32
    return %arg0, %c0_i32 : i32, i32
  }
}

</mosaic_0001>

<bundles_post_ra>
// kernel: tpu_custom_call.1
= control target key start
LH: loop header
LB: loop body
LE: loop exit
PB: predicated region body
PF: predicated region fallthrough
CT: control target
= control target key end

     0   :  { %vm222_vm0 = vcmask 261120   ;;  %s9327_s5 = inlined_call_operand.vmem [shape: f32[256,32], index: 5, kind: input, shape index: {}]   ;;  %s9328_s4 = inlined_call_operand.vmem [shape: f32[256,32], index: 4, kind: input, shape index: {}]   ;;  %s9329_s2 = inlined_call_operand.vmem [shape: f32[256,1], index: 2, kind: input, shape index: {}]   ;;  %s9330_s0 = inlined_call_operand.vmem [shape: s32[256,1], index: 0, kind: input, shape index: {}]   ;;  %s9331_s1 = inlined_call_operand.vmem [shape: s32[1,256], index: 1, kind: input, shape index: {}]   ;;  %s9332_s3 = inlined_call_operand.vmem [shape: f32[1,256], index: 3, kind: input, shape index: {}]   ;;  %s9333_s6 = inlined_call_operand.vmem [shape: f32[256,1], index: 6, kind: output, shape index: {0}]   ;;  %s9334_s7 = inlined_call_operand.vmem [shape: f32[256,1], index: 7, kind: output, shape index: {1}]  }
   0x1   :  { %v206_v0 = vld [vmem:[%s9327_s5 + $0x80] sm:$0xff]  ;;  %v207_v1 = vld [vmem:[%s9327_s5 + $0x88] sm:$0xff]  ;;  %v208_v7 = vld [vmem:[%s9327_s5 + $0x90] sm:$0xff] }
   0x2   :  { %v190_v2 = vld [vmem:[%s9327_s5] sm:$0xff]  ;;  %v6158_v3 = vsel %vm222_vm0, %v206_v0, 0  ;;  %v6161_v4 = vsel %vm222_vm0, %v207_v1, 0  ;;  %v191_v5 = vld [vmem:[%s9327_s5 + $0x8] sm:$0xff]  ;;  %v209_v8 = vld [vmem:[%s9327_s5 + $0x98] sm:$0xff]  ;;  %v6186_v15 = vsel %vm222_vm0, %v208_v7, 0 }
   0x3   :  { %v6167_v6 = vsel %vm222_vm0, %v190_v2, 0  ;;  %v464_v9 = vand.u32 4294901760, %v6158_v3  ;;  %v467_v10 = vand.u32 4294901760, %v6161_v4  ;;  %v6178_v11 = vsel %vm222_vm0, %v191_v5, 0  ;;  %v192_v13 = vld [vmem:[%s9327_s5 + $0x10] sm:$0xff]  ;;  %v193_v17 = vld [vmem:[%s9327_s5 + $0x18] sm:$0xff] }
   0x4   :  { %v416_v12 = vand.u32 4294901760, %v6167_v6  ;;  %v419_v14 = vand.u32 4294901760, %v6178_v11  ;;  %v6189_v16 = vsel %vm222_vm0, %v209_v8, 0  ;;  %v210_v18 = vld [vmem:[%s9327_s5 + $0xa0] sm:$0xff]  ;;  %v211_v19 = vld [vmem:[%s9327_s5 + $0xa8] sm:$0xff]  ;;  %v6207_v21 = vsel %vm222_vm0, %v192_v13, 0 }
   0x5   :  { %v6204_v20 = vpack.c.bf16 %v467_v10, %v464_v9  ;;  %v9356_v23 = vand.u32 4294901760, %v6186_v15  ;;  %v9355_v24 = vand.u32 4294901760, %v6189_v16  ;;  %v6220_v25 = vsel %vm222_vm0, %v193_v17, 0  ;;  %v194_v33 = vld [vmem:[%s9327_s5 + $0x20] sm:$0xff]  ;;  %v195_v34 = vld [vmem:[%s9327_s5 + $0x28] sm:$0xff]  ;;  %v212_v35 = vld [vmem:[%s9327_s5 + $0xb0] sm:$0xff] }
   0x6   :  { %v6213_v22 = vpack.c.bf16 %v419_v14, %v416_v12  ;;  %v6223_v26 = vsel %vm222_vm0, %v210_v18, 0  ;;  %v6226_v27 = vsel %vm222_vm0, %v211_v19, 0  ;;  %v9354_v29 = vand.u32 4294901760, %v6207_v21  ;;  %v213_v36 = vld [vmem:[%s9327_s5 + $0xb8] sm:$0xff]  ;;  %v196_v47 = vld [vmem:[%s9327_s5 + $0x30] sm:$0xff]  ;;  %v214_v49 = vld [vmem:[%s9327_s5 + $0xc0] sm:$0xff] }
   0x7   :  { %5623 = vmatprep.subr.bf16.mxu1 %v6204_v20  ;;  %5719 = vmatprep.subr.bf16.mxu0 %v6204_v20  ;;  %v6234_v28 = vpack.c.bf16 %v9355_v24, %v9356_v23  ;;  %v9353_v30 = vand.u32 4294901760, %v6220_v25  ;;  %v9352_v31 = vand.u32 4294901760, %v6223_v26  ;;  %v9351_v32 = vand.u32 4294901760, %v6226_v27  ;;  %v197_v48 = vld [vmem:[%s9327_s5 + $0x38] sm:$0xff]  ;;  %v215_v50 = vld [vmem:[%s9327_s5 + $0xc8] sm:$0xff]  ;;  %v158_v61 = vld [vmem:[%s9328_s4] sm:$0xff] }
   0x8   :  { %9499 = vst [vmem:[#allocation6_spill] sm:$0xff] %v6213_v22  ;;  %5625 = vmatpush3.bf16.xpose.msra.mxu1 %v6213_v22  ;;  %5721 = vmatpush3.bf16.xpose.msra.mxu0 %v6213_v22  ;;  %v6267_v39 = vsel %vm222_vm0, %v194_v33, 0  ;;  %v6270_v40 = vsel %vm222_vm0, %v195_v34, 0  ;;  %v6273_v41 = vsel %vm222_vm0, %v212_v35, 0  ;;  %v6276_v42 = vsel %vm222_vm0, %v213_v36, 0  ;;  %v198_v62 = vld [vmem:[%s9327_s5 + $0x40] sm:$0xff] }
   0x9   :  { %9500 = vst [vmem:[#allocation7_spill] sm:$0xff] %v6234_v28  ;;  %5627 = vmatprep.subr.bf16.mxu1 %v6234_v28  ;;  %5723 = vmatprep.subr.bf16.mxu0 %v6234_v28  ;;  %v6258_v37 = vpack.c.bf16 %v9353_v30, %v9354_v29  ;;  %v6264_v38 = vpack.c.bf16 %v9351_v32, %v9352_v31  ;;  %v9350_v43 = vand.u32 4294901760, %v6267_v39  ;;  %v9345_v44 = vand.u32 4294901760, %v6270_v40  ;;  %v199_v63 = vld [vmem:[%s9327_s5 + $0x48] sm:$0xff]  ;;  %v216_v0 = vld [vmem:[%s9327_s5 + $0xd0] sm:$0xff]  ;;  %v217_v1 = vld [vmem:[%s9327_s5 + $0xd8] sm:$0xff] }
   0xa   :  { %v9344_v45 = vand.u32 4294901760, %v6273_v41  ;;  %v9343_v46 = vand.u32 4294901760, %v6276_v42  ;;  %v6311_v53 = vsel %vm222_vm0, %v196_v47, 0  ;;  %v6314_v54 = vsel %vm222_vm0, %v197_v48, 0  ;;  %v200_v48 = vld [vmem:[%s9327_s5 + $0x50] sm:$0xff] }
   0xb   :  { %9501 = vst [vmem:[#allocation8_spill] sm:$0xff] %v6258_v37  ;;  %9502 = vst [vmem:[#allocation9_spill] sm:$0xff] %v6264_v38  ;;  %v6302_v51 = vpack.c.bf16 %v9345_v44, %v9350_v43  ;;  %v6317_v55 = vsel %vm222_vm0, %v214_v49, 0  ;;  %v6320_v56 = vsel %vm222_vm0, %v215_v50, 0  ;;  %v9342_v57 = vand.u32 4294901760, %v6311_v53  ;;  %v201_v49 = vld [vmem:[%s9327_s5 + $0x58] sm:$0xff] }
   0xc   :  { %v6308_v52 = vpack.c.bf16 %v9343_v46, %v9344_v45  ;;  %v9341_v58 = vand.u32 4294901760, %v6314_v54  ;;  %v9338_v59 = vand.u32 4294901760, %v6317_v55  ;;  %v9335_v60 = vand.u32 4294901760, %v6320_v56  ;;  %v160_v31 = vld [vmem:[%s9328_s4 + $0x10] sm:$0xff] }
   0xd   :  { %9503 = vst [vmem:[#allocation10_spill] sm:$0xff] %v6302_v51  ;;  %v224_v5 = vsel %vm222_vm0, %v158_v61, 0  ;;  %v6359_v8 = vsel %vm222_vm0, %v198_v62, 0  ;;  %v6362_v13 = vsel %vm222_vm0, %v199_v63, 0  ;;  %v6365_v17 = vsel %vm222_vm0, %v216_v0, 0  ;;  %v218_v61 = vld [vmem:[%s9327_s5 + $0xe0] sm:$0xff] }
   0xe   :  { %9504 = vst [vmem:[#allocation11_spill] sm:$0xff] %v6308_v52  ;;  %v6349_v2 = vpack.c.bf16 %v9341_v58, %v9342_v57  ;;  %v6356_v7 = vpack.c.bf16 %v9335_v60, %v9338_v59  ;;  %v6368_v18 = vsel %vm222_vm0, %v217_v1, 0  ;;  %v6370_v19 = vand.u32 4294901760, %v224_v5  ;;  %v219_v62 = vld [vmem:[%s9327_s5 + $0xe8] sm:$0xff]  ;;  %v221_v58 = vld [vmem:[%s9327_s5 + $0xf8] sm:$0xff] }
   0xf   :  { %v9337_v33 = vand.u32 4294901760, %v6359_v8  ;;  %v9336_v34 = vand.u32 4294901760, %v6362_v13  ;;  %v9340_v36 = vand.u32 4294901760, %v6365_v17  ;;  %v9339_v47 = vand.u32 4294901760, %v6368_v18 }
  0x10   :  { %5629 = vmatpush3.bf16.xpose.msra.mxu1 %v6258_v37  ;;  %5725 = vmatpush3.bf16.xpose.msra.mxu0 %v6258_v37  ;;  %9505 = vst [vmem:[#allocation12_spill] sm:$0xff] %v6349_v2  ;;  %9506 = vst [vmem:[#allocation13_spill] sm:$0xff] %v6356_v7  ;;  %v6377_v35 = vsub.f32 %v224_v5, %v6370_v19  ;;  %v6414_v5 = vsel %vm222_vm0, %v200_v48, 0  ;;  %v6417_v60 = vsel %vm222_vm0, %v201_v49, 0 }
  0x11   :  { %5631 = vmatprep.subr.bf16.mxu1 %v6264_v38  ;;  %5727 = vmatprep.subr.bf16.mxu0 %v6264_v38  ;;  %v6402_v63 = vpack.c.bf16 %v9336_v34, %v9337_v33  ;;  %v6411_v1 = vpack.c.bf16 %v9339_v47, %v9340_v36  ;;  %v6420_v34 = vsel %vm222_vm0, %v218_v61, 0  ;;  %v6423_v33 = vsel %vm222_vm0, %v219_v62, 0  ;;  %v202_v62 = vld [vmem:[%s9327_s5 + $0x60] sm:$0xff]  ;;  %v220_v36 = vld [vmem:[%s9327_s5 + $0xf0] sm:$0xff] }
  0x12   :  { %9507 = vst [vmem:[#allocation14_spill] sm:$0xff] %v6377_v35  ;;  %v6390_v50 = vand.u32 4294901760, %v6377_v35  ;;  %v9349_v47 = vand.u32 4294901760, %v6414_v5  ;;  %v9348_v48 = vand.u32 4294901760, %v6417_v60  ;;  %v9347_v49 = vand.u32 4294901760, %v6420_v34 }
  0x13   :  { %9508 = vst [vmem:[#allocation15_spill] sm:$0xff] %v6402_v63  ;;  %9509 = vst [vmem:[#allocation16_spill] sm:$0xff] %v6411_v1  ;;  %v9346_v61 = vand.u32 4294901760, %v6423_v33  ;;  %v6451_v57 = vsub.f32 %v6158_v3, %v464_v9  ;;  %v6456_v46 = vsub.f32 %v6161_v4, %v467_v10  ;;  %v6465_v44 = vsel %vm222_vm0, %v202_v62, 0  ;;  %v159_v62 = vld [vmem:[%s9328_s4 + $0x8] sm:$0xff] }
  0x14   :  { %v515_v0 = vsub.f32 %v6377_v35, %v6390_v50  ;;  %5366 = vmatprep.mubr.f32.mxu0 %v6390_v50  ;;  %v6462_v45 = vpack.c.bf16 %v9348_v48, %v9349_v47  ;;  %v6477_v4 = vsel %vm222_vm0, %v220_v36, 0  ;;  %v6480_v10 = vsel %vm222_vm0, %v221_v58, 0  ;;  %v204_v58 = vld [vmem:[%s9327_s5 + $0x70] sm:$0xff]  ;;  %v205_v48 = vld [vmem:[%s9327_s5 + $0x78] sm:$0xff] }
  0x15   :  { %v6471_v3 = vpack.c.bf16 %v9346_v61, %v9347_v49  ;;  %v9358_v61 = vand.u32 4294901760, %v6465_v44  ;;  %v9359_v36 = vand.u32 4294901760, %v6480_v10  ;;  %v979_v47 = vand.u32 4294901760, %v6451_v57 }
  0x16   :  { %v6425_v59 = vand.u32 4294901760, %v515_v0  ;;  %v203_v0 = vld [vmem:[%s9327_s5 + $0x68] sm:$0xff]  ;;  %9510 = vst [vmem:[#allocation17_spill] sm:$0xff] %v6462_v45  ;;  %v986_v43 = vand.u32 4294901760, %v6456_v46  ;;  %v227_v32 = vsel %vm222_vm0, %v159_v62, 0  ;;  %v6508_v30 = vsub.f32 %v6167_v6, %v416_v12 }
  0x17   :  { %9511 = vst [vmem:[#allocation18_spill] sm:$0xff] %v6471_v3  ;;  %v6474_v9 = vsel %vm222_vm0, %v203_v0, 0  ;;  %v9360_v0 = vand.u32 4294901760, %v6477_v4  ;;  %v6513_v29 = vsub.f32 %v6178_v11, %v419_v14  ;;  %v6528_v6 = vsel %vm222_vm0, %v204_v58, 0 }
  0x18   :  { %5633 = vmatpush3.bf16.xpose.msra.mxu1 %v6302_v51  ;;  %5729 = vmatpush3.bf16.xpose.msra.mxu0 %v6302_v51  ;;  %v9357_v49 = vand.u32 4294901760, %v6474_v9  ;;  %v6531_v12 = vsel %vm222_vm0, %v205_v48, 0  ;;  %v980_v11 = vsub.f32 %v6451_v57, %v979_v47  ;;  %v987_v14 = vsub.f32 %v6456_v46, %v986_v43 }
  0x19   :  { %5635 = vmatprep.subr.bf16.mxu1 %v6308_v52  ;;  %5731 = vmatprep.subr.bf16.mxu0 %v6308_v52  ;;  %9512 = vst [vmem:[#allocation19_spill] sm:$0xff] %v6513_v29  ;;  %v6525_v62 = vpack.c.bf16 %v9359_v36, %v9360_v0  ;;  %v6535_v23 = vand.u32 4294901760, %v227_v32  ;;  %v9516_v36 = vand.u32 4294901760, %v6186_v15  ;;  %v9518_v48 = vand.u32 4294901760, %v6189_v16 }
  0x1a   :  { %5078 = vmatprep.mubr.f32.mxu1 %v6425_v59  ;;  %v6519_v24 = vpack.c.bf16 %v9357_v49, %v9358_v61  ;;  %v230_v49 = vsel %vm222_vm0, %v160_v31, 0  ;;  %v161_v61 = vld [vmem:[%s9328_s4 + $0x18] sm:$0xff]  ;;  %v867_v31 = vand.u32 4294901760, %v6508_v30  ;;  %v9522_v35 = vand.u32 4294901760, %v6207_v21 }
  0x1b   :  { %9514 = vst [vmem:[#allocation21_spill] sm:$0xff] %v6525_v62  ;;  %9515 = vst [vmem:[#allocation22_spill] sm:$0xff] %v6535_v23  ;;  %v6544_v58 = vsub.f32 %v6186_v15, %v9516_v36  ;;  %v6549_v0 = vsub.f32 %v6189_v16, %v9518_v48  ;;  %v233_v15 = vsel %vm222_vm0, %v161_v61, 0  ;;  %v981_v16 = vand.u32 4294901760, %v980_v11 }
  0x1c   :  { %9513 = vst [vmem:[#allocation20_spill] sm:$0xff] %v6519_v24  ;;  %v988_v36 = vand.u32 4294901760, %v987_v14  ;;  %v6563_v48 = vsub.f32 %v227_v32, %v6535_v23  ;;  %v9524_v32 = vand.u32 4294901760, %v6223_v26  ;;  %v868_v52 = vsub.f32 %v6508_v30, %v867_v31 }
  0x1d   :  { %9517 = vst [vmem:[#allocation23_spill] sm:$0xff] %v6544_v58  ;;  %9519 = vst [vmem:[#allocation24_spill] sm:$0xff] %v6549_v0  ;;  %v993_v61 = vand.u32 4294901760, %v6544_v58  ;;  %v5750_v37 = vpack.c.bf16 %v986_v43, %v979_v47  ;;  %v163_v43 = vld [vmem:[%s9328_s4 + $0x28] sm:$0xff]  ;;  %v9533_v47 = vand.u32 4294901760, %v6273_v41 }
  0x1e   :  { %9521 = vst [vmem:[#allocation26_spill] sm:$0xff] %v6563_v48  ;;  %v6583_v14 = vsub.f32 %v6223_v26, %v9524_v32  ;;  %v9530_v26 = vand.u32 4294901760, %v6226_v27  ;;  %v5654_v38 = vpack.c.bf16 %v988_v36, %v981_v16 }
  0x1f   :  { %v6625_v16 = vsub.f32 %v6273_v41, %v9533_v47  ;;  %v869_v41 = vand.u32 4294901760, %v868_v52 }
  0x20   :  { %5637 = vmatpush3.bf16.xpose.msra.mxu1 %v6349_v2  ;;  %5733 = vmatpush3.bf16.xpose.msra.mxu0 %v6349_v2  ;;  %v9526_v2 = vand.u32 4294901760, %v6531_v12  ;;  %v6602_v32 = vsub.f32 %v6226_v27, %v9530_v26  ;;  %v1007_v52 = vand.u32 4294901760, %v6583_v14 }
  0x21   :  { %5639 = vmatprep.subr.bf16.mxu1 %v6356_v7  ;;  %5735 = vmatprep.subr.bf16.mxu0 %v6356_v7  ;;  %v9525_v7 = vand.u32 4294901760, %v6528_v6 }
  0x28   :  { %5641 = vmatpush3.bf16.xpose.msra.mxu1 %v6402_v63  ;;  %5737 = vmatpush3.bf16.xpose.msra.mxu0 %v6402_v63  ;;  %v1000_v63 = vand.u32 4294901760, %v6549_v0 }
  0x29   :  { %5643 = vmatprep.subr.bf16.mxu1 %v6411_v1  ;;  %5739 = vmatprep.subr.bf16.mxu0 %v6411_v1  ;;  %v6557_v1 = vand.u32 4294901760, %v230_v49 }
  0x2a   :  { %v1001_v27 = vsub.f32 %v6549_v0, %v1000_v63 }
  0x2b   :  { %9520 = vst [vmem:[#allocation25_spill] sm:$0xff] %v6557_v1 }
  0x30   :  { %5645 = vmatpush3.bf16.xpose.msra.mxu1 %v6462_v45  ;;  %5741 = vmatpush3.bf16.xpose.msra.mxu0 %v6462_v45  ;;  %v874_v45 = vand.u32 4294901760, %v6513_v29 }
  0x31   :  { %5647 = vmatprep.subr.bf16.mxu1 %v6471_v3  ;;  %5743 = vmatprep.subr.bf16.mxu0 %v6471_v3  ;;  %v162_v3 = vld [vmem:[%s9328_s4 + $0x20] sm:$0xff] }
  0x32   :  { %v875_v51 = vsub.f32 %v6513_v29, %v874_v45  ;;  %v5752_v22 = vpack.c.bf16 %v874_v45, %v867_v31  ;;  %v5754_v45 = vpack.c.bf16 %v1000_v63, %v993_v61  ;;  %v1008_v31 = vsub.f32 %v6583_v14, %v1007_v52 }
  0x34   :  { %v876_v47 = vand.u32 4294901760, %v875_v51  ;;  %v164_v51 = vld [vmem:[%s9328_s4 + $0x30] sm:$0xff] }
  0x38   :  { %5649 = vmatpush3.bf16.xpose.msra.mxu1 %v6519_v24  ;;  %5745 = vmatpush3.bf16.xpose.msra.mxu0 %v6519_v24  ;;  %v6571_v24 = vsub.f32 %v6207_v21, %v9522_v35  ;;  %v6589_v21 = vpack.c.bf16 %v9526_v2, %v9525_v7  ;;  %v6591_v35 = vand.u32 4294901760, %v233_v15  ;;  %v6605_v2 = vand.u32 4294901760, %v6563_v48 }
  0x39   :  { %5651 = vmatprep.subr.bf16.mxu1 %v6525_v62  ;;  %5747 = vmatprep.subr.bf16.mxu0 %v6525_v62  ;;  %v9523_v62 = vand.u32 4294901760, %v6220_v25  ;;  %v9531_v7 = vand.u32 4294901760, %v6267_v39 }
  0x3a   :  { %9527 = vst [vmem:[#allocation27_spill] sm:$0xff] %v6589_v21  ;;  %9528 = vst [vmem:[#allocation28_spill] sm:$0xff] %v6591_v35 }
  0x3b   :  { %v6578_v11 = vsub.f32 %v6220_v25, %v9523_v62  ;;  %v6596_v25 = vsub.f32 %v230_v49, %v6557_v1  ;;  %v236_v62 = vsel %vm222_vm0, %v162_v3, 0  ;;  %v6610_v28 = vsub.f32 %v6267_v39, %v9531_v7 }
  0x3c   :  { %v9532_v49 = vand.u32 4294901760, %v6270_v40  ;;  %v994_v3 = vsub.f32 %v6544_v58, %v993_v61  ;;  %v9534_v39 = vand.u32 4294901760, %v6276_v42  ;;  %v6635_v26 = vand.u32 4294901760, %v236_v62 }
  0x3d   :  { %9529 = vst [vmem:[#allocation29_spill] sm:$0xff] %v6596_v25  ;;  %v9537_v7 = vand.u32 4294901760, %v6311_v53  ;;  %v6645_v23 = vand.u32 4294901760, %v6596_v25 }
  0x3e   :  { %v6615_v1 = vsub.f32 %v6270_v40, %v9532_v49  ;;  %v6630_v36 = vsub.f32 %v6276_v42, %v9534_v39  ;;  %v6633_v40 = vsub.f32 %v233_v15, %v6591_v35  ;;  %9536 = vst [vmem:[#allocation31_spill] sm:$0xff] %v6635_v26  ;;  %v526_v42 = vsub.f32 %v6563_v48, %v6605_v2 }
  0x3f   :  { %v6640_v49 = vsub.f32 %v6311_v53, %v9537_v7  ;;  %v888_v39 = vand.u32 4294901760, %v6578_v11  ;;  %v239_v53 = vsel %vm222_vm0, %v163_v43, 0  ;;  %v995_v7 = vand.u32 4294901760, %v994_v3 }
  0x40   :  { %9535 = vst [vmem:[#allocation30_spill] sm:$0xff] %v6633_v40  ;;  %5653 = vmatpush3.bf16.xpose.msra.mxu1 %v6589_v21  ;;  %5749 = vmatpush3.bf16.xpose.msra.mxu0 %v6589_v21  ;;  %v1002_v35 = vand.u32 4294901760, %v1001_v27  ;;  %v9539_v15 = vand.u32 4294901760, %v6317_v55  ;;  %v6668_v3 = vand.u32 4294901760, %v6633_v40  ;;  %v6671_v27 = vsub.f32 %v236_v62, %v6635_v26  ;;  %v165_v62 = vld [vmem:[%s9328_s4 + $0x38] sm:$0xff] }
  0x41   :  { %5655 = vmatprep.subr.bf16.mxu1 %v5654_v38  ;;  %5751 = vmatprep.subr.bf16.mxu0 %v5750_v37  ;;  %v1014_v38 = vand.u32 4294901760, %v6602_v32  ;;  %v9538_v37 = vand.u32 4294901760, %v6314_v54  ;;  %v5656_v43 = vpack.c.bf16 %v876_v47, %v869_v41  ;;  %v537_v0 = vsub.f32 %v6596_v25, %v6645_v23 }
  0x42   :  { %v6665_v21 = vsub.f32 %v6317_v55, %v9539_v15  ;;  %9541 = vst [vmem:[#allocation33_spill] sm:$0xff] %v6671_v27  ;;  %v6675_v58 = vand.u32 4294901760, %v239_v53  ;;  %v889_v55 = vsub.f32 %v6578_v11, %v888_v39  ;;  %v242_v15 = vsel %vm222_vm0, %v164_v51, 0  ;;  %v166_v51 = vld [vmem:[%s9328_s4 + $0x40] sm:$0xff] }
  0x43   :  { %v6660_v48 = vsub.f32 %v6314_v54, %v9538_v37  ;;  %v527_v54 = vand.u32 4294901760, %v526_v42  ;;  %v9542_v37 = vand.u32 4294901760, %v6571_v24  ;;  %v5658_v41 = vpack.c.bf16 %v1002_v35, %v995_v7 }
  0x44   :  { %9540 = vst [vmem:[#allocation32_spill] sm:$0xff] %v6665_v21  ;;  %v1015_v47 = vsub.f32 %v6602_v32, %v1014_v38  ;;  %v9543_v42 = vand.u32 4294901760, %v6320_v56  ;;  %v548_v63 = vsub.f32 %v6633_v40, %v6668_v3  ;;  %v6702_v61 = vand.u32 4294901760, %v6671_v27 }
  0x45   :  { %v882_v29 = vsub.f32 %v6571_v24, %v9542_v37  ;;  %v9545_v37 = vand.u32 4294901760, %v6359_v8  ;;  %v538_v35 = vand.u32 4294901760, %v537_v0  ;;  %v6707_v7 = vand.u32 4294901760, %v242_v15 }
  0x46   :  { %v6690_v25 = vsub.f32 %v6320_v56, %v9543_v42  ;;  %v6705_v56 = vsub.f32 %v239_v53, %v6675_v58  ;;  %v1009_v0 = vand.u32 4294901760, %v1008_v31  ;;  %v1016_v53 = vand.u32 4294901760, %v1015_v47 }
  0x47   :  { %v6695_v26 = vsub.f32 %v6359_v8, %v9545_v37  ;;  %5079 = vmatmul.mubr.f32.vlgmr.msra.gmra.mrb[0].mxu1 %v6425_v59  ;;  %5367 = vmatmul.mubr.f32.vlgmr.msra.gmra.mrb[0].mxu0 %v6390_v50  ;;  %v245_v8 = vsel %vm222_vm0, %v165_v62, 0  ;;  %v883_v59 = vand.u32 4294901760, %v882_v29  ;;  %v890_v50 = vand.u32 4294901760, %v889_v55  ;;  %v167_v62 = vld [vmem:[%s9328_s4 + $0x48] sm:$0xff] }
  0x48   :  { %9544 = vst [vmem:[#allocation34_spill] sm:$0xff] %v6690_v25  ;;  %5657 = vmatpush3.bf16.xpose.msra.mxu1 %v5656_v43  ;;  %5753 = vmatpush3.bf16.xpose.msra.mxu0 %v5752_v22  ;;  %9546 = vst [vmem:[#allocation35_spill] sm:$0xff] %v6705_v56  ;;  %v9395_v43 = vand.u32 4294901760, %v6610_v28  ;;  %v9396_v22 = vand.u32 4294901760, %v6615_v1  ;;  %v9547_v37 = vand.u32 4294901760, %v6362_v13  ;;  %v9548_v55 = vand.u32 4294901760, %v6365_v17 }
  0x49   :  { %5080 = vmatprep.mubr.f32.mxu1 %v527_v54  ;;  %5368 = vmatprep.mubr.f32.mxu0 %v6605_v2  ;;  %v549_v31 = vand.u32 4294901760, %v548_v63  ;;  %v6738_v47 = vsub.f32 %v242_v15, %v6707_v7  ;;  %v5662_v15 = vpack.c.bf16 %v1016_v53, %v1009_v0  ;;  %v5758_v42 = vpack.c.bf16 %v1014_v38, %v1007_v52 }
  0x4a   :  { %5659 = vmatprep.subr.bf16.mxu1 %v5658_v41  ;;  %5755 = vmatprep.subr.bf16.mxu0 %v5754_v45  ;;  %v6721_v29 = vsub.f32 %v6362_v13, %v9547_v37  ;;  %v6726_v40 = vsub.f32 %v6365_v17, %v9548_v55  ;;  %v559_v41 = vsub.f32 %v6671_v27, %v6702_v61  ;;  %v6731_v45 = vand.u32 4294901760, %v245_v8  ;;  %v169_v27 = vld [vmem:[%s9328_s4 + $0x58] sm:$0xff] }
  0x4b   :  { %5081 = vmatmul.mubr.f32.gmra.mrb[2].mxu1 %v527_v54  ;;  %5369 = vmatmul.mubr.f32.gmra.mrb[2].mxu0 %v6605_v2  ;;  %v6735_v13 = vand.u32 4294901760, %v6705_v56  ;;  %9550 = vst [vmem:[#allocation37_spill] sm:$0xff] %v6738_v47  ;;  %v248_v17 = vsel %vm222_vm0, %v166_v51, 0  ;;  %v5660_v54 = vpack.c.bf16 %v890_v50, %v883_v59  ;;  %v9551_v2 = vand.u32 4294901760, %v6571_v24 }
  0x4c   :  { %9549 = vst [vmem:[#allocation36_spill] sm:$0xff] %v6731_v45  ;;  %5082 = vmatprep.mubr.f32.mxu1 %v538_v35  ;;  %5370 = vmatprep.mubr.f32.mxu0 %v6645_v23  ;;  %v896_v55 = vsub.f32 %v6610_v28, %v9395_v43  ;;  %v903_v63 = vsub.f32 %v6615_v1, %v9396_v22  ;;  %v9552_v51 = vand.u32 4294901760, %v6625_v16  ;;  %v560_v22 = vand.u32 4294901760, %v559_v41 }
  0x4d   :  { %v5756_v37 = vpack.c.bf16 %v888_v39, %v9551_v2  ;;  %v9553_v39 = vand.u32 4294901760, %v6630_v36  ;;  %v9554_v2 = vand.u32 4294901760, %v6368_v18  ;;  %v6765_v0 = vsub.f32 %v245_v8, %v6731_v45 }
  0x4e   :  { %v1022_v59 = vsub.f32 %v6625_v16, %v9552_v51  ;;  %v6767_v52 = vand.u32 4294901760, %v248_v17  ;;  %v570_v38 = vsub.f32 %v6705_v56, %v6735_v13  ;;  %v6773_v53 = vand.u32 4294901760, %v6738_v47 }
  0x4f   :  { %v1029_v50 = vsub.f32 %v6630_v36, %v9553_v39  ;;  %v6761_v43 = vsub.f32 %v6368_v18, %v9554_v2  ;;  %5083 = vmatmul.mubr.f32.gmra.mrb[4].mxu1 %v538_v35  ;;  %5371 = vmatmul.mubr.f32.gmra.mrb[4].mxu0 %v6645_v23  ;;  %9555 = vst [vmem:[#allocation38_spill] sm:$0xff] %v6765_v0  ;;  %v251_v18 = vsel %vm222_vm0, %v167_v62, 0  ;;  %v9557_v23 = vand.u32 4294901760, %v6414_v5  ;;  %v168_v39 = vld [vmem:[%s9328_s4 + $0x50] sm:$0xff] }
  0x50   :  { %9556 = vst [vmem:[#allocation39_spill] sm:$0xff] %v6767_v52  ;;  %5084 = vmatprep.mubr.f32.mxu1 %v549_v31  ;;  %5372 = vmatprep.mubr.f32.mxu0 %v6668_v3  ;;  %v897_v41 = vand.u32 4294901760, %v896_v55  ;;  %v904_v51 = vand.u32 4294901760, %v903_v63  ;;  %v9403_v2 = vand.u32 4294901760, %v6660_v48  ;;  %v1023_v62 = vand.u32 4294901760, %v1022_v59 }
  0x51   :  { %v6780_v8 = vsub.f32 %v6414_v5, %v9557_v23  ;;  %5661 = vmatpush3.bf16.xpose.msra.mxu1 %v5660_v54  ;;  %5757 = vmatpush3.bf16.xpose.msra.mxu0 %v5756_v37  ;;  %v1030_v56 = vand.u32 4294901760, %v1029_v50  ;;  %v9404_v35 = vand.u32 4294901760, %v6665_v21  ;;  %v9558_v5 = vand.u32 4294901760, %v6417_v60 }
  0x52   :  { %5663 = vmatprep.subr.bf16.mxu1 %v5662_v15  ;;  %5759 = vmatprep.subr.bf16.mxu0 %v5758_v42  ;;  %v6795_v37 = vand.u32 4294901760, %v6765_v0  ;;  %v6798_v55 = vsub.f32 %v248_v17, %v6767_v52  ;;  %v6800_v42 = vand.u32 4294901760, %v251_v18  ;;  %v571_v63 = vand.u32 4294901760, %v570_v38 }
  0x53   :  { %v6791_v54 = vsub.f32 %v6417_v60, %v9558_v5  ;;  %5085 = vmatmul.mubr.f32.gmra.mrb[6].mxu1 %v549_v31  ;;  %5373 = vmatmul.mubr.f32.gmra.mrb[6].mxu0 %v6668_v3  ;;  %v581_v15 = vsub.f32 %v6738_v47, %v6773_v53  ;;  %v254_v60 = vsel %vm222_vm0, %v168_v39, 0  ;;  %v9561_v31 = vand.u32 4294901760, %v6640_v49  ;;  %v170_v39 = vld [vmem:[%s9328_s4 + $0x60] sm:$0xff] }
  0x54   :  { %9559 = vst [vmem:[#allocation40_spill] sm:$0xff] %v6798_v55  ;;  %9560 = vst [vmem:[#allocation41_spill] sm:$0xff] %v6800_v42  ;;  %5086 = vmatprep.mubr.f32.mxu1 %v560_v22  ;;  %5374 = vmatprep.mubr.f32.mxu0 %v6702_v61  ;;  %v9562_v59 = vand.u32 4294901760, %v6420_v34  ;;  %v5664_v50 = vpack.c.bf16 %v904_v51, %v897_v41  ;;  %v9563_v23 = vand.u32 4294901760, %v6610_v28  ;;  %v9564_v5 = vand.u32 4294901760, %v6615_v1 }
  0x55   :  { %v910_v3 = vsub.f32 %v6640_v49, %v9561_v31  ;;  %v917_v31 = vsub.f32 %v6660_v48, %v9403_v2  ;;  %v9565_v41 = vand.u32 4294901760, %v6625_v16  ;;  %v9566_v51 = vand.u32 4294901760, %v6630_v36 }
  0x56   :  { %v6812_v17 = vsub.f32 %v6420_v34, %v9562_v59  ;;  %v5760_v38 = vpack.c.bf16 %v9564_v5, %v9563_v23  ;;  %v5666_v34 = vpack.c.bf16 %v1030_v56, %v1023_v62  ;;  %v1036_v23 = vsub.f32 %v6665_v21, %v9404_v35 }
  0x57   :  { %v5762_v59 = vpack.c.bf16 %v9566_v51, %v9565_v41  ;;  %v9567_v5 = vand.u32 4294901760, %v6690_v25  ;;  %5087 = vmatmul.mubr.f32.gmra.mrb[8].mxu1 %v560_v22  ;;  %5375 = vmatmul.mubr.f32.gmra.mrb[8].mxu0 %v6702_v61  ;;  %v592_v2 = vsub.f32 %v6765_v0, %v6795_v37  ;;  %v6841_v56 = vand.u32 4294901760, %v6798_v55 }
  0x58   :  { %v6844_v62 = vsub.f32 %v251_v18, %v6800_v42  ;;  %v6846_v41 = vand.u32 4294901760, %v254_v60  ;;  %5088 = vmatprep.mubr.f32.mxu1 %v571_v63  ;;  %5376 = vmatprep.mubr.f32.mxu0 %v6735_v13  ;;  %v582_v51 = vand.u32 4294901760, %v581_v15  ;;  %v260_v22 = vsel %vm222_vm0, %v170_v39, 0 }
  0x59   :  { %v1043_v47 = vsub.f32 %v6690_v25, %v9567_v5  ;;  %v257_v5 = vsel %vm222_vm0, %v169_v27, 0  ;;  %v911_v61 = vand.u32 4294901760, %v910_v3  ;;  %5665 = vmatpush3.bf16.xpose.msra.mxu1 %v5664_v50  ;;  %5761 = vmatpush3.bf16.xpose.msra.mxu0 %v5760_v38  ;;  %v918_v35 = vand.u32 4294901760, %v917_v31 }
  0x5a   :  { %9568 = vst [vmem:[#allocation42_spill] sm:$0xff] %v6844_v62  ;;  %9569 = vst [vmem:[#allocation43_spill] sm:$0xff] %v6846_v41  ;;  %v9413_v0 = vand.u32 4294901760, %v6695_v26  ;;  %v9414_v52 = vand.u32 4294901760, %v6721_v29  ;;  %v9417_v18 = vand.u32 4294901760, %v6726_v40  ;;  %v9570_v42 = vand.u32 4294901760, %v6423_v33  ;;  %5667 = vmatprep.subr.bf16.mxu1 %v5666_v34  ;;  %5763 = vmatprep.subr.bf16.mxu0 %v5762_v59 }
  0x5b   :  { %v1037_v27 = vand.u32 4294901760, %v1036_v23  ;;  %v1044_v15 = vand.u32 4294901760, %v1043_v47  ;;  %v9571_v50 = vand.u32 4294901760, %v6465_v44  ;;  %5089 = vmatmul.mubr.f32.gmra.mrb[10].mxu1 %v571_v63  ;;  %5377 = vmatmul.mubr.f32.gmra.mrb[10].mxu0 %v6735_v13  ;;  %v6867_v39 = vand.u32 4294901760, %v6844_v62 }
  0x5c   :  { %v6857_v45 = vsub.f32 %v6423_v33, %v9570_v42  ;;  %v6870_v33 = vsub.f32 %v254_v60, %v6846_v41  ;;  %v6872_v42 = vand.u32 4294901760, %v257_v5  ;;  %5090 = vmatprep.mubr.f32.mxu1 %v582_v51  ;;  %5378 = vmatprep.mubr.f32.mxu0 %v6773_v53  ;;  %v593_v47 = vand.u32 4294901760, %v592_v2 }
  0x5d   :  { %v6863_v38 = vsub.f32 %v6465_v44, %v9571_v50  ;;  %v603_v31 = vsub.f32 %v6798_v55, %v6841_v56  ;;  %v6877_v44 = vand.u32 4294901760, %v260_v22  ;;  %v9575_v63 = vand.u32 4294901760, %v6640_v49 }
  0x5e   :  { %9572 = vst [vmem:[#allocation44_spill] sm:$0xff] %v6870_v33  ;;  %9573 = vst [vmem:[#allocation45_spill] sm:$0xff] %v6872_v42  ;;  %v9576_v13 = vand.u32 4294901760, %v6660_v48  ;;  %v5668_v59 = vpack.c.bf16 %v918_v35, %v911_v61  ;;  %v924_v60 = vsub.f32 %v6695_v26, %v9413_v0  ;;  %v931_v23 = vsub.f32 %v6721_v29, %v9414_v52  ;;  %v171_v35 = vld [vmem:[%s9328_s4 + $0x68] sm:$0xff] }
  0x5f   :  { %9574 = vst [vmem:[#allocation46_spill] sm:$0xff] %v6877_v44  ;;  %v1050_v2 = vsub.f32 %v6726_v40, %v9417_v18  ;;  %v9577_v50 = vand.u32 4294901760, %v6474_v9  ;;  %v5670_v61 = vpack.c.bf16 %v1044_v15, %v1037_v27  ;;  %v9580_v52 = vand.u32 4294901760, %v6761_v43  ;;  %5091 = vmatmul.mubr.f32.gmra.mrb[12].mxu1 %v582_v51  ;;  %5379 = vmatmul.mubr.f32.gmra.mrb[12].mxu0 %v6773_v53 }
  0x60   :  { %v5764_v34 = vpack.c.bf16 %v9576_v13, %v9575_v63  ;;  %v9578_v63 = vand.u32 4294901760, %v6665_v21  ;;  %v9579_v13 = vand.u32 4294901760, %v6690_v25  ;;  %v9581_v18 = vand.u32 4294901760, %v6477_v4  ;;  %5092 = vmatprep.mubr.f32.mxu1 %v593_v47  ;;  %5380 = vmatprep.mubr.f32.mxu0 %v6795_v37 }
  0x61   :  { %v6895_v3 = vsub.f32 %v6474_v9, %v9577_v50  ;;  %v1057_v55 = vsub.f32 %v6761_v43, %v9580_v52  ;;  %v614_v9 = vsub.f32 %v6844_v62, %v6867_v39  ;;  %v6916_v27 = vand.u32 4294901760, %v6870_v33  ;;  %5669 = vmatpush3.bf16.xpose.msra.mxu1 %v5668_v59 }
  0x62   :  { %v5766_v0 = vpack.c.bf16 %v9579_v13, %v9578_v63  ;;  %v6910_v41 = vsub.f32 %v6477_v4, %v9581_v18  ;;  %v6919_v15 = vsub.f32 %v257_v5, %v6872_v42  ;;  %v604_v52 = vand.u32 4294901760, %v603_v31  ;;  %5765 = vmatpush3.bf16.xpose.msra.mxu0 %v5764_v34  ;;  %v172_v5 = vld [vmem:[%s9328_s4 + $0x70] sm:$0xff]  ;;  %5671 = vmatprep.subr.bf16.mxu1 %v5670_v61 }
  0x63   :  { %v6923_v50 = vsub.f32 %v260_v22, %v6877_v44  ;;  %v263_v51 = vsel %vm222_vm0, %v171_v35, 0  ;;  %v925_v18 = vand.u32 4294901760, %v924_v60  ;;  %v932_v63 = vand.u32 4294901760, %v931_v23  ;;  %5093 = vmatmul.mubr.f32.gmra.mrb[14].mxu1 %v593_v47  ;;  %5381 = vmatmul.mubr.f32.gmra.mrb[14].mxu0 %v6795_v37 }
  0x64   :  { %9582 = vst [vmem:[#allocation47_spill] sm:$0xff] %v6919_v15  ;;  %v1051_v13 = vand.u32 4294901760, %v1050_v2  ;;  %5767 = vmatprep.subr.bf16.mxu0 %v5766_v0  ;;  %v1058_v31 = vand.u32 4294901760, %v1057_v55  ;;  %v9584_v53 = vand.u32 4294901760, %v6480_v10  ;;  %v615_v59 = vand.u32 4294901760, %v614_v9  ;;  %v2791_v0 = vld [vmem:[%s9329_s2 + $0x10] sm:$0xff]  ;;  %5094 = vmatprep.mubr.f32.mxu1 %v604_v52 }
  0x65   :  { %9583 = vst [vmem:[#allocation48_spill] sm:$0xff] %v6923_v50  ;;  %v625_v60 = vsub.f32 %v6870_v33, %v6916_v27  ;;  %v6942_v23 = vand.u32 4294901760, %v6919_v15  ;;  %v2789_v55 = vld [vmem:[%s9329_s2] sm:$0xff]  ;;  %5382 = vmatprep.mubr.f32.mxu0 %v6841_v56  ;;  %v266_v37 = vsel %vm222_vm0, %v172_v5, 0  ;;  %v9585_v47 = vand.u32 4294901760, %v6780_v8 }
  0x66   :  { %v6936_v34 = vsub.f32 %v6480_v10, %v9584_v53  ;;  %v6951_v10 = vand.u32 4294901760, %v263_v51  ;;  %v9586_v35 = vand.u32 4294901760, %v6791_v54  ;;  %v6961_v9 = vand.u32 4294901760, %v6923_v50  ;;  %v173_v53 = vld [vmem:[%s9328_s4 + $0x78] sm:$0xff] }
  0x67   :  { %v938_v2 = vsub.f32 %v6780_v8, %v9585_v47  ;;  %v5672_v4 = vpack.c.bf16 %v932_v63, %v925_v18  ;;  %v9587_v22 = vand.u32 4294901760, %v6695_v26  ;;  %v9588_v5 = vand.u32 4294901760, %v6721_v29  ;;  %5095 = vmatmul.mubr.f32.gmra.mrb[16].mxu1 %v604_v52  ;;  %5383 = vmatmul.mubr.f32.gmra.mrb[16].mxu0 %v6841_v56 }
  0x68   :  { %v945_v61 = vsub.f32 %v6791_v54, %v9586_v35  ;;  %v9589_v62 = vand.u32 4294901760, %v6726_v40  ;;  %v9590_v47 = vand.u32 4294901760, %v6761_v43  ;;  %v6106_v42 = vmov 0   ;;  %5096 = vmatprep.mubr.f32.mxu1 %v615_v59  ;;  %5384 = vmatprep.mubr.f32.mxu0 %v6867_v39 }
  0x69   :  { %v5768_v33 = vpack.c.bf16 %v9588_v5, %v9587_v22  ;;  %6105 = vset.pattern.permute.xlu1 %v6106_v42  ;;  %6104 = vset.pattern.permute.xlu0 %v6106_v42  ;;  %v5674_v35 = vpack.c.bf16 %v1058_v31, %v1051_v13  ;;  %v9591_v25 = vand.u32 4294901760, %v6812_v17  ;;  %v9592_v18 = vand.u32 4294901760, %v6857_v45 }
  0x6a   :  { %v5770_v44 = vpack.c.bf16 %v9590_v47, %v9589_v62  ;;  %2834 = vperm.xlu1 %6105, %v2791_v0   ;;  %2824 = vperm.xlu0 %6104, %v2789_v55   ;;  %v9593_v22 = vand.u32 4294901760, %v6528_v6  ;;  %v626_v62 = vand.u32 4294901760, %v625_v60  ;;  %v636_v42 = vsub.f32 %v6919_v15, %v6942_v23 }
  0x6b   :  { %v1064_v21 = vsub.f32 %v6812_v17, %v9591_v25  ;;  %v1071_v63 = vsub.f32 %v6857_v45, %v9592_v18  ;;  %v6988_v13 = vand.u32 4294901760, %v266_v37  ;;  %v6992_v25 = vsub.f32 %v263_v51, %v6951_v10  ;;  %5673 = vmatpush3.bf16.xpose.msra.mxu1 %v5672_v4  ;;  %5769 = vmatpush3.bf16.xpose.msra.mxu0 %v5768_v33  ;;  %v2790_v33 = vld [vmem:[%s9329_s2 + $0x8] sm:$0xff] }
  0x6c   :  { %v6983_v5 = vsub.f32 %v6528_v6, %v9593_v22  ;;  %v269_v31 = vsel %vm222_vm0, %v173_v53, 0  ;;  %v174_v6 = vld [vmem:[%s9328_s4 + $0x80] sm:$0xff]  ;;  %v939_v52 = vand.u32 4294901760, %v938_v2  ;;  %v946_v56 = vand.u32 4294901760, %v945_v61  ;;  %5675 = vmatprep.subr.bf16.mxu1 %v5674_v35  ;;  %5771 = vmatprep.subr.bf16.mxu0 %v5770_v44  ;;  %v2792_v2 = vld [vmem:[%s9329_s2 + $0x18] sm:$0xff] }
  0x6d   :  { %9594 = vst [vmem:[#allocation49_spill] sm:$0xff] %v6988_v13  ;;  %9595 = vst [vmem:[#allocation50_spill] sm:$0xff] %v6992_v25  ;;  %v9596_v60 = vand.u32 4294901760, %v6531_v12  ;;  %v647_v55 = vsub.f32 %v6923_v50, %v6961_v9  ;;  %v9432_v51 = vand.u32 4294901760, %v6863_v38  ;;  %v9433_v53 = vand.u32 4294901760, %v6895_v3  ;;  %5097 = vmatmul.mubr.f32.gmra.mrb[18].mxu1 %v615_v59  ;;  %5385 = vmatmul.mubr.f32.gmra.mrb[18].mxu0 %v6867_v39 }
  0x6e   :  { %v1065_v47 = vand.u32 4294901760, %v1064_v21  ;;  %v1072_v18 = vand.u32 4294901760, %v1071_v63  ;;  %v637_v4 = vand.u32 4294901760, %v636_v42  ;;  %v7017_v44 = vsub.f32 %v266_v37, %v6988_v13  ;;  %5098 = vmatprep.mubr.f32.mxu1 %v626_v62  ;;  %5386 = vmatprep.mubr.f32.mxu0 %v6916_v27 }
  0x6f   :  { %v7001_v0 = vsub.f32 %v6531_v12, %v9596_v60  ;;  %v7019_v21 = vand.u32 4294901760, %v269_v31  ;;  %v272_v35 = vsel %vm222_vm0, %v174_v6, 0  ;;  %v7024_v63 = vand.u32 4294901760, %v6992_v25  ;;  %v175_v6 = vld [vmem:[%s9328_s4 + $0x88] sm:$0xff]  ;;  %2839 = vperm.xlu1 %6105, %v2792_v2   ;;  %2829 = vperm.xlu0 %6104, %v2790_v33  }
  0x70   :  { %9597 = vst [vmem:[#allocation51_spill] sm:$0xff] %v7017_v44  ;;  %v5676_v22 = vpack.c.bf16 %v946_v56, %v939_v52  ;;  %v9599_v60 = vand.u32 4294901760, %v6780_v8  ;;  %v9600_v59 = vand.u32 4294901760, %v6791_v54  ;;  %v9601_v42 = vand.u32 4294901760, %v6812_v17  ;;  %v2794_v56 = vld [vmem:[%s9329_s2 + $0x28] sm:$0xff] }
  0x71   :  { %9598 = vst [vmem:[#allocation52_spill] sm:$0xff] %v7019_v21  ;;  %v9602_v37 = vand.u32 4294901760, %v6857_v45  ;;  %v952_v12 = vsub.f32 %v6863_v38, %v9432_v51  ;;  %v959_v52 = vsub.f32 %v6895_v3, %v9433_v53  ;;  %5099 = vmatmul.mubr.f32.gmra.mrb[20].mxu1 %v626_v62  ;;  %5387 = vmatmul.mubr.f32.gmra.mrb[20].mxu0 %v6916_v27  ;;  %v7057_v33 = vand.u32 4294901760, %v272_v35 }
  0x72   :  { %v5772_v39 = vpack.c.bf16 %v9600_v59, %v9599_v60  ;;  %v5678_v60 = vpack.c.bf16 %v1072_v18, %v1065_v47  ;;  %v9603_v59 = vand.u32 4294901760, %v6910_v41  ;;  %v7055_v2 = vsub.f32 %v269_v31, %v7019_v21  ;;  %5100 = vmatprep.mubr.f32.mxu1 %v637_v4  ;;  %5388 = vmatprep.mubr.f32.mxu0 %v6942_v23 }
  0x73   :  { %v5774_v61 = vpack.c.bf16 %v9602_v37, %v9601_v42  ;;  %v9604_v37 = vand.u32 4294901760, %v6936_v34  ;;  %9605 = vst [vmem:[#allocation53_spill] sm:$0xff] %v7057_v33  ;;  %v648_v47 = vand.u32 4294901760, %v647_v55  ;;  %v658_v18 = vsub.f32 %v6992_v25, %v7024_v63  ;;  %5677 = vmatpush3.bf16.xpose.msra.mxu1 %v5676_v22  ;;  %v176_v55 = vld [vmem:[%s9328_s4 + $0x90] sm:$0xff]  ;;  %2849 = vperm.xlu1 %6105, %v2794_v56  }
  0x74   :  { %v1078_v42 = vsub.f32 %v6910_v41, %v9603_v59  ;;  %v7063_v59 = vand.u32 4294901760, %v7017_v44  ;;  %5773 = vmatpush3.bf16.xpose.msra.mxu0 %v5772_v39  ;;  %v953_v27 = vand.u32 4294901760, %v952_v12  ;;  %v960_v62 = vand.u32 4294901760, %v959_v52  ;;  %5679 = vmatprep.subr.bf16.mxu1 %v5678_v60  ;;  %v2793_v12 = vld [vmem:[%s9329_s2 + $0x20] sm:$0xff] }
  0x75   :  { %v1085_v50 = vsub.f32 %v6936_v34, %v9604_v37  ;;  %v275_v37 = vsel %vm222_vm0, %v175_v6, 0  ;;  %v965_v31 = vand.u32 4294901760, %v6983_v5  ;;  %v972_v51 = vand.u32 4294901760, %v7001_v0  ;;  %5775 = vmatprep.subr.bf16.mxu0 %v5774_v61  ;;  %5101 = vmatmul.mubr.f32.gmra.mrb[22].mxu1 %v637_v4 }
  0x76   :  { %v1079_v53 = vand.u32 4294901760, %v1078_v42  ;;  %5389 = vmatmul.mubr.f32.gmra.mrb[22].mxu0 %v6942_v23  ;;  %v7079_v22 = vand.u32 4294901760, %v7055_v2  ;;  %v7082_v39 = vsub.f32 %v272_v35, %v7057_v33  ;;  %5102 = vmatprep.mubr.f32.mxu1 %v648_v47  ;;  %v659_v61 = vand.u32 4294901760, %v658_v18  ;;  %v177_v35 = vld [vmem:[%s9328_s4 + $0x98] sm:$0xff] }
  0x77   :  { %v1086_v6 = vand.u32 4294901760, %v1085_v50  ;;  %5390 = vmatprep.mubr.f32.mxu0 %v6961_v9  ;;  %v669_v50 = vsub.f32 %v7017_v44, %v7063_v59  ;;  %v7087_v52 = vand.u32 4294901760, %v275_v37  ;;  %v9606_v60 = vand.u32 4294901760, %v6863_v38  ;;  %2844 = vperm.xlu0 %6104, %v2793_v12  }
  0x78   :  { %v9607_v4 = vand.u32 4294901760, %v6895_v3  ;;  %v278_v42 = vsel %vm222_vm0, %v176_v55, 0  ;;  %v5680_v25 = vpack.c.bf16 %v960_v62, %v953_v27  ;;  %v966_v18 = vsub.f32 %v6983_v5, %v965_v31 }
  0x79   :  { %v973_v15 = vsub.f32 %v7001_v0, %v972_v51  ;;  %v5682_v44 = vpack.c.bf16 %v1086_v6, %v1079_v53  ;;  %v9608_v33 = vand.u32 4294901760, %v6910_v41  ;;  %v9609_v21 = vand.u32 4294901760, %v6936_v34  ;;  %5103 = vmatmul.mubr.f32.gmra.mrb[24].mxu1 %v648_v47  ;;  %v178_v47 = vld [vmem:[%s9328_s4 + $0xa0] sm:$0xff] }
  0x7a   :  { %v5776_v23 = vpack.c.bf16 %v9607_v4, %v9606_v60  ;;  %5391 = vmatmul.mubr.f32.gmra.mrb[24].mxu0 %v6961_v9  ;;  %v680_v55 = vsub.f32 %v7055_v2, %v7079_v22  ;;  %v7107_v27 = vand.u32 4294901760, %v7082_v39  ;;  %5104 = vmatprep.mubr.f32.mxu1 %v659_v61  ;;  %v670_v62 = vand.u32 4294901760, %v669_v50  ;;  %v2796_v50 = vld [vmem:[%s9329_s2 + $0x38] sm:$0xff] }
  0x7b   :  { %v5778_v13 = vpack.c.bf16 %v9609_v21, %v9608_v33  ;;  %5392 = vmatprep.mubr.f32.mxu0 %v7024_v63  ;;  %v7115_v21 = vsub.f32 %v275_v37, %v7087_v52  ;;  %v7117_v9 = vand.u32 4294901760, %v278_v42  ;;  %v281_v33 = vsel %vm222_vm0, %v177_v35, 0  ;;  %5681 = vmatpush3.bf16.xpose.msra.mxu1 %v5680_v25  ;;  %v2795_v37 = vld [vmem:[%s9329_s2 + $0x30] sm:$0xff] }
  0x7c   :  { %5777 = vmatpush3.bf16.xpose.msra.mxu0 %v5776_v23  ;;  %v967_v6 = vand.u32 4294901760, %v966_v18  ;;  %v974_v12 = vand.u32 4294901760, %v973_v15  ;;  %5683 = vmatprep.subr.bf16.mxu1 %v5682_v44  ;;  %v691_v60 = vsub.f32 %v7082_v39, %v7107_v27  ;;  %v7132_v25 = vand.u32 4294901760, %v281_v33 }
  0x7d   :  { %9610 = vst [vmem:[#allocation54_spill] sm:$0xff] %v7115_v21  ;;  %5779 = vmatprep.subr.bf16.mxu0 %v5778_v13  ;;  %5105 = vmatmul.mubr.f32.gmra.mrb[26].mxu1 %v659_v61  ;;  %v681_v15 = vand.u32 4294901760, %v680_v55  ;;  %v701_v13 = vand.u32 4294901760, %v7115_v21  ;;  %v7137_v44 = vsub.f32 %v278_v42, %v7117_v9  ;;  %v284_v4 = vsel %vm222_vm0, %v178_v47, 0  ;;  %v2798_v42 = vld [vmem:[%s9329_s2 + $0x48] sm:$0xff]  ;;  %v180_v47 = vld [vmem:[%s9328_s4 + $0xb0] sm:$0xff] }
  0x7e   :  { %5393 = vmatmul.mubr.f32.gmra.mrb[26].mxu0 %v7024_v63  ;;  %5106 = vmatprep.mubr.f32.mxu1 %v670_v62  ;;  %v5684_v23 = vpack.c.bf16 %v974_v12, %v967_v6  ;;  %v5780_v61 = vpack.c.bf16 %v972_v51, %v965_v31  ;;  %v179_v63 = vld [vmem:[%s9328_s4 + $0xa8] sm:$0xff]  ;;  %v7145_v35 = vsub.f32 %v281_v33, %v7132_v25  ;;  %v7147_v18 = vand.u32 4294901760, %v284_v4  ;;  %v2797_v51 = vld [vmem:[%s9329_s2 + $0x40] sm:$0xff] }
  0x7f   :  { %5394 = vmatprep.mubr.f32.mxu0 %v7063_v59  ;;  %9611 = vst [vmem:[#allocation55_spill] sm:$0xff] %v7137_v44  ;;  %2859 = vperm.xlu1 %6105, %v2796_v50   ;;  %v692_v31 = vand.u32 4294901760, %v691_v60  ;;  %v702_v55 = vsub.f32 %v7115_v21, %v701_v13  ;;  %v5686_v33 = vpack.c.bf16 %v6456_v46, %v6451_v57  ;;  %v2800_v50 = vld [vmem:[%s9329_s2 + $0x58] sm:$0xff]  ;;  %v2799_v46 = vld [vmem:[%s9329_s2 + $0x50] sm:$0xff]  ;;  %v290_v60 = vsel %vm222_vm0, %v180_v47, 0 }
  0x80   :  { %2854 = vperm.xlu0 %6104, %v2795_v37   ;;  %9612 = vst [vmem:[#allocation56_spill] sm:$0xff] %v7145_v35  ;;  %v723_v6 = vand.u32 4294901760, %v7145_v35  ;;  %v7167_v12 = vsub.f32 %v284_v4, %v7147_v18  ;;  %v2803_v47 = vld [vmem:[%s9329_s2 + $0x70] sm:$0xff]  ;;  %v2820_v21 = vld [vmem:[%s9329_s2 + $0xf8] sm:$0xff] }
  0x81   :  { %5107 = vmatmul.mubr.f32.gmra.mrb[28].mxu1 %v670_v62  ;;  %v287_v62 = vsel %vm222_vm0, %v179_v63, 0  ;;  %v703_v57 = vand.u32 4294901760, %v702_v55  ;;  %v2801_v63 = vld [vmem:[%s9329_s2 + $0x60] sm:$0xff] }
  0x82   :  { %5395 = vmatmul.mubr.f32.gmra.mrb[28].mxu0 %v7063_v59  ;;  %5108 = vmatprep.mubr.f32.mxu1 %v681_v15  ;;  %v712_v59 = vand.u32 4294901760, %v7137_v44  ;;  %9613 = vst [vmem:[#allocation57_spill] sm:$0xff] %v7167_v12  ;;  %v724_v4 = vsub.f32 %v7145_v35, %v723_v6 }
  0x83   :  { %5396 = vmatprep.mubr.f32.mxu0 %v7079_v22  ;;  %5685 = vmatpush3.bf16.xpose.msra.mxu1 %v5684_v23  ;;  %v734_v23 = vand.u32 4294901760, %v7167_v12 }
  0x84   :  { %5781 = vmatpush3.bf16.xpose.msra.mxu0 %v5780_v61  ;;  %2869 = vperm.xlu1 %6105, %v2798_v42   ;;  %v713_v37 = vsub.f32 %v7137_v44, %v712_v59  ;;  %v2802_v61 = vld [vmem:[%s9329_s2 + $0x68] sm:$0xff] }
  0x85   :  { %2864 = vperm.xlu0 %6104, %v2797_v51   ;;  %5109 = vmatmul.mubr.f32.gmra.mrb[30].mxu1 %v681_v15  ;;  %v181_v15 = vld [vmem:[%s9328_s4 + $0xb8] sm:$0xff]  ;;  %v7196_v51 = vand.u32 4294901760, %v290_v60  ;;  %v735_v55 = vsub.f32 %v7167_v12, %v734_v23 }
  0x86   :  { %5397 = vmatmul.mubr.f32.gmra.mrb[30].mxu0 %v7079_v22  ;;  %5110 = vmatprep.mubr.f32.mxu1 %v692_v31  ;;  %v7177_v22 = vand.u32 4294901760, %v287_v62 }
  0x87   :  { %5398 = vmatprep.mubr.f32.mxu0 %v7107_v27  ;;  %5687 = vmatprep.subr.bf16.mxu1 %v5686_v33 }
  0x88   :  { %5783 = vmatprep.subr.bf16.mxu0 %v6204_v20  ;;  %2879 = vperm.xlu1 %6105, %v2800_v50   ;;  %v714_v20 = vand.u32 4294901760, %v713_v37  ;;  %v7194_v42 = vsub.f32 %v287_v62, %v7177_v22  ;;  %v2804_v62 = vld [vmem:[%s9329_s2 + $0x78] sm:$0xff]  ;;  %v725_v50 = vand.u32 4294901760, %v724_v4  ;;  %v183_v37 = vld [vmem:[%s9328_s4 + $0xc8] sm:$0xff]  ;;  %v2805_v4 = vld [vmem:[%s9329_s2 + $0x80] sm:$0xff] }
  0x89   :  { %2874 = vperm.xlu0 %6104, %v2799_v46   ;;  %5111 = vmatmul.mubr.f32.gmra.mrb[32].mxu1 %v692_v31  ;;  %v182_v31 = vld [vmem:[%s9328_s4 + $0xc0] sm:$0xff] }
  0x8a   :  { %5399 = vmatmul.mubr.f32.gmra.mrb[32].mxu0 %v7107_v27  ;;  %5112 = vmatprep.mubr.f32.mxu1 %v703_v57  ;;  %9614 = vst [vmem:[#allocation58_spill] sm:$0xff] %v7194_v42  ;;  %v293_v27 = vsel %vm222_vm0, %v181_v15, 0  ;;  %v745_v46 = vand.u32 4294901760, %v7194_v42 }
  0x8b   :  { %5400 = vmatprep.mubr.f32.mxu0 %v701_v13  ;;  %v7203_v33 = vand.u32 4294901760, %v293_v27 }
  0x8c   :  { %2889 = vperm.xlu1 %6105, %v2802_v61  }
  0x8d   :  { %2884 = vperm.xlu0 %6104, %v2801_v63   ;;  %5113 = vmatmul.mubr.f32.gmra.mrb[34].mxu1 %v703_v57  ;;  %v7213_v57 = vsub.f32 %v290_v60, %v7196_v51  ;;  %v7220_v15 = vsub.f32 %v293_v27, %v7203_v33  ;;  %v2806_v60 = vld [vmem:[%s9329_s2 + $0x88] sm:$0xff]  ;;  %v736_v63 = vand.u32 4294901760, %v735_v55  ;;  %v184_v27 = vld [vmem:[%s9328_s4 + $0xd0] sm:$0xff]  ;;  %v2808_v55 = vld [vmem:[%s9329_s2 + $0x98] sm:$0xff] }
  0x8e   :  { %5401 = vmatmul.mubr.f32.gmra.mrb[34].mxu0 %v701_v13  ;;  %5114 = vmatprep.mubr.f32.mxu1 %v714_v20  ;;  %v296_v13 = vsel %vm222_vm0, %v182_v31, 0  ;;  %v746_v31 = vsub.f32 %v7194_v42, %v745_v46 }
  0x8f   :  { %5402 = vmatprep.mubr.f32.mxu0 %v712_v59  ;;  %9615 = vst [vmem:[#allocation59_spill] sm:$0xff] %v7213_v57  ;;  %9616 = vst [vmem:[#allocation60_spill] sm:$0xff] %v7220_v15  ;;  %v7222_v61 = vand.u32 4294901760, %v296_v13 }
  0x90   :  { %2899 = vperm.xlu1 %6105, %v2804_v62   ;;  %v767_v62 = vand.u32 4294901760, %v7220_v15  ;;  %v747_v53 = vand.u32 4294901760, %v746_v31  ;;  %v2810_v31 = vld [vmem:[%s9329_s2 + $0xa8] sm:$0xff] }
  0x91   :  { %2894 = vperm.xlu0 %6104, %v2803_v47   ;;  %5115 = vmatmul.mubr.f32.gmra.mrb[36].mxu1 %v714_v20  ;;  %v299_v20 = vsel %vm222_vm0, %v183_v37, 0  ;;  %v7238_v47 = vsub.f32 %v296_v13, %v7222_v61  ;;  %v2807_v37 = vld [vmem:[%s9329_s2 + $0x90] sm:$0xff]  ;;  %v185_v13 = vld [vmem:[%s9328_s4 + $0xd8] sm:$0xff] }
  0x92   :  { %5403 = vmatmul.mubr.f32.gmra.mrb[36].mxu0 %v712_v59  ;;  %5116 = vmatprep.mubr.f32.mxu1 %v725_v50  ;;  %v756_v59 = vand.u32 4294901760, %v7213_v57 }
  0x93   :  { %5404 = vmatprep.mubr.f32.mxu0 %v723_v6  ;;  %9617 = vst [vmem:[#allocation61_spill] sm:$0xff] %v7238_v47  ;;  %v778_v56 = vand.u32 4294901760, %v7238_v47 }
  0x94   :  { %2909 = vperm.xlu1 %6105, %v2806_v60   ;;  %v757_v60 = vsub.f32 %v7213_v57, %v756_v59 }
  0x95   :  { %2904 = vperm.xlu0 %6104, %v2805_v4   ;;  %5117 = vmatmul.mubr.f32.gmra.mrb[38].mxu1 %v725_v50  ;;  %v7247_v50 = vand.u32 4294901760, %v299_v20  ;;  %v768_v4 = vsub.f32 %v7220_v15, %v767_v62  ;;  %v779_v42 = vsub.f32 %v7238_v47, %v778_v56  ;;  %v2814_v47 = vld [vmem:[%s9329_s2 + $0xc8] sm:$0xff] }
  0x96   :  { %5405 = vmatmul.mubr.f32.gmra.mrb[38].mxu0 %v723_v6  ;;  %5118 = vmatprep.mubr.f32.mxu1 %v736_v63  ;;  %v302_v6 = vsel %vm222_vm0, %v184_v27, 0  ;;  %v2809_v27 = vld [vmem:[%s9329_s2 + $0xa0] sm:$0xff]  ;;  %v758_v57 = vand.u32 4294901760, %v757_v60  ;;  %v2811_v60 = vld [vmem:[%s9329_s2 + $0xb0] sm:$0xff] }
  0x97   :  { %5406 = vmatprep.mubr.f32.mxu0 %v734_v23  ;;  %v769_v15 = vand.u32 4294901760, %v768_v4  ;;  %v187_v4 = vld [vmem:[%s9328_s4 + $0xe8] sm:$0xff] }
  0x98   :  { %2919 = vperm.xlu1 %6105, %v2808_v55   ;;  %v7262_v55 = vsub.f32 %v299_v20, %v7247_v50  ;;  %v2812_v20 = vld [vmem:[%s9329_s2 + $0xb8] sm:$0xff] }
  0x99   :  { %2914 = vperm.xlu0 %6104, %v2807_v37   ;;  %5119 = vmatmul.mubr.f32.gmra.mrb[40].mxu1 %v736_v63  ;;  %v7264_v63 = vand.u32 4294901760, %v302_v6  ;;  %v186_v37 = vld [vmem:[%s9328_s4 + $0xe0] sm:$0xff] }
  0x9a   :  { %5407 = vmatmul.mubr.f32.gmra.mrb[40].mxu0 %v734_v23  ;;  %5120 = vmatprep.mubr.f32.mxu1 %v747_v53  ;;  %9618 = vst [vmem:[#allocation62_spill] sm:$0xff] %v7262_v55  ;;  %v305_v23 = vsel %vm222_vm0, %v185_v13, 0  ;;  %v789_v13 = vand.u32 4294901760, %v7262_v55 }
  0x9b   :  { %5408 = vmatprep.mubr.f32.mxu0 %v745_v46 }
  0x9c   :  { %2929 = vperm.xlu1 %6105, %v2810_v31   ;;  %v7279_v31 = vsub.f32 %v302_v6, %v7264_v63  ;;  %v2813_v6 = vld [vmem:[%s9329_s2 + $0xc0] sm:$0xff]  ;;  %v790_v12 = vsub.f32 %v7262_v55, %v789_v13 }
  0x9d   :  { %2924 = vperm.xlu0 %6104, %v2809_v27   ;;  %5121 = vmatmul.mubr.f32.gmra.mrb[42].mxu1 %v747_v53  ;;  %v7281_v53 = vand.u32 4294901760, %v305_v23 }
  0x9e   :  { %5409 = vmatmul.mubr.f32.gmra.mrb[42].mxu0 %v745_v46  ;;  %5122 = vmatprep.mubr.f32.mxu1 %v758_v57  ;;  %9619 = vst [vmem:[#allocation63_spill] sm:$0xff] %v7279_v31  ;;  %v308_v46 = vsel %vm222_vm0, %v186_v37, 0  ;;  %v780_v37 = vand.u32 4294901760, %v779_v42  ;;  %v2816_v42 = vld [vmem:[%s9329_s2 + $0xd8] sm:$0xff] }
  0x9f   :  { %5410 = vmatprep.mubr.f32.mxu0 %v756_v59  ;;  %v7287_v27 = vand.u32 4294901760, %v308_v46 }
  0xa0   :  { %2939 = vperm.xlu1 %6105, %v2812_v20   ;;  %v800_v20 = vand.u32 4294901760, %v7279_v31 }
  0xa1   :  { %2934 = vperm.xlu0 %6104, %v2811_v60   ;;  %5123 = vmatmul.mubr.f32.gmra.mrb[44].mxu1 %v758_v57  ;;  %v7298_v57 = vsub.f32 %v305_v23, %v7281_v53  ;;  %v188_v60 = vld [vmem:[%s9328_s4 + $0xf0] sm:$0xff]  ;;  %v7305_v35 = vsub.f32 %v308_v46, %v7287_v27  ;;  %v189_v46 = vld [vmem:[%s9328_s4 + $0xf8] sm:$0xff] }
  0xa2   :  { %5411 = vmatmul.mubr.f32.gmra.mrb[44].mxu0 %v756_v59  ;;  %5124 = vmatprep.mubr.f32.mxu1 %v769_v15  ;;  %v311_v59 = vsel %vm222_vm0, %v187_v4, 0  ;;  %v2815_v23 = vld [vmem:[%s9329_s2 + $0xd0] sm:$0xff]  ;;  %v791_v4 = vand.u32 4294901760, %v790_v12  ;;  %v801_v55 = vsub.f32 %v7279_v31, %v800_v20  ;;  %v2818_v12 = vld [vmem:[%s9329_s2 + $0xe8] sm:$0xff]  ;;  %v2817_v31 = vld [vmem:[%s9329_s2 + $0xe0] sm:$0xff] }
  0xa3   :  { %5412 = vmatprep.mubr.f32.mxu0 %v767_v62  ;;  %9620 = vst [vmem:[#allocation64_spill] sm:$0xff] %v7298_v57 }
  0xa4   :  { %2949 = vperm.xlu1 %6105, %v2814_v47   ;;  %v811_v47 = vand.u32 4294901760, %v7298_v57 }
  0xa5   :  { %2944 = vperm.xlu0 %6104, %v2813_v6   ;;  %5125 = vmatmul.mubr.f32.gmra.mrb[46].mxu1 %v769_v15  ;;  %v7315_v15 = vand.u32 4294901760, %v311_v59  ;;  %v822_v6 = vand.u32 4294901760, %v7305_v35 }
  0xa6   :  { %5413 = vmatmul.mubr.f32.gmra.mrb[46].mxu0 %v767_v62  ;;  %5126 = vmatprep.mubr.f32.mxu1 %v780_v37  ;;  %v314_v62 = vsel %vm222_vm0, %v188_v60, 0  ;;  %v802_v60 = vand.u32 4294901760, %v801_v55  ;;  %v812_v44 = vsub.f32 %v7298_v57, %v811_v47  ;;  %v2819_v55 = vld [vmem:[%s9329_s2 + $0xf0] sm:$0xff] }
  0xa7   :  { %5414 = vmatprep.mubr.f32.mxu0 %v778_v56 }
  0xa8   :  { %2959 = vperm.xlu1 %6105, %v2816_v42   ;;  %v7330_v42 = vsub.f32 %v311_v59, %v7315_v15  ;;  %v813_v59 = vand.u32 4294901760, %v812_v44 }
  0xa9   :  { %2954 = vperm.xlu0 %6104, %v2815_v23   ;;  %5127 = vmatmul.mubr.f32.gmra.mrb[48].mxu1 %v780_v37  ;;  %v7332_v37 = vand.u32 4294901760, %v314_v62  ;;  %v823_v23 = vsub.f32 %v7305_v35, %v822_v6 }
  0xaa   :  { %5415 = vmatmul.mubr.f32.gmra.mrb[48].mxu0 %v778_v56  ;;  %5128 = vmatprep.mubr.f32.mxu1 %v791_v4  ;;  %v317_v56 = vsel %vm222_vm0, %v189_v46, 0  ;;  %v833_v57 = vand.u32 4294901760, %v7330_v42 }
  0xab   :  { %5416 = vmatprep.mubr.f32.mxu0 %v789_v13  ;;  %v7344_v46 = vsub.f32 %v314_v62, %v7332_v37  ;;  %v824_v44 = vand.u32 4294901760, %v823_v23 }
  0xac   :  { %2969 = vperm.xlu1 %6105, %v2818_v12   ;;  %v834_v62 = vsub.f32 %v7330_v42, %v833_v57 }
  0xad   :  { %2964 = vperm.xlu0 %6104, %v2817_v31   ;;  %5129 = vmatmul.mubr.f32.gmra.mrb[50].mxu1 %v791_v4  ;;  %v7346_v31 = vand.u32 4294901760, %v317_v56  ;;  %v3389_v4 = vld [vmem:[%s9330_s0] sm:$0xff]  ;;  %v844_v12 = vand.u32 4294901760, %v7344_v46 }
  0xae   :  { %5417 = vmatmul.mubr.f32.gmra.mrb[50].mxu0 %v789_v13  ;;  %5130 = vmatprep.mubr.f32.mxu1 %v802_v60  ;;  %v3390_v13 = vld [vmem:[%s9330_s0 + $0x8] sm:$0xff]  ;;  %v835_v23 = vand.u32 4294901760, %v834_v62 }
  0xaf   :  { %5418 = vmatprep.mubr.f32.mxu0 %v800_v20 }
  0xb0   :  { %2979 = vperm.xlu1 %6105, %v2820_v21   ;;  %v7357_v21 = vsub.f32 %v317_v56, %v7346_v31 }
  0xb1   :  { %2974 = vperm.xlu0 %6104, %v2819_v55   ;;  %5131 = vmatmul.mubr.f32.gmra.mrb[52].mxu1 %v802_v60  ;;  %v3391_v60 = vld [vmem:[%s9330_s0 + $0x10] sm:$0xff]  ;;  %v845_v55 = vsub.f32 %v7344_v46, %v844_v12 }
  0xb2   :  { %5419 = vmatmul.mubr.f32.gmra.mrb[52].mxu0 %v800_v20  ;;  %5132 = vmatprep.mubr.f32.mxu1 %v813_v59  ;;  %v3392_v20 = vld [vmem:[%s9330_s0 + $0x18] sm:$0xff]  ;;  %v855_v56 = vand.u32 4294901760, %v7357_v21 }
  0xb3   :  { %5420 = vmatprep.mubr.f32.mxu0 %v811_v47 }
  0xb4   :  { %3426 = vperm.xlu1 %6105, %v3390_v13   ;;  %v846_v13 = vand.u32 4294901760, %v845_v55 }
  0xb5   :  { %3423 = vperm.xlu0 %6104, %v3389_v4   ;;  %5133 = vmatmul.mubr.f32.gmra.mrb[54].mxu1 %v813_v59  ;;  %v3393_v59 = vld [vmem:[%s9330_s0 + $0x20] sm:$0xff]  ;;  %v856_v4 = vsub.f32 %v7357_v21, %v855_v56 }
  0xb6   :  { %5421 = vmatmul.mubr.f32.gmra.mrb[54].mxu0 %v811_v47  ;;  %5134 = vmatprep.mubr.f32.mxu1 %v824_v44  ;;  %v3394_v47 = vld [vmem:[%s9330_s0 + $0x28] sm:$0xff] }
  0xb7   :  { %5422 = vmatprep.mubr.f32.mxu0 %v822_v6  ;;  %v857_v62 = vand.u32 4294901760, %v856_v4  ;;  %v9625_v4 = vld [vmem:[#allocation22_spill] sm:$0xff] }
  0xb8   :  { %3432 = vperm.xlu1 %6105, %v3392_v20   ;;  %v3398_v20 = vld [vmem:[%s9330_s0 + $0x48] sm:$0xff] }
  0xb9   :  { %3429 = vperm.xlu0 %6104, %v3391_v60   ;;  %5135 = vmatmul.mubr.f32.gmra.mrb[56].mxu1 %v824_v44  ;;  %v3395_v44 = vld [vmem:[%s9330_s0 + $0x30] sm:$0xff]  ;;  %v3400_v60 = vld [vmem:[%s9330_s0 + $0x58] sm:$0xff] }
  0xba   :  { %5423 = vmatmul.mubr.f32.gmra.mrb[56].mxu0 %v822_v6  ;;  %5136 = vmatprep.mubr.f32.mxu1 %v835_v23  ;;  %v3396_v6 = vld [vmem:[%s9330_s0 + $0x38] sm:$0xff] }
  0xbb   :  { %5424 = vmatprep.mubr.f32.mxu0 %v833_v57 }
  0xbc   :  { %3438 = vperm.xlu1 %6105, %v3394_v47   ;;  %v9622_v47 = vld [vmem:[#allocation23_spill] sm:$0xff] }
  0xbd   :  { %3435 = vperm.xlu0 %6104, %v3393_v59   ;;  %5137 = vmatmul.mubr.f32.gmra.mrb[58].mxu1 %v835_v23  ;;  %v9621_v23 = vld [vmem:[#allocation19_spill] sm:$0xff]  ;;  %v9623_v59 = vld [vmem:[#allocation24_spill] sm:$0xff] }
  0xbe   :  { %5425 = vmatmul.mubr.f32.gmra.mrb[58].mxu0 %v833_v57  ;;  %5138 = vmatprep.mubr.f32.mxu1 %v846_v13  ;;  %v3397_v57 = vld [vmem:[%s9330_s0 + $0x40] sm:$0xff]  ;;  %v5688_v55 = vpack.c.bf16 %v9621_v23, %v6508_v30  ;;  %v3402_v30 = vld [vmem:[%s9330_s0 + $0x68] sm:$0xff]  ;;  %v9631_v23 = vld [vmem:[#allocation9_spill] sm:$0xff] }
  0xbf   :  { %5426 = vmatprep.mubr.f32.mxu0 %v844_v12 }
  0xc0   :  { %3444 = vperm.xlu1 %6105, %v3396_v6   ;;  %v9626_v6 = vld [vmem:[#allocation7_spill] sm:$0xff] }
  0xc1   :  { %3441 = vperm.xlu0 %6104, %v3395_v44   ;;  %5139 = vmatmul.mubr.f32.gmra.mrb[60].mxu1 %v846_v13  ;;  %v5690_v13 = vpack.c.bf16 %v9623_v59, %v9622_v47  ;;  %v3401_v44 = vld [vmem:[%s9330_s0 + $0x60] sm:$0xff]  ;;  %v9635_v47 = vpack.c.bf16 %v6630_v36, %v6625_v16  ;;  %v9636_v59 = vld [vmem:[#allocation11_spill] sm:$0xff]  ;;  %v9639_v36 = vld [vmem:[#allocation36_spill] sm:$0xff] }
  0xc2   :  { %5427 = vmatmul.mubr.f32.gmra.mrb[60].mxu0 %v844_v12  ;;  %5140 = vmatprep.mubr.f32.mxu1 %v857_v62  ;;  %v3399_v12 = vld [vmem:[%s9330_s0 + $0x50] sm:$0xff] }
  0xc3   :  { %5428 = vmatprep.mubr.f32.mxu0 %v855_v56 }
  0xc4   :  { %3450 = vperm.xlu1 %6105, %v3398_v20   ;;  %v5692_v20 = vpack.c.bf16 %v6578_v11, %v6571_v24  ;;  %v3404_v24 = vld [vmem:[%s9330_s0 + $0x78] sm:$0xff]  ;;  %v3403_v11 = vld [vmem:[%s9330_s0 + $0x70] sm:$0xff] }
  0xc5   :  { %3447 = vperm.xlu0 %6104, %v3397_v57   ;;  %5141 = vmatmul.mubr.f32.gmra.mrb[62].mxu1 %v857_v62  ;;  %v9627_v62 = vld [vmem:[#allocation25_spill] sm:$0xff]  ;;  %v9628_v57 = vld [vmem:[#allocation28_spill] sm:$0xff] }
  0xc6   :  { %5429 = vmatmul.mubr.f32.gmra.mrb[62].mxu0 %v855_v56  ;;  %5174 = vmatprep.mubr.f32.mxu1 %v6370_v19  ;;  %v9624_v56 = vld [vmem:[#allocation6_spill] sm:$0xff] }
  0xc7   :  { %5462 = vmatprep.mubr.f32.mxu0 %v6370_v19 }
  0xc8   :  { %3456 = vperm.xlu1 %6105, %v3400_v60   ;;  %v9629_v60 = vld [vmem:[#allocation8_spill] sm:$0xff] }
  0xc9   :  { %3453 = vperm.xlu0 %6104, %v3399_v12   ;;  %5175 = vmatmul.mubr.f32.vlgmr.msra.gmra.mrb[0].mxu1 %v6370_v19  ;;  %v9630_v12 = vpack.c.bf16 %v6602_v32, %v6583_v14  ;;  %v9633_v14 = vpack.c.bf16 %v6615_v1, %v6610_v28  ;;  %v9634_v32 = vld [vmem:[#allocation10_spill] sm:$0xff]  ;;  %v9637_v28 = vld [vmem:[#allocation32_spill] sm:$0xff] }
  0xca   :  { %5463 = vmatmul.mubr.f32.vlgmr.msra.gmra.mrb[0].mxu0 %v6370_v19  ;;  %5689 = vmatpush3.bf16.xpose.msra.mxu1 %v5688_v55  ;;  %v9632_v55 = vld [vmem:[#allocation31_spill] sm:$0xff]  ;;  %v9638_v1 = vld [vmem:[#allocation34_spill] sm:$0xff] }
  0xcb   :  { %5785 = vmatpush3.bf16.xpose.msra.mxu0 %v9624_v56  ;;  %5176 = vmatprep.mubr.f32.mxu1 %v9625_v4  ;;  %v3405_v56 = vld [vmem:[%s9330_s0 + $0x80] sm:$0xff]  ;;  %v5702_v16 = vpack.c.bf16 %v9638_v1, %v9637_v28  ;;  %v5710_v1 = vpack.c.bf16 %v6857_v45, %v6812_v17  ;;  %v5712_v17 = vpack.c.bf16 %v6895_v3, %v6863_v38  ;;  %v9652_v3 = vld [vmem:[#allocation20_spill] sm:$0xff] }
  0xcc   :  { %5464 = vmatprep.mubr.f32.mxu0 %v9625_v4  ;;  %5691 = vmatprep.subr.bf16.mxu1 %v5690_v13  ;;  %v3406_v13 = vld [vmem:[%s9330_s0 + $0x88] sm:$0xff]  ;;  %v9651_v45 = vld [vmem:[#allocation18_spill] sm:$0xff]  ;;  %v5714_v38 = vpack.c.bf16 %v6936_v34, %v6910_v41  ;;  %v9656_v34 = vld [vmem:[#allocation21_spill] sm:$0xff] }
  0xcd   :  { %5787 = vmatprep.subr.bf16.mxu0 %v9626_v6  ;;  %5177 = vmatmul.mubr.f32.gmra.mrb[2].mxu1 %v9625_v4  ;;  %v9640_v6 = vpack.c.bf16 %v6660_v48, %v6640_v49  ;;  %v5704_v48 = vpack.c.bf16 %v6721_v29, %v6695_v26  ;;  %v5706_v49 = vpack.c.bf16 %v6761_v43, %v6726_v40  ;;  %v3409_v40 = vld [vmem:[%s9330_s0 + $0xa0] sm:$0xff]  ;;  %v3412_v29 = vld [vmem:[%s9330_s0 + $0xb8] sm:$0xff] }
  0xce   :  { %5465 = vmatmul.mubr.f32.gmra.mrb[2].mxu0 %v9625_v4  ;;  %5178 = vmatprep.mubr.f32.mxu1 %v9627_v62 }
  0xcf   :  { %5466 = vmatprep.mubr.f32.mxu0 %v9627_v62  ;;  %3462 = vperm.xlu1 %6105, %v3402_v30   ;;  %v9641_v30 = vld [vmem:[#allocation12_spill] sm:$0xff] }
  0xd0   :  { %3459 = vperm.xlu0 %6104, %v3401_v44   ;;  %v9642_v44 = vld [vmem:[#allocation13_spill] sm:$0xff] }
  0xd1   :  { %5179 = vmatmul.mubr.f32.gmra.mrb[4].mxu1 %v9627_v62 }
  0xd2   :  { %5467 = vmatmul.mubr.f32.gmra.mrb[4].mxu0 %v9627_v62  ;;  %5180 = vmatprep.mubr.f32.mxu1 %v9628_v57 }
  0xd3   :  { %5468 = vmatprep.mubr.f32.mxu0 %v9628_v57  ;;  %5693 = vmatpush3.bf16.xpose.msra.mxu1 %v5692_v20  ;;  %v3408_v20 = vld [vmem:[%s9330_s0 + $0x98] sm:$0xff] }
  0xd4   :  { %5789 = vmatpush3.bf16.xpose.msra.mxu0 %v9629_v60  ;;  %5695 = vmatprep.subr.bf16.mxu1 %v9630_v12  ;;  %v3407_v60 = vld [vmem:[%s9330_s0 + $0x90] sm:$0xff]  ;;  %v9643_v12 = vld [vmem:[#allocation39_spill] sm:$0xff] }
  0xd5   :  { %5791 = vmatprep.subr.bf16.mxu0 %v9631_v23  ;;  %5181 = vmatmul.mubr.f32.gmra.mrb[6].mxu1 %v9628_v57  ;;  %v3410_v23 = vld [vmem:[%s9330_s0 + $0xa8] sm:$0xff] }
  0xd6   :  { %5469 = vmatmul.mubr.f32.gmra.mrb[6].mxu0 %v9628_v57  ;;  %5182 = vmatprep.mubr.f32.mxu1 %v9632_v55 }
  0xd7   :  { %5470 = vmatprep.mubr.f32.mxu0 %v9632_v55  ;;  %3468 = vperm.xlu1 %6105, %v3404_v24   ;;  %v9644_v24 = vld [vmem:[#allocation41_spill] sm:$0xff] }
  0xd8   :  { %3465 = vperm.xlu0 %6104, %v3403_v11   ;;  %v9645_v11 = vld [vmem:[#allocation15_spill] sm:$0xff] }
  0xd9   :  { %5183 = vmatmul.mubr.f32.gmra.mrb[8].mxu1 %v9632_v55 }
  0xda   :  { %5471 = vmatmul.mubr.f32.gmra.mrb[8].mxu0 %v9632_v55  ;;  %5184 = vmatprep.mubr.f32.mxu1 %v6675_v58 }
  0xdb   :  { %5472 = vmatprep.mubr.f32.mxu0 %v6675_v58  ;;  %5697 = vmatpush3.bf16.xpose.msra.mxu1 %v9633_v14  ;;  %v9646_v14 = vld [vmem:[#allocation43_spill] sm:$0xff] }
  0xdc   :  { %5793 = vmatpush3.bf16.xpose.msra.mxu0 %v9634_v32  ;;  %5699 = vmatprep.subr.bf16.mxu1 %v9635_v47  ;;  %v9647_v32 = vld [vmem:[#allocation16_spill] sm:$0xff]  ;;  %v5708_v47 = vpack.c.bf16 %v6791_v54, %v6780_v8  ;;  %v9649_v54 = vld [vmem:[#allocation17_spill] sm:$0xff] }
  0xdd   :  { %5795 = vmatprep.subr.bf16.mxu0 %v9636_v59  ;;  %5185 = vmatmul.mubr.f32.gmra.mrb[10].mxu1 %v6675_v58  ;;  %v3414_v59 = vld [vmem:[%s9330_s0 + $0xc8] sm:$0xff] }
  0xde   :  { %5473 = vmatmul.mubr.f32.gmra.mrb[10].mxu0 %v6675_v58  ;;  %5186 = vmatprep.mubr.f32.mxu1 %v6707_v7 }
  0xdf   :  { %5474 = vmatprep.mubr.f32.mxu0 %v6707_v7  ;;  %3474 = vperm.xlu1 %6105, %v3406_v13   ;;  %v3411_v13 = vld [vmem:[%s9330_s0 + $0xb0] sm:$0xff] }
  0xe0   :  { %3471 = vperm.xlu0 %6104, %v3405_v56   ;;  %v9648_v56 = vld [vmem:[#allocation45_spill] sm:$0xff] }
  0xe1   :  { %5187 = vmatmul.mubr.f32.gmra.mrb[12].mxu1 %v6707_v7 }
  0xe2   :  { %5475 = vmatmul.mubr.f32.gmra.mrb[12].mxu0 %v6707_v7  ;;  %5188 = vmatprep.mubr.f32.mxu1 %v9639_v36 }
  0xe3   :  { %5476 = vmatprep.mubr.f32.mxu0 %v9639_v36  ;;  %5701 = vmatpush3.bf16.xpose.msra.mxu1 %v9640_v6  ;;  %v3413_v6 = vld [vmem:[%s9330_s0 + $0xc0] sm:$0xff] }
  0xe4   :  { %5797 = vmatpush3.bf16.xpose.msra.mxu0 %v9641_v30  ;;  %5703 = vmatprep.subr.bf16.mxu1 %v5702_v16  ;;  %v3416_v16 = vld [vmem:[%s9330_s0 + $0xd8] sm:$0xff]  ;;  %v9650_v30 = vld [vmem:[#allocation46_spill] sm:$0xff] }
  0xe5   :  { %5799 = vmatprep.subr.bf16.mxu0 %v9642_v44  ;;  %5189 = vmatmul.mubr.f32.gmra.mrb[14].mxu1 %v9639_v36 }
  0xe6   :  { %5477 = vmatmul.mubr.f32.gmra.mrb[14].mxu0 %v9639_v36  ;;  %5190 = vmatprep.mubr.f32.mxu1 %v9643_v12 }
  0xe7   :  { %5478 = vmatprep.mubr.f32.mxu0 %v9643_v12  ;;  %3480 = vperm.xlu1 %6105, %v3408_v20  }
  0xe8   :  { %3477 = vperm.xlu0 %6104, %v3407_v60   ;;  %v3418_v60 = vld [vmem:[%s9330_s0 + $0xe8] sm:$0xff] }
  0xe9   :  { %5191 = vmatmul.mubr.f32.gmra.mrb[16].mxu1 %v9643_v12  ;;  %v7493_v26 = vpop.permute.xlu1 %2834  ;;  %v7495_v43 = vpop.permute.xlu0 %2824 }
  0xea   :  { %5479 = vmatmul.mubr.f32.gmra.mrb[16].mxu0 %v9643_v12  ;;  %5192 = vmatprep.mubr.f32.mxu1 %v9644_v24 }
  0xeb   :  { %5480 = vmatprep.mubr.f32.mxu0 %v9644_v24  ;;  %5705 = vmatpush3.bf16.xpose.msra.mxu1 %v5704_v48  ;;  %v3415_v48 = vld [vmem:[%s9330_s0 + $0xd0] sm:$0xff] }
  0xec   :  { %5801 = vmatpush3.bf16.xpose.msra.mxu0 %v9645_v11  ;;  %3486 = vperm.xlu1 %6105, %v3410_v23   ;;  %v3417_v23 = vld [vmem:[%s9330_s0 + $0xe0] sm:$0xff]  ;;  %v9653_v11 = vld [vmem:[#allocation49_spill] sm:$0xff] }
  0xed   :  { %5707 = vmatprep.subr.bf16.mxu1 %v5706_v49  ;;  %5193 = vmatmul.mubr.f32.gmra.mrb[18].mxu1 %v9644_v24  ;;  %v3420_v49 = vld [vmem:[%s9330_s0 + $0xf8] sm:$0xff] }
  0xee   :  { %5481 = vmatmul.mubr.f32.gmra.mrb[18].mxu0 %v9644_v24  ;;  %5194 = vmatprep.mubr.f32.mxu1 %v9646_v14  ;;  %v7517_v28 = vpop.permute.xlu1 %2839  ;;  %v7519_v8 = vpop.permute.xlu0 %2829 }
  0xef   :  { %5482 = vmatprep.mubr.f32.mxu0 %v9646_v14  ;;  %5803 = vmatprep.subr.bf16.mxu0 %v9647_v32  ;;  %v3419_v32 = vld [vmem:[%s9330_s0 + $0xf0] sm:$0xff] }
  0xf0   :  { %3483 = vperm.xlu0 %6104, %v3409_v40   ;;  %3492 = vperm.xlu1 %6105, %v3412_v29   ;;  %v5716_v29 = vpack.c.bf16 %v7001_v0, %v6983_v5  ;;  %v9661_v0 = vld [vmem:[#allocation53_spill] sm:$0xff] }
  0xf1   :  { %5195 = vmatmul.mubr.f32.gmra.mrb[20].mxu1 %v9646_v14 }
  0xf2   :  { %5483 = vmatmul.mubr.f32.gmra.mrb[20].mxu0 %v9646_v14  ;;  %5196 = vmatprep.mubr.f32.mxu1 %v9648_v56  ;;  %v7537_v44 = vpop.permute.xlu1 %2849 }
  0xf3   :  { %5484 = vmatprep.mubr.f32.mxu0 %v9648_v56  ;;  %5709 = vmatpush3.bf16.xpose.msra.mxu1 %v5708_v47  ;;  %v9657_v47 = vld [vmem:[#allocation52_spill] sm:$0xff] }
  0xf4   :  { %5805 = vmatpush3.bf16.xpose.msra.mxu0 %v9649_v54  ;;  %3498 = vperm.xlu1 %6105, %v3414_v59   ;;  %v9658_v59 = vld [vmem:[#allocation27_spill] sm:$0xff] }
  0xf5   :  { %3489 = vperm.xlu0 %6104, %v3411_v13   ;;  %5197 = vmatmul.mubr.f32.gmra.mrb[22].mxu1 %v9648_v56 }
  0xf6   :  { %5485 = vmatmul.mubr.f32.gmra.mrb[22].mxu0 %v9648_v56  ;;  %5198 = vmatprep.mubr.f32.mxu1 %v9650_v30  ;;  %v7539_v20 = vpop.permute.xlu0 %2844 }
  0xf7   :  { %5486 = vmatprep.mubr.f32.mxu0 %v9650_v30  ;;  %5711 = vmatprep.subr.bf16.mxu1 %v5710_v1 }
  0xf8   :  { %5807 = vmatprep.subr.bf16.mxu0 %v9651_v45  ;;  %3504 = vperm.xlu1 %6105, %v3416_v16  }
  0xf9   :  { %3495 = vperm.xlu0 %6104, %v3413_v6   ;;  %5199 = vmatmul.mubr.f32.gmra.mrb[24].mxu1 %v9650_v30 }
  0xfa   :  { %5487 = vmatmul.mubr.f32.gmra.mrb[24].mxu0 %v9650_v30  ;;  %5200 = vmatprep.mubr.f32.mxu1 %v6951_v10 }
  0xfb   :  { %5488 = vmatprep.mubr.f32.mxu0 %v6951_v10  ;;  %5713 = vmatpush3.bf16.xpose.msra.mxu1 %v5712_v17 }
  0xfc   :  { %5809 = vmatpush3.bf16.xpose.msra.mxu0 %v9652_v3  ;;  %3510 = vperm.xlu1 %6105, %v3418_v60  }
  0xfd   :  { %3501 = vperm.xlu0 %6104, %v3415_v48   ;;  %5201 = vmatmul.mubr.f32.gmra.mrb[26].mxu1 %v6951_v10 }
  0xfe   :  { %5489 = vmatmul.mubr.f32.gmra.mrb[26].mxu0 %v6951_v10  ;;  %5202 = vmatprep.mubr.f32.mxu1 %v9653_v11  ;;  %v7564_v40 = vpop.permute.xlu1 %2859 }
  0xff   :  { %5490 = vmatprep.mubr.f32.mxu0 %v9653_v11  ;;  %9654 = vst [vmem:[#allocation19_spill] sm:$0xff] %v7564_v40  ;;  %v7566_v41 = vpop.permute.xlu0 %2854  ;;  %5715 = vmatprep.subr.bf16.mxu1 %v5714_v38 }
 0x100   :  { %9655 = vst [vmem:[#allocation23_spill] sm:$0xff] %v7566_v41  ;;  %5811 = vmatprep.subr.bf16.mxu0 %v9656_v34  ;;  %3516 = vperm.xlu1 %6105, %v3420_v49  }
 0x101   :  { %3507 = vperm.xlu0 %6104, %v3417_v23   ;;  %5203 = vmatmul.mubr.f32.gmra.mrb[28].mxu1 %v9653_v11 }
 0x102   :  { %5491 = vmatmul.mubr.f32.gmra.mrb[28].mxu0 %v9653_v11  ;;  %5204 = vmatprep.mubr.f32.mxu1 %v9657_v47 }
 0x103   :  { %5492 = vmatprep.mubr.f32.mxu0 %v9657_v47  ;;  %5717 = vmatpush3.bf16.xpose.msra.mxu1 %v5716_v29  ;;  %v7579_v13 = vpop.permute.xlu1 %2869 }
 0x104   :  { %5813 = vmatpush3.bf16.xpose.msra.mxu0 %v9658_v59  ;;  %9659 = vst [vmem:[#allocation24_spill] sm:$0xff] %v7579_v13  ;;  %v7581_v5 = vpop.permute.xlu0 %2864 }
 0x105   :  { %9660 = vst [vmem:[#allocation6_spill] sm:$0xff] %v7581_v5  ;;  %3513 = vperm.xlu0 %6104, %v3419_v32   ;;  %5205 = vmatmul.mubr.f32.gmra.mrb[30].mxu1 %v9657_v47 }
 0x106   :  { %5493 = vmatmul.mubr.f32.gmra.mrb[30].mxu0 %v9657_v47  ;;  %5206 = vmatprep.mubr.f32.mxu1 %v9661_v0 }
 0x107   :  { %5494 = vmatprep.mubr.f32.mxu0 %v9661_v0  ;;  %v7587_v54 = vpop.permute.xlu1 %2879 }
 0x108   :  { %9662 = vst [vmem:[#allocation22_spill] sm:$0xff] %v7587_v54  ;;  %v7589_v1 = vpop.permute.xlu0 %2874 }
 0x109   :  { %9663 = vst [vmem:[#allocation7_spill] sm:$0xff] %v7589_v1  ;;  %5207 = vmatmul.mubr.f32.gmra.mrb[32].mxu1 %v9661_v0 }
 0x10a   :  { %5495 = vmatmul.mubr.f32.gmra.mrb[32].mxu0 %v9661_v0  ;;  %5208 = vmatprep.mubr.f32.mxu1 %v7087_v52 }
 0x10b   :  { %5496 = vmatprep.mubr.f32.mxu0 %v7087_v52  ;;  %v7595_v16 = vpop.permute.xlu1 %2889 }
 0x10c   :  { %9664 = vst [vmem:[#allocation25_spill] sm:$0xff] %v7595_v16  ;;  %v7597_v6 = vpop.permute.xlu0 %2884 }
 0x10d   :  { %9665 = vst [vmem:[#allocation28_spill] sm:$0xff] %v7597_v6  ;;  %5209 = vmatmul.mubr.f32.gmra.mrb[34].mxu1 %v7087_v52 }
 0x10e   :  { %5497 = vmatmul.mubr.f32.gmra.mrb[34].mxu0 %v7087_v52  ;;  %5210 = vmatprep.mubr.f32.mxu1 %v7117_v9 }
 0x10f   :  { %5498 = vmatprep.mubr.f32.mxu0 %v7117_v9  ;;  %v7603_v45 = vpop.permute.xlu1 %2899 }
 0x110   :  { %9666 = vst [vmem:[#allocation8_spill] sm:$0xff] %v7603_v45  ;;  %v7605_v17 = vpop.permute.xlu0 %2894 }
 0x111   :  { %9667 = vst [vmem:[#allocation9_spill] sm:$0xff] %v7605_v17  ;;  %5211 = vmatmul.mubr.f32.gmra.mrb[36].mxu1 %v7117_v9 }
 0x112   :  { %5499 = vmatmul.mubr.f32.gmra.mrb[36].mxu0 %v7117_v9  ;;  %5212 = vmatprep.mubr.f32.mxu1 %v7132_v25 }
 0x113   :  { %5500 = vmatprep.mubr.f32.mxu0 %v7132_v25  ;;  %v7611_v60 = vpop.permute.xlu1 %2909 }
 0x114   :  { %9668 = vst [vmem:[#allocation31_spill] sm:$0xff] %v7611_v60  ;;  %v7613_v48 = vpop.permute.xlu0 %2904 }
 0x115   :  { %9669 = vst [vmem:[#allocation10_spill] sm:$0xff] %v7613_v48  ;;  %5213 = vmatmul.mubr.f32.gmra.mrb[38].mxu1 %v7132_v25 }
 0x116   :  { %5501 = vmatmul.mubr.f32.gmra.mrb[38].mxu0 %v7132_v25  ;;  %5214 = vmatprep.mubr.f32.mxu1 %v7147_v18 }
 0x117   :  { %5502 = vmatprep.mubr.f32.mxu0 %v7147_v18  ;;  %v7619_v3 = vpop.permute.xlu1 %2919 }
 0x118   :  { %9670 = vst [vmem:[#allocation11_spill] sm:$0xff] %v7619_v3  ;;  %v7621_v38 = vpop.permute.xlu0 %2914 }
 0x119   :  { %9671 = vst [vmem:[#allocation32_spill] sm:$0xff] %v7621_v38  ;;  %5215 = vmatmul.mubr.f32.gmra.mrb[40].mxu1 %v7147_v18 }
 0x11a   :  { %5503 = vmatmul.mubr.f32.gmra.mrb[40].mxu0 %v7147_v18  ;;  %5216 = vmatprep.mubr.f32.mxu1 %v7177_v22 }
 0x11b   :  { %5504 = vmatprep.mubr.f32.mxu0 %v7177_v22  ;;  %v7627_v49 = vpop.permute.xlu1 %2929 }
 0x11c   :  { %9672 = vst [vmem:[#allocation34_spill] sm:$0xff] %v7627_v49  ;;  %v7629_v23 = vpop.permute.xlu0 %2924  ;;  %v2983_v49 = vlaneseq }
 0x11d   :  { %9673 = vst [vmem:[#allocation36_spill] sm:$0xff] %v7629_v23  ;;  %5217 = vmatmul.mubr.f32.gmra.mrb[42].mxu1 %v7177_v22 }
 0x11e   :  { %5505 = vmatmul.mubr.f32.gmra.mrb[42].mxu0 %v7177_v22  ;;  %5218 = vmatprep.mubr.f32.mxu1 %v7196_v51  ;;  %v7655_v23 = vshrl.u32 %v2983_v49, 7 }
 0x11f   :  { %5506 = vmatprep.mubr.f32.mxu0 %v7196_v51  ;;  %v7635_v34 = vpop.permute.xlu1 %2939 }
 0x120   :  { %9674 = vst [vmem:[#allocation12_spill] sm:$0xff] %v7635_v34  ;;  %v7637_v29 = vpop.permute.xlu0 %2934  ;;  %v9468_v3 = vsub.s32 0, %v7655_v23  ;;  %v3260_v1 = vadd.s32 72, %v7655_v23 }
 0x121   :  { %9675 = vst [vmem:[#allocation13_spill] sm:$0xff] %v7637_v29  ;;  %5219 = vmatmul.mubr.f32.gmra.mrb[44].mxu1 %v7196_v51 }
 0x122   :  { %5507 = vmatmul.mubr.f32.gmra.mrb[44].mxu0 %v7196_v51  ;;  %5220 = vmatprep.mubr.f32.mxu1 %v7203_v33 }
 0x123   :  { %5508 = vmatprep.mubr.f32.mxu0 %v7203_v33  ;;  %v7643_v32 = vpop.permute.xlu1 %2949 }
 0x124   :  { %9676 = vst [vmem:[#allocation39_spill] sm:$0xff] %v7643_v32  ;;  %v7645_v59 = vpop.permute.xlu0 %2944 }
 0x125   :  { %9677 = vst [vmem:[#allocation41_spill] sm:$0xff] %v7645_v59  ;;  %5221 = vmatmul.mubr.f32.gmra.mrb[46].mxu1 %v7203_v33 }
 0x126   :  { %5509 = vmatmul.mubr.f32.gmra.mrb[46].mxu0 %v7203_v33  ;;  %5222 = vmatprep.mubr.f32.mxu1 %v7222_v61 }
 0x127   :  { %5510 = vmatprep.mubr.f32.mxu0 %v7222_v61  ;;  %v7651_v34 = vpop.permute.xlu1 %2959 }
 0x128   :  { %9678 = vst [vmem:[#allocation15_spill] sm:$0xff] %v7651_v34  ;;  %v7653_v29 = vpop.permute.xlu0 %2954  ;;  %v3421_v34 = vld [vmem:[%s9331_s1] sm:$0x3] }
 0x129   :  { %9679 = vst [vmem:[#allocation43_spill] sm:$0xff] %v7653_v29  ;;  %5223 = vmatmul.mubr.f32.gmra.mrb[48].mxu1 %v7222_v61  ;;  %v3252_v29 = vadd.s32 8, %v7655_v23  ;;  %v7682_v60 = vrot.slane %v3421_v34, %v9468_v3  ;;  %v3253_v34 = vadd.s32 16, %v7655_v23  ;;  %v9469_v3 = vmov 0.0  }
 0x12a   :  { %5511 = vmatmul.mubr.f32.gmra.mrb[48].mxu0 %v7222_v61  ;;  %5224 = vmatprep.mubr.f32.mxu1 %v7247_v50 }
 0x12b   :  { %5512 = vmatprep.mubr.f32.mxu0 %v7247_v50  ;;  %v7661_v32 = vpop.permute.xlu1 %2969 }
 0x12c   :  { %9680 = vst [vmem:[#allocation16_spill] sm:$0xff] %v7661_v32  ;;  %v7663_v59 = vpop.permute.xlu0 %2964 }
 0x12d   :  { %9681 = vst [vmem:[#allocation45_spill] sm:$0xff] %v7663_v59  ;;  %5225 = vmatmul.mubr.f32.gmra.mrb[50].mxu1 %v7247_v50  ;;  %v7678_v59 = vand.u32 127, %v2983_v49 }
 0x12e   :  { %5513 = vmatmul.mubr.f32.gmra.mrb[50].mxu0 %v7247_v50  ;;  %5226 = vmatprep.mubr.f32.mxu1 %v7264_v63 }
 0x12f   :  { %5514 = vmatprep.mubr.f32.mxu0 %v7264_v63  ;;  %v7674_v38 = vpop.permute.xlu1 %2979  ;;  %vm3327_vm1 = vcmp.ne.s32.totalorder %v3252_v29, %v7678_v59  ;;  %vm9494_vm2 = vcmp.lt.s32.totalorder %v7678_v59, 8  ;;  %vm3325_vm5 = vcmp.ne.s32.totalorder %v7655_v23, %v7678_v59  ;;  %vm3329_vm12 = vcmp.ne.s32.totalorder %v3253_v34, %v7678_v59 }
 0x130   :  { %9682 = vst [vmem:[#allocation17_spill] sm:$0xff] %v7674_v38  ;;  %v7676_v32 = vpop.permute.xlu0 %2974  ;;  %v3254_v38 = vadd.s32 24, %v7655_v23  ;;  %v9690_v34 = vmov 0.0  }
 0x131   :  { %9683 = vst [vmem:[#allocation46_spill] sm:$0xff] %v7676_v32  ;;  %5227 = vmatmul.mubr.f32.gmra.mrb[52].mxu1 %v7264_v63 }
 0x132   :  { %5515 = vmatmul.mubr.f32.gmra.mrb[52].mxu0 %v7264_v63  ;;  %5228 = vmatprep.mubr.f32.mxu1 %v7281_v53  ;;  %vm3331_vm6 = vcmp.ne.s32.totalorder %v3254_v38, %v7678_v59 }
 0x133   :  { %5516 = vmatprep.mubr.f32.mxu0 %v7281_v53  ;;  %v3427_v48 = vpop.permute.xlu1 %3426 }
 0x134   :  { %v3424_v32 = vpop.permute.xlu0 %3423  ;;  %vm3528_vm3 = vcmp.eq.s32.totalorder %v3427_v48, %v7682_v60  ;;  %v3256_v48 = vadd.s32 40, %v7655_v23 }
 0x135   :  { %5229 = vmatmul.mubr.f32.gmra.mrb[54].mxu1 %v7281_v53  ;;  %vm7694_vm4 = vmand %vm3327_vm1, %vm3528_vm3  ;;  %vm3526_vm8 = vcmp.eq.s32.totalorder %v3424_v32, %v7682_v60  ;;  %v9702_v32 = vmov 0 }
 0x136   :  { %5517 = vmatmul.mubr.f32.gmra.mrb[54].mxu0 %v7281_v53  ;;  %5230 = vmatprep.mubr.f32.mxu1 %v7287_v27  ;;  %vm4140_vm7 = vmand %vm3528_vm3, %vm9494_vm2  ;;  %vm3335_vm13 = vcmp.ne.s32.totalorder %v3256_v48, %v7678_v59 }
 0x137   :  { %5518 = vmatprep.mubr.f32.mxu0 %v7287_v27  ;;  %v3433_v29 = vpop.permute.xlu1 %3432  ;;  %v4204_v45 = vsel %vm4140_vm7, 1.0, %v9469_v3  ;;  %vm7712_vm10 = vmand %vm3325_vm5, %vm3526_vm8  ;;  %v3258_v3 = vadd.s32 56, %v7655_v23 }
 0x138   :  { %vm3532_vm9 = vcmp.eq.s32.totalorder %v3433_v29, %v7682_v60  ;;  %v7716_v38 = vpop.permute.xlu0 %3429  ;;  %4270 = vadd.xlane.f32.xlu0 %v4204_v45  ;;  %v9693_v45 = vmov 0  ;;  %v3255_v29 = vadd.s32 32, %v7655_v23 }
 0x139   :  { %5231 = vmatmul.mubr.f32.gmra.mrb[56].mxu1 %v7287_v27  ;;  %vm7722_vm11 = vmand %vm3331_vm6, %vm3532_vm9  ;;  %vm3530_vm15 = vcmp.eq.s32.totalorder %v7716_v38, %v7682_v60  ;;  %vm3339_vm5 = vcmp.ne.s32.totalorder %v3258_v3, %v7678_v59  ;;  %v9696_v3 = vmov 0 }
 0x13a   :  { %5519 = vmatmul.mubr.f32.gmra.mrb[56].mxu0 %v7287_v27  ;;  %5232 = vmatprep.mubr.f32.mxu1 %v7315_v15  ;;  %vm4144_vm14 = vmand %vm3532_vm9, %vm9494_vm2 }
 0x13b   :  { %5520 = vmatprep.mubr.f32.mxu0 %v7315_v15  ;;  %v3439_v6 = vpop.permute.xlu1 %3438  ;;  %v4208_v54 = vsel %vm4144_vm14, 1.0, %v9690_v34  ;;  %vm7742_vm1 = vmand %vm3329_vm12, %vm3530_vm15  ;;  %vm3333_vm12 = vcmp.ne.s32.totalorder %v3255_v29, %v7678_v59 }
 0x13c   :  { %vm3536_vm0 = vcmp.eq.s32.totalorder %v3439_v6, %v7682_v60  ;;  %v7759_v13 = vpop.permute.xlu0 %3435  ;;  %4276 = vadd.xlane.f32.xlu0 %v4208_v54  ;;  %v7784_v6 = vadd.s32 88, %v7655_v23  ;;  %vm4138_vm14 = vmand %vm3526_vm8, %vm9494_vm2 }
 0x13d   :  { %5233 = vmatmul.mubr.f32.gmra.mrb[58].mxu1 %v7315_v15  ;;  %vm7750_vm3 = vmand %vm3335_vm13, %vm3536_vm0  ;;  %vm3343_vm13 = vcmp.ne.s32.totalorder %v3260_v1, %v7678_v59  ;;  %v7797_v29 = vsel %vm4138_vm14, 1.0, %v9690_v34  ;;  %v9699_v1 = vmov 0 }
 0x13e   :  { %5521 = vmatmul.mubr.f32.gmra.mrb[58].mxu0 %v7315_v15  ;;  %v9694_v45 = vsel %vm7750_vm3, 4294967295, %v9693_v45  ;;  %5234 = vmatprep.mubr.f32.mxu1 %v7332_v37  ;;  %vm4148_vm7 = vmand %vm3536_vm0, %vm9494_vm2  ;;  %vm9474_vm0 = vcmp.eq.s32.totalorder %v7759_v13, %v7682_v60  ;;  %vm3347_vm14 = vcmp.ne.s32.totalorder %v7784_v6, %v7678_v59 }
 0x13f   :  { %9695 = vst [vmem:[#allocation18_spill] sm:$0xff] %v9694_v45  ;;  %5522 = vmatprep.mubr.f32.mxu0 %v7332_v37  ;;  %v7761_v5 = vpop.permute.xlu1 %3444  ;;  %v4212_v54 = vsel %vm4148_vm7, 1.0, %v9690_v34  ;;  %vm7802_vm7 = vmand %vm3333_vm12, %vm9474_vm0  ;;  %vm9475_vm12 = vcmask 7168   ;;  %v9705_v45 = vld [vmem:[#allocation14_spill] sm:$0xff]  ;;  %4267 = vadd.xlane.f32.xlu1 %v7797_v29  ;;  %v9706_v29 = vmov 0 }
 0x140   :  { %vm3540_vm6 = vcmp.eq.s32.totalorder %v7761_v5, %v7682_v60  ;;  %4282 = vadd.xlane.f32.xlu0 %v4212_v54  ;;  %v9700_v1 = vsel %vm7802_vm7, 4294967295, %v9699_v1  ;;  %v7806_v54 = vpop.permute.xlu0 %3441  ;;  %127 = vst.msk [vmem:[#allocation5 + $0x8] sm:$0xff] %vm9475_vm12, %v9690_v34  ;;  %30 = vst.msk [vmem:[#allocation2] sm:$0xff] %vm9475_vm12, %v9690_v34  ;;  %v3264_v5 = vadd.s32 104, %v7655_v23 }
 0x141   :  { %5235 = vmatmul.mubr.f32.gmra.mrb[60].mxu1 %v7332_v37  ;;  %vm7774_vm9 = vmand %vm3339_vm5, %vm3540_vm6  ;;  %9701 = vst [vmem:[#allocation49_spill] sm:$0xff] %v9700_v1  ;;  %v9708_v1 = vld [vmem:[#allocation26_spill] sm:$0xff] }
 0x142   :  { %5523 = vmatmul.mubr.f32.gmra.mrb[60].mxu0 %v7332_v37  ;;  %v9697_v3 = vsel %vm7774_vm9, 4294967295, %v9696_v3  ;;  %5236 = vmatprep.mubr.f32.mxu1 %v7346_v31  ;;  %31 = vst.msk [vmem:[#allocation2 + $0x8] sm:$0xff] %vm9475_vm12, %v9690_v34  ;;  %32 = vst.msk [vmem:[#allocation2 + $0x10] sm:$0xff] %vm9475_vm12, %v9690_v34 }
 0x143   :  { %9698 = vst [vmem:[#allocation20_spill] sm:$0xff] %v9697_v3  ;;  %5524 = vmatprep.mubr.f32.mxu0 %v7346_v31  ;;  %v7786_v40 = vpop.permute.xlu1 %3450  ;;  %v7818_v3 = vadd.s32 48, %v7655_v23  ;;  %33 = vst.msk [vmem:[#allocation2 + $0x18] sm:$0xff] %vm9475_vm12, %v9690_v34 }
 0x144   :  { %vm9476_vm5 = vcmp.eq.s32.totalorder %v7786_v40, %v7682_v60  ;;  %34 = vst.msk [vmem:[#allocation2 + $0x20] sm:$0xff] %vm9475_vm12, %v9690_v34  ;;  %35 = vst.msk [vmem:[#allocation2 + $0x28] sm:$0xff] %vm9475_vm12, %v9690_v34 }
 0x145   :  { %5237 = vmatmul.mubr.f32.gmra.mrb[62].mxu1 %v7346_v31  ;;  %vm7813_vm8 = vmand %vm3343_vm13, %vm9476_vm5  ;;  %36 = vst.msk [vmem:[#allocation2 + $0x30] sm:$0xff] %vm9475_vm12, %v9690_v34  ;;  %vm3337_vm5 = vcmp.ne.s32.totalorder %v7818_v3, %v7678_v59 }
 0x146   :  { %5525 = vmatmul.mubr.f32.gmra.mrb[62].mxu0 %v7346_v31  ;;  %v9703_v32 = vsel %vm7813_vm8, 4294967295, %v9702_v32  ;;  %5270 = vmatprep.mubr.f32.mxu1 %v9705_v45  ;;  %37 = vst.msk [vmem:[#allocation2 + $0x38] sm:$0xff] %vm9475_vm12, %v9690_v34  ;;  %38 = vst.msk [vmem:[#allocation2 + $0x40] sm:$0xff] %vm9475_vm12, %v9690_v34 }
 0x147   :  { %9704 = vst [vmem:[#allocation21_spill] sm:$0xff] %v9703_v32  ;;  %5558 = vmatprep.mubr.f32.mxu0 %v6370_v19  ;;  %39 = vst.msk [vmem:[#allocation2 + $0x48] sm:$0xff] %vm9475_vm12, %v9690_v34  ;;  %v3457_v32 = vpop.permute.xlu1 %3456 }
 0x148   :  { %40 = vst.msk [vmem:[#allocation2 + $0x50] sm:$0xff] %vm9475_vm12, %v9690_v34  ;;  %41 = vst.msk [vmem:[#allocation2 + $0x58] sm:$0xff] %vm9475_vm12, %v9690_v34  ;;  %vm9479_vm13 = vcmp.eq.s32.totalorder %v3457_v32, %v7682_v60 }
 0x149   :  { %42 = vst.msk [vmem:[#allocation2 + $0x60] sm:$0xff] %vm9475_vm12, %v9690_v34  ;;  %43 = vst.msk [vmem:[#allocation2 + $0x68] sm:$0xff] %vm9475_vm12, %v9690_v34  ;;  %5271 = vmatmul.mubr.f32.vlgmr.msra.gmra.mrb[0].mxu1 %v9705_v45  ;;  %v3259_v45 = vadd.s32 64, %v7655_v23 }
 0x14a   :  { %44 = vst.msk [vmem:[#allocation2 + $0x70] sm:$0xff] %vm9475_vm12, %v9690_v34  ;;  %45 = vst.msk [vmem:[#allocation2 + $0x78] sm:$0xff] %vm9475_vm12, %v9690_v34  ;;  %5559 = vmatmul.mubr.f32.vlgmr.msra.gmra.mrb[0].mxu0 %v6370_v19  ;;  %5272 = vmatprep.mubr.f32.mxu1 %v9708_v1  ;;  %v3448_v19 = vpop.permute.xlu0 %3447 }
 0x14b   :  { %46 = vst.msk [vmem:[#allocation2 + $0x80] sm:$0xff] %vm9475_vm12, %v9690_v34  ;;  %47 = vst.msk [vmem:[#allocation2 + $0x88] sm:$0xff] %vm9475_vm12, %v9690_v34  ;;  %5560 = vmatprep.mubr.f32.mxu0 %v9625_v4  ;;  %vm3341_vm8 = vcmp.ne.s32.totalorder %v3259_v45, %v7678_v59  ;;  %v9717_v45 = vld [vmem:[#allocation30_spill] sm:$0xff] }
 0x14c   :  { %48 = vst.msk [vmem:[#allocation2 + $0x90] sm:$0xff] %vm9475_vm12, %v9690_v34  ;;  %49 = vst.msk [vmem:[#allocation2 + $0x98] sm:$0xff] %vm9475_vm12, %v9690_v34 }
 0x14d   :  { %50 = vst.msk [vmem:[#allocation2 + $0xa0] sm:$0xff] %vm9475_vm12, %v9690_v34  ;;  %51 = vst.msk [vmem:[#allocation2 + $0xa8] sm:$0xff] %vm9475_vm12, %v9690_v34  ;;  %5273 = vmatmul.mubr.f32.gmra.mrb[2].mxu1 %v9708_v1 }
 0x14e   :  { %52 = vst.msk [vmem:[#allocation2 + $0xb0] sm:$0xff] %vm9475_vm12, %v9690_v34  ;;  %53 = vst.msk [vmem:[#allocation2 + $0xb8] sm:$0xff] %vm9475_vm12, %v9690_v34  ;;  %5561 = vmatmul.mubr.f32.gmra.mrb[2].mxu0 %v9625_v4  ;;  %v3463_v38 = vpop.permute.xlu1 %3462  ;;  %v3261_v4 = vadd.s32 80, %v7655_v23 }
 0x14f   :  { %54 = vst.msk [vmem:[#allocation2 + $0xc0] sm:$0xff] %vm9475_vm12, %v9690_v34  ;;  %55 = vst.msk [vmem:[#allocation2 + $0xc8] sm:$0xff] %vm9475_vm12, %v9690_v34  ;;  %5562 = vmatprep.mubr.f32.mxu0 %v9627_v62 }
 0x150   :  { %56 = vst.msk [vmem:[#allocation2 + $0xd0] sm:$0xff] %vm9475_vm12, %v9690_v34  ;;  %57 = vst.msk [vmem:[#allocation2 + $0xd8] sm:$0xff] %vm9475_vm12, %v9690_v34 }
 0x151   :  { %58 = vst.msk [vmem:[#allocation2 + $0xe0] sm:$0xff] %vm9475_vm12, %v9690_v34  ;;  %59 = vst.msk [vmem:[#allocation2 + $0xe8] sm:$0xff] %vm9475_vm12, %v9690_v34 }
 0x152   :  { %60 = vst.msk [vmem:[#allocation2 + $0xf0] sm:$0xff] %vm9475_vm12, %v9690_v34  ;;  %61 = vst.msk [vmem:[#allocation2 + $0xf8] sm:$0xff] %vm9475_vm12, %v9690_v34  ;;  %5563 = vmatmul.mubr.f32.gmra.mrb[4].mxu0 %v9627_v62 }
 0x153   :  { %62 = vst.msk [vmem:[#allocation3] sm:$0xff] %vm9475_vm12, %v9690_v34  ;;  %63 = vst.msk [vmem:[#allocation3 + $0x8] sm:$0xff] %vm9475_vm12, %v9690_v34  ;;  %5564 = vmatprep.mubr.f32.mxu0 %v9628_v57 }
 0x154   :  { %64 = vst.msk [vmem:[#allocation3 + $0x10] sm:$0xff] %vm9475_vm12, %v9690_v34  ;;  %65 = vst.msk [vmem:[#allocation3 + $0x18] sm:$0xff] %vm9475_vm12, %v9690_v34 }
 0x155   :  { %66 = vst.msk [vmem:[#allocation3 + $0x20] sm:$0xff] %vm9475_vm12, %v9690_v34  ;;  %67 = vst.msk [vmem:[#allocation3 + $0x28] sm:$0xff] %vm9475_vm12, %v9690_v34 }
 0x156   :  { %68 = vst.msk [vmem:[#allocation3 + $0x30] sm:$0xff] %vm9475_vm12, %v9690_v34  ;;  %69 = vst.msk [vmem:[#allocation3 + $0x38] sm:$0xff] %vm9475_vm12, %v9690_v34  ;;  %5565 = vmatmul.mubr.f32.gmra.mrb[6].mxu0 %v9628_v57 }
 0x157   :  { %70 = vst.msk [vmem:[#allocation3 + $0x40] sm:$0xff] %vm9475_vm12, %v9690_v34  ;;  %71 = vst.msk [vmem:[#allocation3 + $0x48] sm:$0xff] %vm9475_vm12, %v9690_v34  ;;  %5566 = vmatprep.mubr.f32.mxu0 %v9632_v55 }
 0x158   :  { %72 = vst.msk [vmem:[#allocation3 + $0x50] sm:$0xff] %vm9475_vm12, %v9690_v34  ;;  %73 = vst.msk [vmem:[#allocation3 + $0x58] sm:$0xff] %vm9475_vm12, %v9690_v34 }
 0x159   :  { %74 = vst.msk [vmem:[#allocation3 + $0x60] sm:$0xff] %vm9475_vm12, %v9690_v34  ;;  %75 = vst.msk [vmem:[#allocation3 + $0x68] sm:$0xff] %vm9475_vm12, %v9690_v34 }
 0x15a   :  { %76 = vst.msk [vmem:[#allocation3 + $0x70] sm:$0xff] %vm9475_vm12, %v9690_v34  ;;  %77 = vst.msk [vmem:[#allocation3 + $0x78] sm:$0xff] %vm9475_vm12, %v9690_v34  ;;  %5567 = vmatmul.mubr.f32.gmra.mrb[8].mxu0 %v9632_v55 }
 0x15b   :  { %78 = vst.msk [vmem:[#allocation3 + $0x80] sm:$0xff] %vm9475_vm12, %v9690_v34  ;;  %79 = vst.msk [vmem:[#allocation3 + $0x88] sm:$0xff] %vm9475_vm12, %v9690_v34  ;;  %5568 = vmatprep.mubr.f32.mxu0 %v6675_v58 }
 0x15c   :  { %80 = vst.msk [vmem:[#allocation3 + $0x90] sm:$0xff] %vm9475_vm12, %v9690_v34  ;;  %81 = vst.msk [vmem:[#allocation3 + $0x98] sm:$0xff] %vm9475_vm12, %v9690_v34 }
 0x15d   :  { %82 = vst.msk [vmem:[#allocation3 + $0xa0] sm:$0xff] %vm9475_vm12, %v9690_v34  ;;  %83 = vst.msk [vmem:[#allocation3 + $0xa8] sm:$0xff] %vm9475_vm12, %v9690_v34 }
 0x15e   :  { %84 = vst.msk [vmem:[#allocation3 + $0xb0] sm:$0xff] %vm9475_vm12, %v9690_v34  ;;  %85 = vst.msk [vmem:[#allocation3 + $0xb8] sm:$0xff] %vm9475_vm12, %v9690_v34  ;;  %5569 = vmatmul.mubr.f32.gmra.mrb[10].mxu0 %v6675_v58 }
 0x15f   :  { %86 = vst.msk [vmem:[#allocation3 + $0xc0] sm:$0xff] %vm9475_vm12, %v9690_v34  ;;  %87 = vst.msk [vmem:[#allocation3 + $0xc8] sm:$0xff] %vm9475_vm12, %v9690_v34  ;;  %5570 = vmatprep.mubr.f32.mxu0 %v6707_v7 }
 0x160   :  { %88 = vst.msk [vmem:[#allocation3 + $0xd0] sm:$0xff] %vm9475_vm12, %v9690_v34  ;;  %89 = vst.msk [vmem:[#allocation3 + $0xd8] sm:$0xff] %vm9475_vm12, %v9690_v34 }
 0x161   :  { %90 = vst.msk [vmem:[#allocation3 + $0xe0] sm:$0xff] %vm9475_vm12, %v9690_v34  ;;  %91 = vst.msk [vmem:[#allocation3 + $0xe8] sm:$0xff] %vm9475_vm12, %v9690_v34 }
 0x162   :  { %92 = vst.msk [vmem:[#allocation3 + $0xf0] sm:$0xff] %vm9475_vm12, %v9690_v34  ;;  %93 = vst.msk [vmem:[#allocation3 + $0xf8] sm:$0xff] %vm9475_vm12, %v9690_v34  ;;  %5571 = vmatmul.mubr.f32.gmra.mrb[12].mxu0 %v6707_v7 }
 0x163   :  { %94 = vst.msk [vmem:[#allocation4] sm:$0xff] %vm9475_vm12, %v9690_v34  ;;  %95 = vst.msk [vmem:[#allocation4 + $0x8] sm:$0xff] %vm9475_vm12, %v9690_v34  ;;  %5572 = vmatprep.mubr.f32.mxu0 %v9639_v36 }
 0x164   :  { %96 = vst.msk [vmem:[#allocation4 + $0x10] sm:$0xff] %vm9475_vm12, %v9690_v34  ;;  %97 = vst.msk [vmem:[#allocation4 + $0x18] sm:$0xff] %vm9475_vm12, %v9690_v34 }
 0x165   :  { %98 = vst.msk [vmem:[#allocation4 + $0x20] sm:$0xff] %vm9475_vm12, %v9690_v34  ;;  %99 = vst.msk [vmem:[#allocation4 + $0x28] sm:$0xff] %vm9475_vm12, %v9690_v34 }
 0x166   :  { %100 = vst.msk [vmem:[#allocation4 + $0x30] sm:$0xff] %vm9475_vm12, %v9690_v34  ;;  %101 = vst.msk [vmem:[#allocation4 + $0x38] sm:$0xff] %vm9475_vm12, %v9690_v34  ;;  %5573 = vmatmul.mubr.f32.gmra.mrb[14].mxu0 %v9639_v36 }
 0x167   :  { %102 = vst.msk [vmem:[#allocation4 + $0x40] sm:$0xff] %vm9475_vm12, %v9690_v34  ;;  %103 = vst.msk [vmem:[#allocation4 + $0x48] sm:$0xff] %vm9475_vm12, %v9690_v34  ;;  %5574 = vmatprep.mubr.f32.mxu0 %v9643_v12 }
 0x168   :  { %104 = vst.msk [vmem:[#allocation4 + $0x50] sm:$0xff] %vm9475_vm12, %v9690_v34  ;;  %105 = vst.msk [vmem:[#allocation4 + $0x58] sm:$0xff] %vm9475_vm12, %v9690_v34 }
 0x169   :  { %106 = vst.msk [vmem:[#allocation4 + $0x60] sm:$0xff] %vm9475_vm12, %v9690_v34  ;;  %107 = vst.msk [vmem:[#allocation4 + $0x68] sm:$0xff] %vm9475_vm12, %v9690_v34 }
 0x16a   :  { %108 = vst.msk [vmem:[#allocation4 + $0x70] sm:$0xff] %vm9475_vm12, %v9690_v34  ;;  %109 = vst.msk [vmem:[#allocation4 + $0x78] sm:$0xff] %vm9475_vm12, %v9690_v34  ;;  %5575 = vmatmul.mubr.f32.gmra.mrb[16].mxu0 %v9643_v12 }
 0x16b   :  { %110 = vst.msk [vmem:[#allocation4 + $0x80] sm:$0xff] %vm9475_vm12, %v9690_v34  ;;  %111 = vst.msk [vmem:[#allocation4 + $0x88] sm:$0xff] %vm9475_vm12, %v9690_v34  ;;  %5576 = vmatprep.mubr.f32.mxu0 %v9644_v24 }
 0x16c   :  { %112 = vst.msk [vmem:[#allocation4 + $0x90] sm:$0xff] %vm9475_vm12, %v9690_v34  ;;  %113 = vst.msk [vmem:[#allocation4 + $0x98] sm:$0xff] %vm9475_vm12, %v9690_v34 }
 0x16d   :  { %114 = vst.msk [vmem:[#allocation4 + $0xa0] sm:$0xff] %vm9475_vm12, %v9690_v34  ;;  %115 = vst.msk [vmem:[#allocation4 + $0xa8] sm:$0xff] %vm9475_vm12, %v9690_v34 }
 0x16e   :  { %116 = vst.msk [vmem:[#allocation4 + $0xb0] sm:$0xff] %vm9475_vm12, %v9690_v34  ;;  %117 = vst.msk [vmem:[#allocation4 + $0xb8] sm:$0xff] %vm9475_vm12, %v9690_v34  ;;  %5577 = vmatmul.mubr.f32.gmra.mrb[18].mxu0 %v9644_v24 }
 0x16f   :  { %118 = vst.msk [vmem:[#allocation4 + $0xc0] sm:$0xff] %vm9475_vm12, %v9690_v34  ;;  %119 = vst.msk [vmem:[#allocation4 + $0xc8] sm:$0xff] %vm9475_vm12, %v9690_v34  ;;  %5578 = vmatprep.mubr.f32.mxu0 %v9646_v14 }
 0x170   :  { %120 = vst.msk [vmem:[#allocation4 + $0xd0] sm:$0xff] %vm9475_vm12, %v9690_v34  ;;  %121 = vst.msk [vmem:[#allocation4 + $0xd8] sm:$0xff] %vm9475_vm12, %v9690_v34 }
 0x171   :  { %122 = vst.msk [vmem:[#allocation4 + $0xe0] sm:$0xff] %vm9475_vm12, %v9690_v34  ;;  %123 = vst.msk [vmem:[#allocation4 + $0xe8] sm:$0xff] %vm9475_vm12, %v9690_v34 }
 0x172   :  { %124 = vst.msk [vmem:[#allocation4 + $0xf0] sm:$0xff] %vm9475_vm12, %v9690_v34  ;;  %125 = vst.msk [vmem:[#allocation4 + $0xf8] sm:$0xff] %vm9475_vm12, %v9690_v34  ;;  %5579 = vmatmul.mubr.f32.gmra.mrb[20].mxu0 %v9646_v14 }
 0x173   :  { %126 = vst.msk [vmem:[#allocation5] sm:$0xff] %vm9475_vm12, %v9690_v34  ;;  %128 = vst.msk [vmem:[#allocation5 + $0x10] sm:$0xff] %vm9475_vm12, %v9690_v34  ;;  %5580 = vmatprep.mubr.f32.mxu0 %v9648_v56 }
 0x174   :  { %129 = vst.msk [vmem:[#allocation5 + $0x18] sm:$0xff] %vm9475_vm12, %v9690_v34  ;;  %130 = vst.msk [vmem:[#allocation5 + $0x20] sm:$0xff] %vm9475_vm12, %v9690_v34 }
 0x175   :  { %131 = vst.msk [vmem:[#allocation5 + $0x28] sm:$0xff] %vm9475_vm12, %v9690_v34  ;;  %132 = vst.msk [vmem:[#allocation5 + $0x30] sm:$0xff] %vm9475_vm12, %v9690_v34 }
 0x176   :  { %133 = vst.msk [vmem:[#allocation5 + $0x38] sm:$0xff] %vm9475_vm12, %v9690_v34  ;;  %134 = vst.msk [vmem:[#allocation5 + $0x40] sm:$0xff] %vm9475_vm12, %v9690_v34  ;;  %5581 = vmatmul.mubr.f32.gmra.mrb[22].mxu0 %v9648_v56 }
 0x177   :  { %135 = vst.msk [vmem:[#allocation5 + $0x48] sm:$0xff] %vm9475_vm12, %v9690_v34  ;;  %136 = vst.msk [vmem:[#allocation5 + $0x50] sm:$0xff] %vm9475_vm12, %v9690_v34  ;;  %5582 = vmatprep.mubr.f32.mxu0 %v9650_v30 }
 0x178   :  { %137 = vst.msk [vmem:[#allocation5 + $0x58] sm:$0xff] %vm9475_vm12, %v9690_v34  ;;  %138 = vst.msk [vmem:[#allocation5 + $0x60] sm:$0xff] %vm9475_vm12, %v9690_v34 }
 0x179   :  { %139 = vst.msk [vmem:[#allocation5 + $0x68] sm:$0xff] %vm9475_vm12, %v9690_v34  ;;  %140 = vst.msk [vmem:[#allocation5 + $0x70] sm:$0xff] %vm9475_vm12, %v9690_v34 }
 0x17a   :  { %141 = vst.msk [vmem:[#allocation5 + $0x78] sm:$0xff] %vm9475_vm12, %v9690_v34  ;;  %142 = vst.msk [vmem:[#allocation5 + $0x80] sm:$0xff] %vm9475_vm12, %v9690_v34  ;;  %5583 = vmatmul.mubr.f32.gmra.mrb[24].mxu0 %v9650_v30 }
 0x17b   :  { %143 = vst.msk [vmem:[#allocation5 + $0x88] sm:$0xff] %vm9475_vm12, %v9690_v34  ;;  %144 = vst.msk [vmem:[#allocation5 + $0x90] sm:$0xff] %vm9475_vm12, %v9690_v34  ;;  %5584 = vmatprep.mubr.f32.mxu0 %v6951_v10 }
 0x17c   :  { %145 = vst.msk [vmem:[#allocation5 + $0x98] sm:$0xff] %vm9475_vm12, %v9690_v34  ;;  %146 = vst.msk [vmem:[#allocation5 + $0xa0] sm:$0xff] %vm9475_vm12, %v9690_v34 }
 0x17d   :  { %147 = vst.msk [vmem:[#allocation5 + $0xa8] sm:$0xff] %vm9475_vm12, %v9690_v34  ;;  %148 = vst.msk [vmem:[#allocation5 + $0xb0] sm:$0xff] %vm9475_vm12, %v9690_v34 }
 0x17e   :  { %149 = vst.msk [vmem:[#allocation5 + $0xb8] sm:$0xff] %vm9475_vm12, %v9690_v34  ;;  %150 = vst.msk [vmem:[#allocation5 + $0xc0] sm:$0xff] %vm9475_vm12, %v9690_v34  ;;  %5585 = vmatmul.mubr.f32.gmra.mrb[26].mxu0 %v6951_v10 }
 0x17f   :  { %151 = vst.msk [vmem:[#allocation5 + $0xc8] sm:$0xff] %vm9475_vm12, %v9690_v34  ;;  %152 = vst.msk [vmem:[#allocation5 + $0xd0] sm:$0xff] %vm9475_vm12, %v9690_v34  ;;  %5586 = vmatprep.mubr.f32.mxu0 %v9653_v11 }
 0x180   :  { %153 = vst.msk [vmem:[#allocation5 + $0xd8] sm:$0xff] %vm9475_vm12, %v9690_v34  ;;  %154 = vst.msk [vmem:[#allocation5 + $0xe0] sm:$0xff] %vm9475_vm12, %v9690_v34 }
 0x181   :  { %155 = vst.msk [vmem:[#allocation5 + $0xe8] sm:$0xff] %vm9475_vm12, %v9690_v34  ;;  %156 = vst.msk [vmem:[#allocation5 + $0xf0] sm:$0xff] %vm9475_vm12, %v9690_v34 }
 0x182   :  { %157 = vst.msk [vmem:[#allocation5 + $0xf8] sm:$0xff] %vm9475_vm12, %v9690_v34  ;;  %vm4152_vm0 = vmand %vm3540_vm6, %vm9494_vm2  ;;  %5587 = vmatmul.mubr.f32.gmra.mrb[28].mxu0 %v9653_v11  ;;  %v9774_v11 = vld [vmem:[#allocation54_spill] sm:$0xff] }
 0x183   :  { %vm8094_vm12 = vmand %vm3347_vm14, %vm9479_vm13  ;;  %v4216_v41 = vsel %vm4152_vm0, 1.0, %v9690_v34  ;;  %vm9478_vm0 = vcmp.eq.s32.totalorder %v7806_v54, %v7682_v60  ;;  %vm9713_vm13 = vcmp.eq.s32.totalorder %v7759_v13, %v7682_v60  ;;  %v3266_v13 = vadd.s32 120, %v7655_v23  ;;  %5588 = vmatprep.mubr.f32.mxu0 %v9657_v47 }
 0x184   :  { %v9707_v29 = vsel %vm8094_vm12, 4294967295, %v9706_v29  ;;  %4288 = vadd.xlane.f32.xlu0 %v4216_v41  ;;  %vm4142_vm6 = vmand %vm3530_vm15, %vm9494_vm2  ;;  %vm3351_vm15 = vcmp.ne.s32.totalorder %v3264_v5, %v7678_v59  ;;  %v9711_v41 = vld [vmem:[#allocation29_spill] sm:$0xff] }
 0x185   :  { %v4206_v3 = vsel %vm4142_vm6, 1.0, %v9690_v34  ;;  %vm8116_vm14 = vmand %vm3337_vm5, %vm9478_vm0  ;;  %5274 = vmatprep.mubr.f32.mxu1 %v9711_v41  ;;  %vm9712_vm6 = vcmp.eq.s32.totalorder %v7786_v40, %v7682_v60  ;;  %vm9481_vm0 = vcmp.eq.s32.totalorder %v3463_v38, %v7682_v60  ;;  %v9714_v40 = vmov 0 }
 0x186   :  { %vm4156_vm5 = vmand %vm9712_vm6, %vm9494_vm2  ;;  %4273 = vadd.xlane.f32.xlu1 %v4206_v3  ;;  %v3454_v3 = vpop.permute.xlu0 %3453  ;;  %5275 = vmatmul.mubr.f32.gmra.mrb[4].mxu1 %v9711_v41  ;;  %vm9720_vm6 = vcmp.eq.s32.totalorder %v3457_v32, %v7682_v60  ;;  %v3263_v41 = vadd.s32 96, %v7655_v23  ;;  %v9722_v32 = vld [vmem:[#allocation33_spill] sm:$0xff] }
 0x187   :  { %v4220_v1 = vsel %vm4156_vm5, 1.0, %v9690_v34  ;;  %vm4146_vm12 = vmand %vm9713_vm13, %vm9494_vm2  ;;  %vm9482_vm13 = vcmp.eq.s32.totalorder %v3448_v19, %v7682_v60  ;;  %5276 = vmatprep.mubr.f32.mxu1 %v9717_v45  ;;  %5589 = vmatmul.mubr.f32.gmra.mrb[30].mxu0 %v9657_v47  ;;  %v9776_v47 = vld [vmem:[#allocation56_spill] sm:$0xff] }
 0x188   :  { %vm8141_vm9 = vmand %vm3351_vm15, %vm9481_vm0  ;;  %4294 = vadd.xlane.f32.xlu0 %v4220_v1  ;;  %v4210_v5 = vsel %vm4146_vm12, 1.0, %v9690_v34  ;;  %vm3345_vm12 = vcmp.ne.s32.totalorder %v3261_v4, %v7678_v59  ;;  %vm3355_vm0 = vcmp.ne.s32.totalorder %v3266_v13, %v7678_v59  ;;  %v3469_v1 = vpop.permute.xlu1 %3468  ;;  %v9723_v4 = vmov 0  ;;  %5590 = vmatprep.mubr.f32.mxu0 %v9661_v0 }
 0x189   :  { %v9715_v40 = vsel %vm8141_vm9, 4294967295, %v9714_v40  ;;  %vm8154_vm15 = vmand %vm3341_vm8, %vm9482_vm13  ;;  %vm9721_vm8 = vcmp.eq.s32.totalorder %v7806_v54, %v7682_v60  ;;  %vm9483_vm9 = vcmp.eq.s32.totalorder %v3454_v3, %v7682_v60  ;;  %v9725_v54 = vmov 0 }
 0x18a   :  { %9716 = vst [vmem:[#allocation52_spill] sm:$0xff] %v9715_v40  ;;  %v9718_v40 = vmov 0  ;;  %4279 = vadd.xlane.f32.xlu1 %v4210_v5  ;;  %vm4160_vm5 = vmand %vm9720_vm6, %vm9494_vm2  ;;  %5277 = vmatmul.mubr.f32.gmra.mrb[6].mxu1 %v9717_v45  ;;  %v3460_v5 = vpop.permute.xlu0 %3459  ;;  %v3265_v13 = vadd.s32 112, %v7655_v23  ;;  %v9727_v45 = vld [vmem:[#allocation35_spill] sm:$0xff] }
 0x18b   :  { %v9719_v40 = vsel %vm8154_vm15, 4294967295, %v9718_v40  ;;  %v4224_v62 = vsel %vm4160_vm5, 1.0, %v9690_v34  ;;  %vm4150_vm13 = vmand %vm9721_vm8, %vm9494_vm2  ;;  %5278 = vmatprep.mubr.f32.mxu1 %v9722_v32  ;;  %vm9484_vm5 = vcmp.eq.s32.totalorder %v3469_v1, %v7682_v60  ;;  %5591 = vmatmul.mubr.f32.gmra.mrb[32].mxu0 %v9661_v0 }
 0x18c   :  { %v4214_v57 = vsel %vm4150_vm13, 1.0, %v9690_v34  ;;  %vm8179_vm6 = vmand %vm3345_vm12, %vm9483_vm9  ;;  %4300 = vadd.xlane.f32.xlu0 %v4224_v62  ;;  %vm3349_vm13 = vcmp.ne.s32.totalorder %v3263_v41, %v7678_v59  ;;  %vm9728_vm12 = vcmp.eq.s32.totalorder %v3463_v38, %v7682_v60  ;;  %vm9729_vm9 = vcmp.eq.s32.totalorder %v3448_v19, %v7682_v60  ;;  %v9732_v19 = vld [vmem:[#allocation37_spill] sm:$0xff]  ;;  %5592 = vmatprep.mubr.f32.mxu0 %v7087_v52 }
 0x18d   :  { %v9724_v4 = vsel %vm8179_vm6, 4294967295, %v9723_v4  ;;  %vm8186_vm8 = vmand %vm3355_vm0, %vm9484_vm5  ;;  %v9730_v41 = vmov 0 }
 0x18e   :  { %4285 = vadd.xlane.f32.xlu1 %v4214_v57  ;;  %v9726_v54 = vsel %vm8186_vm8, 4294967295, %v9725_v54  ;;  %5279 = vmatmul.mubr.f32.gmra.mrb[8].mxu1 %v9722_v32  ;;  %vm4164_vm0 = vmand %vm9728_vm12, %vm9494_vm2  ;;  %vm9485_vm8 = vcmp.eq.s32.totalorder %v3460_v5, %v7682_v60  ;;  %v3466_v38 = vpop.permute.xlu0 %3465  ;;  %vm3353_vm12 = vcmp.ne.s32.totalorder %v3265_v13, %v7678_v59  ;;  %v3475_v32 = vpop.permute.xlu1 %3474  ;;  %v9737_v13 = vld [vmem:[#allocation38_spill] sm:$0xff] }
 0x18f   :  { %5280 = vmatprep.mubr.f32.mxu1 %v9727_v45  ;;  %v4228_v62 = vsel %vm4164_vm0, 1.0, %v9690_v34  ;;  %vm4154_vm5 = vmand %vm9729_vm9, %vm9494_vm2  ;;  %vm9733_vm9 = vcmp.eq.s32.totalorder %v3469_v1, %v7682_v60  ;;  %vm9734_vm0 = vcmp.eq.s32.totalorder %v3454_v3, %v7682_v60  ;;  %5593 = vmatmul.mubr.f32.gmra.mrb[34].mxu0 %v7087_v52  ;;  %v9778_v52 = vld [vmem:[#allocation58_spill] sm:$0xff] }
 0x190   :  { %4306 = vadd.xlane.f32.xlu0 %v4228_v62  ;;  %v4218_v55 = vsel %vm4154_vm5, 1.0, %v9690_v34  ;;  %vm8209_vm6 = vmand %vm3349_vm13, %vm9485_vm8  ;;  %vm3560_vm13 = vcmp.eq.s32.totalorder %v3475_v32, %v7682_v60  ;;  %5594 = vmatprep.mubr.f32.mxu0 %v7117_v9 }
 0x191   :  { %v9731_v41 = vsel %vm8209_vm6, 4294967295, %v9730_v41  ;;  %vm4168_vm5 = vmand %vm9733_vm9, %vm9494_vm2  ;;  %vm3554_vm6 = vcmp.eq.s32.totalorder %v3466_v38, %v7682_v60 }
 0x192   :  { %5281 = vmatmul.mubr.f32.gmra.mrb[10].mxu1 %v9727_v45  ;;  %4291 = vadd.xlane.f32.xlu1 %v4218_v55  ;;  %v4232_v57 = vsel %vm4168_vm5, 1.0, %v9690_v34  ;;  %vm4158_vm8 = vmand %vm9734_vm0, %vm9494_vm2  ;;  %v3472_v45 = vpop.permute.xlu0 %3471  ;;  %v9741_v55 = vld [vmem:[#allocation40_spill] sm:$0xff] }
 0x193   :  { %5282 = vmatprep.mubr.f32.mxu1 %v9732_v19  ;;  %v4222_v58 = vsel %vm4158_vm8, 1.0, %v9690_v34  ;;  %vm8232_vm15 = vmand %vm3353_vm12, %vm3554_vm6  ;;  %vm9740_vm8 = vcmp.eq.s32.totalorder %v3460_v5, %v7682_v60  ;;  %v9742_v5 = vmov 0  ;;  %5595 = vmatmul.mubr.f32.gmra.mrb[36].mxu0 %v7117_v9  ;;  %v9779_v9 = vld [vmem:[#allocation59_spill] sm:$0xff] }
 0x194   :  { %4312 = vadd.xlane.f32.xlu0 %v4232_v57  ;;  %vm8242_vm9 = vmand %vm3560_vm13, %vm9494_vm2  ;;  %vm3558_vm13 = vcmp.eq.s32.totalorder %v3472_v45, %v7682_v60  ;;  %v9747_v45 = vmov 0  ;;  %5596 = vmatprep.mubr.f32.mxu0 %v7132_v25 }
 0x195   :  { %v4236_v62 = vsel %vm8242_vm9, 1.0, %v9690_v34  ;;  %vm4162_vm12 = vmand %vm9740_vm8, %vm9494_vm2 }
 0x196   :  { %5283 = vmatmul.mubr.f32.gmra.mrb[12].mxu1 %v9732_v19  ;;  %4297 = vadd.xlane.f32.xlu1 %v4222_v58  ;;  %v4226_v7 = vsel %vm4162_vm12, 1.0, %v9690_v34  ;;  %vm4166_vm5 = vmand %vm3554_vm6, %vm9494_vm2  ;;  %v3481_v19 = vpop.permute.xlu1 %3480  ;;  %v3478_v38 = vpop.permute.xlu0 %3477  ;;  %v9746_v58 = vld [vmem:[#allocation42_spill] sm:$0xff] }
 0x197   :  { %5284 = vmatprep.mubr.f32.mxu1 %v9737_v13  ;;  %vm3564_vm0 = vcmp.eq.s32.totalorder %v3481_v19, %v7682_v60  ;;  %v4230_v36 = vsel %vm4166_vm5, 1.0, %v9690_v34  ;;  %vm3562_vm6 = vcmp.eq.s32.totalorder %v3478_v38, %v7682_v60  ;;  %vm8279_vm12 = vmand %vm3558_vm13, %vm9494_vm2  ;;  %v9752_v38 = vmov 0  ;;  %5597 = vmatmul.mubr.f32.gmra.mrb[38].mxu0 %v7132_v25  ;;  %v9780_v25 = vld [vmem:[#allocation60_spill] sm:$0xff] }
 0x198   :  { %4318 = vadd.xlane.f32.xlu0 %v4236_v62  ;;  %vm8266_vm8 = vmand %vm3564_vm0, %vm9494_vm2  ;;  %v4234_v12 = vsel %vm8279_vm12, 1.0, %v9690_v34  ;;  %v9749_v62 = vmov 0  ;;  %5598 = vmatprep.mubr.f32.mxu0 %v7147_v18 }
 0x199   :  { %v9743_v5 = vsel %vm8266_vm8, 4294967295, %v9742_v5  ;;  %v4240_v32 = vsel %vm8266_vm8, 1.0, %v9690_v34  ;;  %vm8291_vm0 = vmand %vm3562_vm6, %vm9494_vm2 }
 0x19a   :  { %5285 = vmatmul.mubr.f32.gmra.mrb[14].mxu1 %v9737_v13  ;;  %4303 = vadd.xlane.f32.xlu1 %v4226_v7  ;;  %v3487_v13 = vpop.permute.xlu1 %3486  ;;  %v9748_v45 = vsel %vm8291_vm0, 4294967295, %v9747_v45  ;;  %v9751_v7 = vld [vmem:[#allocation44_spill] sm:$0xff]  ;;  %v3484_v19 = vpop.permute.xlu0 %3483  ;;  %v4238_v24 = vsel %vm8291_vm0, 1.0, %v9690_v34 }
 0x19b   :  { %5286 = vmatprep.mubr.f32.mxu1 %v9741_v55  ;;  %vm3568_vm5 = vcmp.eq.s32.totalorder %v3487_v13, %v7682_v60  ;;  %vm3566_vm6 = vcmp.eq.s32.totalorder %v3484_v19, %v7682_v60  ;;  %v9759_v19 = vld [vmem:[#allocation48_spill] sm:$0xff]  ;;  %5599 = vmatmul.mubr.f32.gmra.mrb[40].mxu0 %v7147_v18  ;;  %v9781_v18 = vld [vmem:[#allocation61_spill] sm:$0xff] }
 0x19c   :  { %4324 = vadd.xlane.f32.xlu0 %v4240_v32  ;;  %vm8299_vm13 = vmand %vm3568_vm5, %vm9494_vm2  ;;  %v9754_v32 = vmov 0  ;;  %5600 = vmatprep.mubr.f32.mxu0 %v7177_v22 }
 0x19d   :  { %v9750_v62 = vsel %vm8299_vm13, 4294967295, %v9749_v62  ;;  %vm8315_vm5 = vmand %vm3566_vm6, %vm9494_vm2 }
 0x19e   :  { %5287 = vmatmul.mubr.f32.gmra.mrb[16].mxu1 %v9741_v55  ;;  %4309 = vadd.xlane.f32.xlu1 %v4230_v36  ;;  %v4244_v55 = vsel %vm8299_vm13, 1.0, %v9690_v34  ;;  %v3493_v36 = vpop.permute.xlu1 %3492  ;;  %v9753_v38 = vsel %vm8315_vm5, 4294967295, %v9752_v38  ;;  %v4242_v14 = vsel %vm8315_vm5, 1.0, %v9690_v34 }
 0x19f   :  { %5288 = vmatprep.mubr.f32.mxu1 %v9746_v58  ;;  %vm3572_vm8 = vcmp.eq.s32.totalorder %v3493_v36, %v7682_v60  ;;  %5601 = vmatmul.mubr.f32.gmra.mrb[42].mxu0 %v7177_v22  ;;  %v9782_v22 = vld [vmem:[#allocation62_spill] sm:$0xff] }
 0x1a0   :  { %4330 = vadd.xlane.f32.xlu0 %v4244_v55  ;;  %vm8323_vm13 = vmand %vm3572_vm8, %vm9494_vm2  ;;  %v9757_v55 = vmov 0  ;;  %5602 = vmatprep.mubr.f32.mxu0 %v7196_v51 }
 0x1a1   :  { %v9755_v32 = vsel %vm8323_vm13, 4294967295, %v9754_v32  ;;  %v4248_v13 = vsel %vm8323_vm13, 1.0, %v9690_v34 }
 0x1a2   :  { %5289 = vmatmul.mubr.f32.gmra.mrb[18].mxu1 %v9746_v58  ;;  %4315 = vadd.xlane.f32.xlu1 %v4234_v12  ;;  %v9756_v58 = vld [vmem:[#allocation47_spill] sm:$0xff]  ;;  %v3499_v12 = vpop.permute.xlu1 %3498 }
 0x1a3   :  { %5290 = vmatprep.mubr.f32.mxu1 %v9751_v7  ;;  %vm3576_vm6 = vcmp.eq.s32.totalorder %v3499_v12, %v7682_v60  ;;  %v9762_v12 = vmov 0  ;;  %5603 = vmatmul.mubr.f32.gmra.mrb[44].mxu0 %v7196_v51  ;;  %v9783_v51 = vld [vmem:[#allocation63_spill] sm:$0xff] }
 0x1a4   :  { %4336 = vadd.xlane.f32.xlu0 %v4248_v13  ;;  %vm8341_vm8 = vmand %vm3576_vm6, %vm9494_vm2  ;;  %5604 = vmatprep.mubr.f32.mxu0 %v7203_v33 }
 0x1a5   :  { %v9758_v55 = vsel %vm8341_vm8, 4294967295, %v9757_v55  ;;  %v4252_v36 = vsel %vm8341_vm8, 1.0, %v9690_v34 }
 0x1a6   :  { %5291 = vmatmul.mubr.f32.gmra.mrb[20].mxu1 %v9751_v7  ;;  %4321 = vadd.xlane.f32.xlu1 %v4238_v24  ;;  %v3490_v7 = vpop.permute.xlu0 %3489  ;;  %v9760_v24 = vmov 0  ;;  %v3505_v56 = vpop.permute.xlu1 %3504 }
 0x1a7   :  { %5292 = vmatprep.mubr.f32.mxu1 %v9756_v58  ;;  %vm3570_vm0 = vcmp.eq.s32.totalorder %v3490_v7, %v7682_v60  ;;  %vm3580_vm6 = vcmp.eq.s32.totalorder %v3505_v56, %v7682_v60  ;;  %v9764_v7 = vld [vmem:[#allocation50_spill] sm:$0xff]  ;;  %5605 = vmatmul.mubr.f32.gmra.mrb[46].mxu0 %v7203_v33  ;;  %v9784_v33 = vld [vmem:[#allocation64_spill] sm:$0xff] }
 0x1a8   :  { %vm8352_vm13 = vmand %vm3570_vm0, %vm9494_vm2  ;;  %4342 = vadd.xlane.f32.xlu0 %v4252_v36  ;;  %5606 = vmatprep.mubr.f32.mxu0 %v7222_v61 }
 0x1a9   :  { %v9761_v24 = vsel %vm8352_vm13, 4294967295, %v9760_v24  ;;  %v4246_v13 = vsel %vm8352_vm13, 1.0, %v9690_v34  ;;  %vm8365_vm0 = vmand %vm3580_vm6, %vm9494_vm2 }
 0x1aa   :  { %5293 = vmatmul.mubr.f32.gmra.mrb[22].mxu1 %v9756_v58  ;;  %4327 = vadd.xlane.f32.xlu1 %v4242_v14  ;;  %v3496_v58 = vpop.permute.xlu0 %3495  ;;  %v9763_v12 = vsel %vm8365_vm0, 4294967295, %v9762_v12  ;;  %v4256_v14 = vsel %vm8365_vm0, 1.0, %v9690_v34  ;;  %v3511_v30 = vpop.permute.xlu1 %3510 }
 0x1ab   :  { %5294 = vmatprep.mubr.f32.mxu1 %v9759_v19  ;;  %vm3574_vm5 = vcmp.eq.s32.totalorder %v3496_v58, %v7682_v60  ;;  %vm3584_vm6 = vcmp.eq.s32.totalorder %v3511_v30, %v7682_v60  ;;  %v9767_v58 = vmov 0  ;;  %5607 = vmatmul.mubr.f32.gmra.mrb[48].mxu0 %v7222_v61  ;;  %v4652_v61 = vld [vmem:[#allocation5 + $0x8] sm:$0xff] }
 0x1ac   :  { %vm8376_vm8 = vmand %vm3574_vm5, %vm9494_vm2  ;;  %4348 = vadd.xlane.f32.xlu0 %v4256_v14  ;;  %5608 = vmatprep.mubr.f32.mxu0 %v7247_v50 }
 0x1ad   :  { %v4250_v56 = vsel %vm8376_vm8, 1.0, %v9690_v34  ;;  %vm8389_vm5 = vmand %vm3584_vm6, %vm9494_vm2 }
 0x1ae   :  { %5295 = vmatmul.mubr.f32.gmra.mrb[24].mxu1 %v9759_v19  ;;  %v9765_v19 = vmov 0  ;;  %4333 = vadd.xlane.f32.xlu1 %v4246_v13  ;;  %v3502_v36 = vpop.permute.xlu0 %3501  ;;  %v9768_v58 = vsel %vm8389_vm5, 4294967295, %v9767_v58  ;;  %v9769_v13 = vld [vmem:[#allocation51_spill] sm:$0xff]  ;;  %v4260_v14 = vsel %vm8389_vm5, 1.0, %v9690_v34 }
 0x1af   :  { %5296 = vmatprep.mubr.f32.mxu1 %v9764_v7  ;;  %v9766_v19 = vsel %vm8376_vm8, 4294967295, %v9765_v19  ;;  %vm3578_vm13 = vcmp.eq.s32.totalorder %v3502_v36, %v7682_v60  ;;  %v9772_v36 = vmov 0  ;;  %5609 = vmatmul.mubr.f32.gmra.mrb[50].mxu0 %v7247_v50 }
 0x1b0   :  { %vm8400_vm0 = vmand %vm3578_vm13, %vm9494_vm2  ;;  %4354 = vadd.xlane.f32.xlu0 %v4260_v14  ;;  %5610 = vmatprep.mubr.f32.mxu0 %v7264_v63  ;;  %v4658_v14 = vld [vmem:[#allocation5 + $0x38] sm:$0xff] }
 0x1b1   :  { %v4254_v30 = vsel %vm8400_vm0, 1.0, %v9690_v34 }
 0x1b2   :  { %5297 = vmatmul.mubr.f32.gmra.mrb[26].mxu1 %v9764_v7  ;;  %v9770_v7 = vmov 0  ;;  %4339 = vadd.xlane.f32.xlu1 %v4250_v56  ;;  %v3508_v10 = vpop.permute.xlu0 %3507 }
 0x1b3   :  { %5298 = vmatprep.mubr.f32.mxu1 %v9769_v13  ;;  %v9771_v7 = vsel %vm8400_vm0, 4294967295, %v9770_v7  ;;  %vm3582_vm6 = vcmp.eq.s32.totalorder %v3508_v10, %v7682_v60  ;;  %5611 = vmatmul.mubr.f32.gmra.mrb[52].mxu0 %v7264_v63 }
 0x1b4   :  { %vm8414_vm13 = vmand %vm3582_vm6, %vm9494_vm2  ;;  %5612 = vmatprep.mubr.f32.mxu0 %v7281_v53  ;;  %vm9785_vm6 = vcmask 7168  }
 0x1b5   :  { %v9773_v36 = vsel %vm8414_vm13, 4294967295, %v9772_v36  ;;  %v4258_v56 = vsel %vm8414_vm13, 1.0, %v9690_v34  ;;  %vm9786_vm2 = vmmov %vm9785_vm6 }
 0x1b6   :  { %5299 = vmatmul.mubr.f32.gmra.mrb[28].mxu1 %v9769_v13  ;;  %4345 = vadd.xlane.f32.xlu1 %v4254_v30  ;;  %v4651_v13 = vld [vmem:[#allocation5] sm:$0xff]  ;;  %vm9787_vm5 = vmmov %vm9786_vm2 }
 0x1b7   :  { %5300 = vmatprep.mubr.f32.mxu1 %v7055_v2  ;;  %5613 = vmatmul.mubr.f32.gmra.mrb[54].mxu0 %v7281_v53  ;;  %v4654_v53 = vld [vmem:[#allocation5 + $0x18] sm:$0xff]  ;;  %vm9788_vm13 = vmmov %vm9786_vm2 }
 0x1b8   :  { %5614 = vmatprep.mubr.f32.mxu0 %v7287_v27  ;;  %vm9793_vm0 = vmmov %vm9786_vm2 }
 0x1b9   :  { %vm9809_vm8 = vmmov %vm9793_vm0 }
 0x1ba   :  { %5301 = vmatmul.mubr.f32.gmra.mrb[30].mxu1 %v7055_v2  ;;  %4351 = vadd.xlane.f32.xlu1 %v4258_v56  ;;  %v9775_v2 = vld [vmem:[#allocation55_spill] sm:$0xff]  ;;  %v4653_v56 = vld [vmem:[#allocation5 + $0x10] sm:$0xff] }
 0x1bb   :  { %5302 = vmatprep.mubr.f32.mxu1 %v7082_v39  ;;  %5615 = vmatmul.mubr.f32.gmra.mrb[56].mxu0 %v7287_v27 }
 0x1bc   :  { %5616 = vmatprep.mubr.f32.mxu0 %v7315_v15 }
 0x1be   :  { %5303 = vmatmul.mubr.f32.gmra.mrb[32].mxu1 %v7082_v39  ;;  %v9777_v39 = vld [vmem:[#allocation57_spill] sm:$0xff] }
 0x1bf   :  { %5304 = vmatprep.mubr.f32.mxu1 %v9774_v11  ;;  %5617 = vmatmul.mubr.f32.gmra.mrb[58].mxu0 %v7315_v15 }
 0x1c0   :  { %5618 = vmatprep.mubr.f32.mxu0 %v7332_v37 }
 0x1c2   :  { %5305 = vmatmul.mubr.f32.gmra.mrb[34].mxu1 %v9774_v11  ;;  %v4660_v11 = vld [vmem:[#allocation5 + $0x48] sm:$0xff] }
 0x1c3   :  { %5306 = vmatprep.mubr.f32.mxu1 %v9775_v2  ;;  %5619 = vmatmul.mubr.f32.gmra.mrb[60].mxu0 %v7332_v37  ;;  %v8491_v37 = vpop.permute.xlu1 %3516 }
 0x1c4   :  { %5620 = vmatprep.mubr.f32.mxu0 %v7346_v31 }
 0x1c6   :  { %5307 = vmatmul.mubr.f32.gmra.mrb[36].mxu1 %v9775_v2 }
 0x1c7   :  { %5308 = vmatprep.mubr.f32.mxu1 %v9776_v47  ;;  %5621 = vmatmul.mubr.f32.gmra.mrb[62].mxu0 %v7346_v31 }
 0x1ca   :  { %5309 = vmatmul.mubr.f32.gmra.mrb[38].mxu1 %v9776_v47 }
 0x1cb   :  { %5310 = vmatprep.mubr.f32.mxu1 %v9777_v39 }
 0x1ce   :  { %5311 = vmatmul.mubr.f32.gmra.mrb[40].mxu1 %v9777_v39 }
 0x1cf   :  { %5312 = vmatprep.mubr.f32.mxu1 %v9778_v52 }
 0x1d2   :  { %5313 = vmatmul.mubr.f32.gmra.mrb[42].mxu1 %v9778_v52  ;;  %v4655_v52 = vld [vmem:[#allocation5 + $0x20] sm:$0xff] }
 0x1d3   :  { %5314 = vmatprep.mubr.f32.mxu1 %v9779_v9 }
 0x1d6   :  { %5315 = vmatmul.mubr.f32.gmra.mrb[44].mxu1 %v9779_v9 }
 0x1d7   :  { %5316 = vmatprep.mubr.f32.mxu1 %v9780_v25 }
 0x1da   :  { %5317 = vmatmul.mubr.f32.gmra.mrb[46].mxu1 %v9780_v25 }
 0x1db   :  { %5318 = vmatprep.mubr.f32.mxu1 %v9781_v18 }
 0x1de   :  { %5319 = vmatmul.mubr.f32.gmra.mrb[48].mxu1 %v9781_v18 }
 0x1df   :  { %5320 = vmatprep.mubr.f32.mxu1 %v9782_v22 }
 0x1e2   :  { %5321 = vmatmul.mubr.f32.gmra.mrb[50].mxu1 %v9782_v22  ;;  %v4657_v22 = vld [vmem:[#allocation5 + $0x30] sm:$0xff] }
 0x1e3   :  { %5322 = vmatprep.mubr.f32.mxu1 %v9783_v51 }
 0x1e6   :  { %5323 = vmatmul.mubr.f32.gmra.mrb[52].mxu1 %v9783_v51  ;;  %v4662_v51 = vld [vmem:[#allocation5 + $0x58] sm:$0xff] }
 0x1e7   :  { %5324 = vmatprep.mubr.f32.mxu1 %v9784_v33 }
 0x1ea   :  { %5325 = vmatmul.mubr.f32.gmra.mrb[54].mxu1 %v9784_v33 }
 0x1eb   :  { %5326 = vmatprep.mubr.f32.mxu1 %v7305_v35 }
 0x1ee   :  { %5327 = vmatmul.mubr.f32.gmra.mrb[56].mxu1 %v7305_v35  ;;  %v8485_v35 = vpop.permute.xlu0 %3513 }
 0x1ef   :  { %5328 = vmatprep.mubr.f32.mxu1 %v7330_v42 }
 0x1f2   :  { %5329 = vmatmul.mubr.f32.gmra.mrb[58].mxu1 %v7330_v42  ;;  %v4271_v50 = vpop.xlane.xlu0 %4270  ;;  %v4656_v42 = vld [vmem:[#allocation5 + $0x28] sm:$0xff] }
 0x1f3   :  { %5330 = vmatprep.mubr.f32.mxu1 %v7344_v46  ;;  %v4684_v63 = vadd.f32 %v4652_v61, %v4271_v50 }
 0x1f5   :  { %4716 = vst.msk [vmem:[#allocation5 + $0x8] sm:$0xff] %vm9785_vm6, %v4684_v63  ;;  %vm9789_vm6 = vmmov %vm9786_vm2 }
 0x1f6   :  { %5331 = vmatmul.mubr.f32.gmra.mrb[60].mxu1 %v7344_v46  ;;  %v4277_v27 = vpop.xlane.xlu0 %4276 }
 0x1f7   :  { %5332 = vmatprep.mubr.f32.mxu1 %v7357_v21  ;;  %v4686_v15 = vadd.f32 %v4654_v53, %v4277_v27  ;;  %v4664_v53 = vld [vmem:[#allocation5 + $0x68] sm:$0xff] }
 0x1f9   :  { %4718 = vst.msk [vmem:[#allocation5 + $0x18] sm:$0xff] %vm9786_vm2, %v4686_v15  ;;  %v4659_v15 = vld [vmem:[#allocation5 + $0x40] sm:$0xff] }
 0x1fa   :  { %5333 = vmatmul.mubr.f32.gmra.mrb[62].mxu1 %v7357_v21  ;;  %v4283_v46 = vpop.xlane.xlu0 %4282  ;;  %v4268_v21 = vpop.xlane.xlu1 %4267 }
 0x1fb   :  { %v4688_v0 = vadd.f32 %v4656_v42, %v4283_v46  ;;  %v4683_v31 = vadd.f32 %v4651_v13, %v4268_v21  ;;  %v4666_v46 = vld [vmem:[#allocation5 + $0x78] sm:$0xff] }
 0x1fd   :  { %4720 = vst.msk [vmem:[#allocation5 + $0x28] sm:$0xff] %vm9787_vm5, %v4688_v0  ;;  %vm9790_vm5 = vmmov %vm9786_vm2 }
 0x1fe   :  { %4715 = vst.msk [vmem:[#allocation5] sm:$0xff] %vm9788_vm13, %v4683_v31  ;;  %vm9791_vm13 = vmmov %vm9786_vm2  ;;  %v4661_v31 = vld [vmem:[#allocation5 + $0x50] sm:$0xff] }
 0x211   :  { %v4289_v10 = vpop.xlane.xlu0 %4288 }
 0x212   :  { %v4690_v30 = vadd.f32 %v4658_v14, %v4289_v10  ;;  %v4668_v10 = vld [vmem:[#allocation5 + $0x88] sm:$0xff] }
 0x213   :  { %v4274_v2 = vpop.xlane.xlu1 %4273 }
 0x214   :  { %4722 = vst.msk [vmem:[#allocation5 + $0x38] sm:$0xff] %vm9789_vm6, %v4690_v30  ;;  %v4685_v47 = vadd.f32 %v4653_v56, %v4274_v2  ;;  %vm9792_vm6 = vmmov %vm9786_vm2  ;;  %v4663_v2 = vld [vmem:[#allocation5 + $0x60] sm:$0xff] }
 0x215   :  { %v4295_v39 = vpop.xlane.xlu0 %4294 }
 0x216   :  { %v4692_v9 = vadd.f32 %v4660_v11, %v4295_v39  ;;  %4717 = vst.msk [vmem:[#allocation5 + $0x10] sm:$0xff] %vm9786_vm2, %v4685_v47  ;;  %vm9794_vm2 = vmmov %vm9793_vm0 }
 0x217   :  { %v4280_v25 = vpop.xlane.xlu1 %4279 }
 0x218   :  { %4724 = vst.msk [vmem:[#allocation5 + $0x48] sm:$0xff] %vm9790_vm5, %v4692_v9  ;;  %v4687_v18 = vadd.f32 %v4655_v52, %v4280_v25  ;;  %vm9795_vm5 = vmmov %vm9793_vm0  ;;  %v4665_v9 = vld [vmem:[#allocation5 + $0x70] sm:$0xff]  ;;  %v4670_v25 = vld [vmem:[#allocation5 + $0x98] sm:$0xff] }
 0x219   :  { %v4301_v61 = vpop.xlane.xlu0 %4300 }
 0x21a   :  { %4719 = vst.msk [vmem:[#allocation5 + $0x20] sm:$0xff] %vm9791_vm13, %v4687_v18  ;;  %v4694_v63 = vadd.f32 %v4662_v51, %v4301_v61  ;;  %vm9796_vm13 = vmmov %vm9793_vm0  ;;  %v4667_v61 = vld [vmem:[#allocation5 + $0x80] sm:$0xff] }
 0x21b   :  { %v4286_v33 = vpop.xlane.xlu1 %4285 }
 0x21c   :  { %v4689_v50 = vadd.f32 %v4657_v22, %v4286_v33  ;;  %4726 = vst.msk [vmem:[#allocation5 + $0x58] sm:$0xff] %vm9793_vm0, %v4694_v63 }
 0x21d   :  { %v4307_v27 = vpop.xlane.xlu0 %4306 }
 0x21e   :  { %4721 = vst.msk [vmem:[#allocation5 + $0x30] sm:$0xff] %vm9792_vm6, %v4689_v50  ;;  %v4696_v42 = vadd.f32 %v4664_v53, %v4307_v27  ;;  %vm9797_vm6 = vmmov %vm9793_vm0  ;;  %v4672_v50 = vld [vmem:[#allocation5 + $0xa8] sm:$0xff] }
 0x21f   :  { %v4292_v0 = vpop.xlane.xlu1 %4291 }
 0x220   :  { %4728 = vst.msk [vmem:[#allocation5 + $0x68] sm:$0xff] %vm9794_vm2, %v4696_v42  ;;  %v4691_v13 = vadd.f32 %v4659_v15, %v4292_v0  ;;  %vm9798_vm2 = vmmov %vm9793_vm0  ;;  %v4669_v42 = vld [vmem:[#allocation5 + $0x90] sm:$0xff] }
 0x221   :  { %v4313_v21 = vpop.xlane.xlu0 %4312 }
 0x222   :  { %v4698_v14 = vadd.f32 %v4666_v46, %v4313_v21  ;;  %4723 = vst.msk [vmem:[#allocation5 + $0x40] sm:$0xff] %vm9795_vm5, %v4691_v13  ;;  %vm9799_vm5 = vmmov %vm9793_vm0  ;;  %v4674_v46 = vld [vmem:[#allocation5 + $0xb8] sm:$0xff] }
 0x223   :  { %v4298_v30 = vpop.xlane.xlu1 %4297 }
 0x224   :  { %4730 = vst.msk [vmem:[#allocation5 + $0x78] sm:$0xff] %vm9796_vm13, %v4698_v14  ;;  %v4693_v56 = vadd.f32 %v4661_v31, %v4298_v30  ;;  %vm9800_vm13 = vmmov %vm9793_vm0  ;;  %v4671_v14 = vld [vmem:[#allocation5 + $0xa0] sm:$0xff] }
 0x225   :  { %v4319_v11 = vpop.xlane.xlu0 %4318 }
 0x226   :  { %v4700_v47 = vadd.f32 %v4668_v10, %v4319_v11  ;;  %4725 = vst.msk [vmem:[#allocation5 + $0x50] sm:$0xff] %vm9793_vm0, %v4693_v56  ;;  %v4676_v10 = vld [vmem:[#allocation5 + $0xc8] sm:$0xff] }
 0x227   :  { %v4304_v39 = vpop.xlane.xlu1 %4303 }
 0x228   :  { %4732 = vst.msk [vmem:[#allocation5 + $0x88] sm:$0xff] %vm9797_vm6, %v4700_v47  ;;  %v4695_v52 = vadd.f32 %v4663_v2, %v4304_v39  ;;  %vm9801_vm6 = vmmov %vm9793_vm0  ;;  %v4673_v47 = vld [vmem:[#allocation5 + $0xb0] sm:$0xff]  ;;  %v4678_v39 = vld [vmem:[#allocation5 + $0xd8] sm:$0xff] }
 0x229   :  { %v4325_v22 = vpop.xlane.xlu0 %4324 }
 0x22a   :  { %4727 = vst.msk [vmem:[#allocation5 + $0x60] sm:$0xff] %vm9798_vm2, %v4695_v52  ;;  %v4702_v33 = vadd.f32 %v4670_v25, %v4325_v22  ;;  %vm9802_vm2 = vmmov %vm9793_vm0  ;;  %v4675_v22 = vld [vmem:[#allocation5 + $0xc0] sm:$0xff] }
 0x22b   :  { %v4310_v18 = vpop.xlane.xlu1 %4309 }
 0x22c   :  { %v4697_v51 = vadd.f32 %v4665_v9, %v4310_v18  ;;  %4734 = vst.msk [vmem:[#allocation5 + $0x98] sm:$0xff] %vm9800_vm13, %v4702_v33  ;;  %vm9804_vm13 = vmmov %vm9793_vm0 }
 0x22d   :  { %v4331_v53 = vpop.xlane.xlu0 %4330 }
 0x22e   :  { %4729 = vst.msk [vmem:[#allocation5 + $0x70] sm:$0xff] %vm9799_vm5, %v4697_v51  ;;  %v4704_v15 = vadd.f32 %v4672_v50, %v4331_v53  ;;  %vm9803_vm5 = vmmov %vm9793_vm0  ;;  %v4680_v51 = vld [vmem:[#allocation5 + $0xe8] sm:$0xff]  ;;  %v4677_v53 = vld [vmem:[#allocation5 + $0xd0] sm:$0xff] }
 0x22f   :  { %v4316_v63 = vpop.xlane.xlu1 %4315 }
 0x230   :  { %v4699_v27 = vadd.f32 %v4667_v61, %v4316_v63  ;;  %4736 = vst.msk [vmem:[#allocation5 + $0xa8] sm:$0xff] %vm9801_vm6, %v4704_v15  ;;  %vm9805_vm6 = vmmov %vm9793_vm0 }
 0x231   :  { %v4337_v13 = vpop.xlane.xlu0 %4336 }
 0x232   :  { %4731 = vst.msk [vmem:[#allocation5 + $0x80] sm:$0xff] %vm9793_vm0, %v4699_v27  ;;  %v4706_v31 = vadd.f32 %v4674_v46, %v4337_v13  ;;  %v2821_v13 = vld [vmem:[%s9332_s3] sm:$0x3] }
 0x233   :  { %v4322_v0 = vpop.xlane.xlu1 %4321 }
 0x234   :  { %v4701_v21 = vadd.f32 %v4669_v42, %v4322_v0  ;;  %4738 = vst.msk [vmem:[#allocation5 + $0xb8] sm:$0xff] %vm9803_vm5, %v4706_v31  ;;  %vm9807_vm5 = vmmov %vm9793_vm0  ;;  %v4679_v42 = vld [vmem:[#allocation5 + $0xe0] sm:$0xff]  ;;  %v2567_v31 = vpop.f32.mrb[0].mxu0 }
 0x235   :  { %v4343_v56 = vpop.xlane.xlu0 %4342 }
 0x236   :  { %4733 = vst.msk [vmem:[#allocation5 + $0x90] sm:$0xff] %vm9802_vm2, %v4701_v21  ;;  %v4708_v2 = vadd.f32 %v4676_v10, %v4343_v56  ;;  %vm9806_vm2 = vmmov %vm9793_vm0  ;;  %v1445_v21 = vpop.f32.mrb[0].mxu1 }
 0x237   :  { %v4328_v30 = vpop.xlane.xlu1 %4327  ;;  %v1447_v56 = vpop.f32.mrb[1].mxu1 }
 0x238   :  { %v4703_v11 = vadd.f32 %v4671_v14, %v4328_v30  ;;  %4740 = vst.msk [vmem:[#allocation5 + $0xc8] sm:$0xff] %vm9793_vm0, %v4708_v2  ;;  %v9810_v14 = vsub.s32 0, %v7655_v23  ;;  %v5814_v30 = vadd.f32 %v2567_v31, %v1445_v21 }
 0x239   :  { %v4349_v9 = vpop.xlane.xlu0 %4348 }
 0x23a   :  { %4735 = vst.msk [vmem:[#allocation5 + $0xa0] sm:$0xff] %vm9804_vm13, %v4703_v11  ;;  %v4710_v18 = vadd.f32 %v4678_v39, %v4349_v9  ;;  %vm9808_vm13 = vmmov %vm9793_vm0  ;;  %v8526_v10 = vrot.slane %v2821_v13, %v9810_v14  ;;  %v2569_v11 = vpop.f32.mrb[1].mxu0  ;;  %v1453_v39 = vpop.f32.mrb[2].mxu1 }
 0x23b   :  { %v4334_v52 = vpop.xlane.xlu1 %4333 }
 0x23c   :  { %v4705_v25 = vadd.f32 %v4673_v47, %v4334_v52  ;;  %4742 = vst.msk [vmem:[#allocation5 + $0xd8] sm:$0xff] %vm9806_vm2, %v4710_v18  ;;  %v2993_v2 = vadd.f32 %v8526_v10, %v7495_v43  ;;  %v3057_v47 = vmul.f32 2.0, %v5814_v30  ;;  %v2574_v52 = vpop.f32.mrb[2].mxu0  ;;  %v3001_v48 = vadd.f32 %v8526_v10, %v7539_v20 }
 0x23d   :  { %v4355_v61 = vpop.xlane.xlu0 %4354  ;;  %v5815_v9 = vadd.f32 %v2574_v52, %v1453_v39  ;;  %v2576_v18 = vpop.f32.mrb[3].mxu0  ;;  %v3003_v16 = vadd.f32 %v8526_v10, %v7537_v44 }
 0x23e   :  { %4737 = vst.msk [vmem:[#allocation5 + $0xb0] sm:$0xff] %vm9805_vm6, %v4705_v25  ;;  %v4712_v63 = vadd.f32 %v4680_v51, %v4355_v61  ;;  %v1455_v25 = vpop.f32.mrb[3].mxu1  ;;  %v2995_v51 = vadd.f32 %v8526_v10, %v7519_v8  ;;  %v2997_v8 = vadd.f32 %v8526_v10, %v7493_v26 }
 0x23f   :  { %v4340_v33 = vpop.xlane.xlu1 %4339 }
 0x240   :  { %v4707_v50 = vadd.f32 %v4675_v22, %v4340_v33  ;;  %4744 = vst.msk [vmem:[#allocation5 + $0xe8] sm:$0xff] %vm9808_vm13, %v4712_v63  ;;  %v3121_v22 = vsub.f32 %v2993_v2, %v3057_v47  ;;  %v3059_v33 = vmul.f32 2.0, %v5815_v9  ;;  %v2999_v47 = vadd.f32 %v8526_v10, %v7517_v28 }
 0x242   :  { %4739 = vst.msk [vmem:[#allocation5 + $0xc0] sm:$0xff] %vm9807_vm5, %v4707_v50  ;;  %v3185_v23 = vmax.f32 %v3121_v22, 0.0  ;;  %v2581_v50 = vpop.f32.mrb[4].mxu0 }
 0x243   :  { %v4346_v27 = vpop.xlane.xlu1 %4345 }
 0x244   :  { %v4709_v15 = vadd.f32 %v4677_v53, %v4346_v27  ;;  %v2583_v53 = vpop.f32.mrb[5].mxu0 }
 0x245   :  { %v2588_v31 = vpop.f32.mrb[6].mxu0 }
 0x246   :  { %4741 = vst.msk [vmem:[#allocation5 + $0xd0] sm:$0xff] %vm9793_vm0, %v4709_v15  ;;  %v2590_v2 = vpop.f32.mrb[7].mxu0 }
 0x247   :  { %v4352_v46 = vpop.xlane.xlu1 %4351  ;;  %v2595_v18 = vpop.f32.mrb[8].mxu0 }
 0x248   :  { %v4711_v0 = vadd.f32 %v4679_v42, %v4352_v46  ;;  %v3123_v42 = vsub.f32 %v2995_v51, %v3059_v33 }
 0x24a   :  { %4743 = vst.msk [vmem:[#allocation5 + $0xe0] sm:$0xff] %vm9809_vm8, %v4711_v0  ;;  %vm9811_vm8 = vcmp.lt.s32.totalorder %v7678_v59, 8  ;;  %v3187_v13 = vmax.f32 %v3123_v42, 0.0 }
 0x24b   :  { %vm3722_vm6 = vmand %vm7712_vm10, %vm9811_vm8 }
 0x24c   :  { %vm9812_vm2 = vmmov %vm9811_vm8  ;;  %v3786_v15 = vsel %vm3722_vm6, %v3185_v23, 0.0 }
 0x24d   :  { %v3594_v27 = vsel %vm9812_vm2, %v3185_v23, 0.0  ;;  %v3850_v46 = vmax.f32 %v3786_v15, 0.0  ;;  %vm9813_vm5 = vmmov %vm9812_vm2  ;;  %v2597_v23 = vpop.f32.mrb[9].mxu0 }
 0x24e   :  { %3947 = vadd.xlane.f32.xlu1 %v3594_v27  ;;  %vm8544_vm10 = vmand %vm7694_vm4, %vm9813_vm5  ;;  %v4042_v14 = vmax.f32 %v3594_v27, 0.0  ;;  %v2602_v15 = vpop.f32.mrb[10].mxu0 }
 0x24f   :  { %3851 = vmax.xlane.f32.xlu0 %v3850_v46  ;;  %v3788_v26 = vsel %vm8544_vm10, %v3187_v13, 0.0  ;;  %vm9816_vm4 = vmmov %vm9812_vm2 }
 0x250   :  { %v3596_v52 = vsel %vm9816_vm4, %v3187_v13, 0.0  ;;  %vm9817_vm13 = vmmov %vm9812_vm2  ;;  %v3853_v22 = vmax.f32 %v3788_v26, 0.0 }
 0x251   :  { %vm8558_vm0 = vmand %vm7742_vm1, %vm9817_vm13 }
 0x252   :  { %4043 = vmax.xlane.f32.xlu1 %v4042_v14  ;;  %vm9820_vm1 = vmmov %vm9812_vm2 }
 0x253   :  { %3950 = vadd.xlane.f32.xlu0 %v3596_v52  ;;  %vm8570_vm8 = vmand %vm7722_vm11, %vm9820_vm1 }
 0x254   :  { %vm9823_vm6 = vmmov %vm9820_vm1 }
 0x255   :  { %vm9824_vm11 = vmmov %vm9820_vm1 }
 0x256   :  { %3854 = vmax.xlane.f32.xlu1 %v3853_v22  ;;  %vm8584_vm2 = vmand %vm7802_vm7, %vm9824_vm11  ;;  %vm9848_vm11 = vnez %v9719_v40 }
 0x257   :  { %vm9829_vm7 = vmmov %vm9820_vm1 }
 0x258   :  { %vm9830_vm5 = vmmov %vm9820_vm1 }
 0x259   :  { %v1461_v61 = vpop.f32.mrb[4].mxu1  ;;  %vm8598_vm10 = vmand %vm7750_vm3, %vm9830_vm5 }
 0x25a   :  { %v5816_v43 = vadd.f32 %v2581_v50, %v1461_v61  ;;  %v1463_v63 = vpop.f32.mrb[5].mxu1  ;;  %v4045_v50 = vmax.f32 %v3596_v52, 0.0  ;;  %v9828_v52 = vld [vmem:[#allocation23_spill] sm:$0xff]  ;;  %vm9834_vm4 = vmmov %vm9820_vm1 }
 0x25b   :  { %v3005_v9 = vadd.f32 %v8526_v10, %v9828_v52  ;;  %vm9836_vm3 = vmmov %vm9820_vm1 }
 0x25c   :  { %v3061_v0 = vmul.f32 2.0, %v5816_v43  ;;  %4046 = vmax.xlane.f32.xlu0 %v4045_v50  ;;  %vm8612_vm13 = vmand %vm8116_vm14, %vm9836_vm3 }
 0x25d   :  { %v1469_v21 = vpop.f32.mrb[6].mxu1  ;;  %vm9840_vm14 = vmmov %vm9820_vm1 }
 0x25e   :  { %v3125_v30 = vsub.f32 %v2997_v8, %v3061_v0  ;;  %v5817_v56 = vadd.f32 %v2588_v31, %v1469_v21  ;;  %v1471_v11 = vpop.f32.mrb[7].mxu1  ;;  %v2604_v0 = vpop.f32.mrb[11].mxu0  ;;  %vm9853_vm5 = vmmov %vm9836_vm3 }
 0x25f   :  { %v2609_v2 = vpop.f32.mrb[12].mxu0 }
 0x260   :  { %v3189_v49 = vmax.f32 %v3125_v30, 0.0  ;;  %v3063_v39 = vmul.f32 2.0, %v5817_v56 }
 0x261   :  { %v1477_v25 = vpop.f32.mrb[8].mxu1 }
 0x262   :  { %v3127_v51 = vsub.f32 %v2999_v47, %v3063_v39  ;;  %v5818_v33 = vadd.f32 %v2595_v18, %v1477_v25  ;;  %v1479_v28 = vpop.f32.mrb[9].mxu1  ;;  %v3790_v61 = vsel %vm8558_vm0, %v3189_v49, 0.0  ;;  %v3598_v20 = vsel %vm9823_vm6, %v3189_v49, 0.0  ;;  %v2611_v39 = vpop.f32.mrb[13].mxu0  ;;  %vm9847_vm6 = vmmov %vm9836_vm3 }
 0x263   :  { %3953 = vadd.xlane.f32.xlu1 %v3598_v20  ;;  %v3856_v17 = vmax.f32 %v3790_v61, 0.0  ;;  %v4048_v56 = vmax.f32 %v3598_v20, 0.0  ;;  %v2616_v23 = vpop.f32.mrb[14].mxu0 }
 0x264   :  { %v3191_v43 = vmax.f32 %v3127_v51, 0.0  ;;  %v3065_v63 = vmul.f32 2.0, %v5818_v33 }
 0x265   :  { %v1485_v27 = vpop.f32.mrb[10].mxu1  ;;  %3857 = vmax.xlane.f32.xlu0 %v3856_v17 }
 0x266   :  { %v3129_v42 = vsub.f32 %v3001_v48, %v3065_v63  ;;  %v5819_v46 = vadd.f32 %v2602_v15, %v1485_v27  ;;  %v1487_v8 = vpop.f32.mrb[11].mxu1  ;;  %v3792_v13 = vsel %vm8570_vm8, %v3191_v43, 0.0  ;;  %v3600_v22 = vsel %vm9829_vm7, %v3191_v43, 0.0  ;;  %v2618_v63 = vpop.f32.mrb[15].mxu0  ;;  %v9835_v15 = vld [vmem:[#allocation19_spill] sm:$0xff]  ;;  %vm9846_vm8 = vmmov %vm9836_vm3 }
 0x267   :  { %4049 = vmax.xlane.f32.xlu1 %v4048_v56  ;;  %v3859_v27 = vmax.f32 %v3792_v13, 0.0  ;;  %v2623_v17 = vpop.f32.mrb[16].mxu0  ;;  %v4051_v56 = vmax.f32 %v3600_v22, 0.0  ;;  %vm9851_vm7 = vmmov %vm9836_vm3 }
 0x268   :  { %v3193_v21 = vmax.f32 %v3129_v42, 0.0  ;;  %v3067_v31 = vmul.f32 2.0, %v5819_v46  ;;  %v3007_v42 = vadd.f32 %v8526_v10, %v9835_v15  ;;  %v2625_v14 = vpop.f32.mrb[17].mxu0 }
 0x269   :  { %v1493_v11 = vpop.f32.mrb[12].mxu1  ;;  %3956 = vadd.xlane.f32.xlu0 %v3600_v22  ;;  %v2630_v52 = vpop.f32.mrb[18].mxu0 }
 0x26a   :  { %v3131_v26 = vsub.f32 %v3003_v16, %v3067_v31  ;;  %v5820_v47 = vadd.f32 %v2609_v2, %v1493_v11  ;;  %v1495_v49 = vpop.f32.mrb[13].mxu1  ;;  %v3794_v44 = vsel %vm8584_vm2, %v3193_v21, 0.0  ;;  %v3602_v53 = vsel %vm9834_vm4, %v3193_v21, 0.0  ;;  %v9839_v11 = vld [vmem:[#allocation6_spill] sm:$0xff]  ;;  %v2632_v51 = vpop.f32.mrb[19].mxu0  ;;  %vm8643_vm2 = vmand %vm9848_vm11, %vm9847_vm6 }
 0x26b   :  { %3959 = vadd.xlane.f32.xlu1 %v3602_v53  ;;  %v3862_v16 = vmax.f32 %v3794_v44, 0.0  ;;  %v3009_v6 = vadd.f32 %v8526_v10, %v9839_v11  ;;  %v4054_v39 = vmax.f32 %v3602_v53, 0.0 }
 0x26c   :  { %v3195_v25 = vmax.f32 %v3131_v26, 0.0  ;;  %v3069_v18 = vmul.f32 2.0, %v5820_v47  ;;  %v9841_v47 = vld [vmem:[#allocation20_spill] sm:$0xff] }
 0x26d   :  { %v1501_v28 = vpop.f32.mrb[14].mxu1  ;;  %3860 = vmax.xlane.f32.xlu0 %v3859_v27  ;;  %vm9842_vm0 = vnez %v9841_v47  ;;  %v2637_v27 = vpop.f32.mrb[20].mxu0 }
 0x26e   :  { %v3133_v61 = vsub.f32 %v3005_v9, %v3069_v18  ;;  %v5821_v50 = vadd.f32 %v2616_v23, %v1501_v28  ;;  %v1503_v48 = vpop.f32.mrb[15].mxu1  ;;  %v3796_v43 = vsel %vm8598_vm10, %v3195_v25, 0.0  ;;  %vm8626_vm1 = vmand %vm9842_vm0, %vm9840_vm14  ;;  %v9845_v28 = vld [vmem:[#allocation24_spill] sm:$0xff]  ;;  %v2639_v0 = vpop.f32.mrb[21].mxu0 }
 0x26f   :  { %3863 = vmax.xlane.f32.xlu1 %v3862_v16  ;;  %v3011_v23 = vadd.f32 %v8526_v10, %v9845_v28  ;;  %v3604_v48 = vsel %vm9846_vm8, %v3195_v25, 0.0  ;;  %v3865_v40 = vmax.f32 %v3796_v43, 0.0  ;;  %vm9863_vm0 = vmmov %vm9836_vm3  ;;  %vm9865_vm8 = vnez %v9707_v29 }
 0x270   :  { %v3197_v46 = vmax.f32 %v3133_v61, 0.0  ;;  %v3071_v8 = vmul.f32 2.0, %v5821_v50  ;;  %vm9868_vm11 = vmmov %vm9863_vm0 }
 0x271   :  { %v1509_v20 = vpop.f32.mrb[16].mxu1  ;;  %4052 = vmax.xlane.f32.xlu0 %v4051_v56  ;;  %v2644_v56 = vpop.f32.mrb[22].mxu0 }
 0x272   :  { %v3135_v21 = vsub.f32 %v3007_v42, %v3071_v8  ;;  %v5822_v31 = vadd.f32 %v2623_v17, %v1509_v20  ;;  %v1511_v13 = vpop.f32.mrb[17].mxu1  ;;  %v3798_v30 = vsel %vm8612_vm13, %v3197_v46, 0.0  ;;  %v3606_v20 = vsel %vm9851_vm7, %v3197_v46, 0.0  ;;  %v9852_v17 = vld [vmem:[#allocation7_spill] sm:$0xff]  ;;  %v2646_v47 = vpop.f32.mrb[23].mxu0 }
 0x273   :  { %4055 = vmax.xlane.f32.xlu1 %v4054_v39  ;;  %v3013_v16 = vadd.f32 %v8526_v10, %v9852_v17  ;;  %v9854_v13 = vld [vmem:[#allocation21_spill] sm:$0xff]  ;;  %v3868_v11 = vmax.f32 %v3798_v30, 0.0  ;;  %v4057_v39 = vmax.f32 %v3604_v48, 0.0  ;;  %vm9859_vm13 = vnez %v9724_v4  ;;  %v2651_v28 = vpop.f32.mrb[24].mxu0 }
 0x274   :  { %v8620_v2 = vmax.f32 %v3135_v21, 0.0  ;;  %v3073_v26 = vmul.f32 2.0, %v5822_v31  ;;  %vm9855_vm10 = vnez %v9854_v13  ;;  %vm8675_vm14 = vmand %vm9859_vm13, %vm9836_vm3  ;;  %v2653_v63 = vpop.f32.mrb[25].mxu0  ;;  %vm9871_vm7 = vnez %v9731_v41 }
 0x275   :  { %v1517_v44 = vpop.f32.mrb[18].mxu1  ;;  %3962 = vadd.xlane.f32.xlu0 %v3604_v48  ;;  %vm8660_vm4 = vmand %vm9855_vm10, %vm9853_vm5 }
 0x276   :  { %v3137_v9 = vsub.f32 %v3009_v6, %v3073_v26  ;;  %v5823_v18 = vadd.f32 %v2630_v52, %v1517_v44  ;;  %v1519_v22 = vpop.f32.mrb[19].mxu1  ;;  %v3800_v33 = vsel %vm8626_vm1, %v8620_v2, 0.0  ;;  %v9858_v44 = vld [vmem:[#allocation22_spill] sm:$0xff]  ;;  %vm9864_vm1 = vmmov %vm9863_vm0 }
 0x277   :  { %3965 = vadd.xlane.f32.xlu1 %v3606_v20  ;;  %v3015_v52 = vadd.f32 %v8526_v10, %v9858_v44  ;;  %v4060_v22 = vmax.f32 %v3606_v20, 0.0  ;;  %vm8693_vm6 = vmand %vm9865_vm8, %vm9864_vm1  ;;  %v3871_v29 = vmax.f32 %v3800_v33, 0.0 }
 0x278   :  { %v8635_v61 = vmax.f32 %v3137_v9, 0.0  ;;  %v3075_v50 = vmul.f32 2.0, %v5823_v18  ;;  %vm9875_vm10 = vmmov %vm9863_vm0 }
 0x279   :  { %v1525_v53 = vpop.f32.mrb[20].mxu1  ;;  %3866 = vmax.xlane.f32.xlu0 %v3865_v40  ;;  %v2658_v40 = vpop.f32.mrb[26].mxu0  ;;  %vm9881_vm1 = vmmov %vm9863_vm0 }
 0x27a   :  { %v3139_v15 = vsub.f32 %v3011_v23, %v3075_v50  ;;  %v5824_v42 = vadd.f32 %v2637_v27, %v1525_v53  ;;  %v1527_v8 = vpop.f32.mrb[21].mxu1  ;;  %v3802_v25 = vsel %vm8643_vm2, %v8635_v61, 0.0  ;;  %v9862_v27 = vld [vmem:[#allocation28_spill] sm:$0xff]  ;;  %v2660_v13 = vpop.f32.mrb[27].mxu0  ;;  %vm9870_vm2 = vmmov %vm9863_vm0 }
 0x27b   :  { %3869 = vmax.xlane.f32.xlu1 %v3868_v11  ;;  %v3017_v4 = vadd.f32 %v8526_v10, %v9862_v27  ;;  %v3608_v8 = vsel %vm9863_vm0, %v8620_v2, 0.0  ;;  %vm8711_vm5 = vmand %vm9871_vm7, %vm9870_vm2  ;;  %v2665_v47 = vpop.f32.mrb[28].mxu0  ;;  %vm9886_vm2 = vnez %v9726_v54 }
 0x27c   :  { %v8654_v21 = vmax.f32 %v3139_v15, 0.0  ;;  %v3077_v31 = vmul.f32 2.0, %v5824_v42  ;;  %vm8744_vm8 = vmand %vm8232_vm15, %vm9881_vm1 }
 0x27d   :  { %v1533_v46 = vpop.f32.mrb[22].mxu1  ;;  %4058 = vmax.xlane.f32.xlu0 %v4057_v39  ;;  %v3874_v39 = vmax.f32 %v3802_v25, 0.0  ;;  %vm9885_vm15 = vmmov %vm9863_vm0 }
 0x27e   :  { %v3141_v6 = vsub.f32 %v3013_v16, %v3077_v31  ;;  %v5825_v43 = vadd.f32 %v2644_v56, %v1533_v46  ;;  %v1535_v26 = vpop.f32.mrb[23].mxu1  ;;  %v3804_v49 = vsel %vm8660_vm4, %v8654_v21, 0.0  ;;  %v3610_v46 = vsel %vm9868_vm11, %v8635_v61, 0.0  ;;  %v9869_v56 = vld [vmem:[#allocation25_spill] sm:$0xff]  ;;  %vm9884_vm11 = vmmov %vm9863_vm0 }
 0x27f   :  { %4061 = vmax.xlane.f32.xlu1 %v4060_v22  ;;  %v3019_v11 = vadd.f32 %v8526_v10, %v9869_v56  ;;  %v4066_v63 = vmax.f32 %v3610_v46, 0.0  ;;  %v3877_v1 = vmax.f32 %v3804_v49, 0.0  ;;  %vm8764_vm7 = vmand %vm9886_vm2, %vm9885_vm15  ;;  %vm9910_vm2 = vnez %v9750_v62 }
 0x280   :  { %v8669_v9 = vmax.f32 %v3141_v6, 0.0  ;;  %v3079_v18 = vmul.f32 2.0, %v5825_v43  ;;  %vm9889_vm4 = vmmov %vm9863_vm0 }
 0x281   :  { %v1541_v51 = vpop.f32.mrb[24].mxu1  ;;  %3968 = vadd.xlane.f32.xlu0 %v3608_v8 }
 0x282   :  { %v3143_v23 = vsub.f32 %v3015_v52, %v3079_v18  ;;  %v5826_v50 = vadd.f32 %v2651_v28, %v1541_v51  ;;  %v1543_v48 = vpop.f32.mrb[25].mxu1  ;;  %v3806_v53 = vsel %vm8675_vm14, %v8669_v9, 0.0  ;;  %v2667_v18 = vpop.f32.mrb[29].mxu0  ;;  %v4063_v51 = vmax.f32 %v3608_v8, 0.0  ;;  %v9874_v28 = vld [vmem:[#allocation9_spill] sm:$0xff]  ;;  %vm9890_vm14 = vmmov %vm9863_vm0 }
 0x283   :  { %3971 = vadd.xlane.f32.xlu1 %v3610_v46  ;;  %v3021_v41 = vadd.f32 %v8526_v10, %v9874_v28  ;;  %v9876_v48 = vld [vmem:[#allocation52_spill] sm:$0xff]  ;;  %v3612_v46 = vsel %vm9863_vm0, %v8654_v21, 0.0  ;;  %v3880_v14 = vmax.f32 %v3806_v53, 0.0 }
 0x284   :  { %v8684_v15 = vmax.f32 %v3143_v23, 0.0  ;;  %v3081_v42 = vmul.f32 2.0, %v5826_v50  ;;  %vm9877_vm3 = vnez %v9876_v48  ;;  %v4069_v48 = vmax.f32 %v3612_v46, 0.0 }
 0x285   :  { %v1549_v20 = vpop.f32.mrb[26].mxu1  ;;  %3872 = vmax.xlane.f32.xlu0 %v3871_v29  ;;  %vm8726_vm13 = vmand %vm9877_vm3, %vm9875_vm10 }
 0x286   :  { %v3145_v17 = vsub.f32 %v3017_v4, %v3081_v42  ;;  %v5827_v16 = vadd.f32 %v2658_v40, %v1549_v20  ;;  %v1551_v31 = vpop.f32.mrb[27].mxu1  ;;  %v3808_v2 = vsel %vm8693_vm6, %v8684_v15, 0.0  ;;  %v2672_v4 = vpop.f32.mrb[30].mxu0  ;;  %vm9891_vm6 = vmmov %vm9863_vm0 }
 0x287   :  { %3875 = vmax.xlane.f32.xlu1 %v3874_v39  ;;  %v2674_v40 = vpop.f32.mrb[31].mxu0  ;;  %vm9894_vm10 = vmmov %vm9863_vm0 }
 0x288   :  { %v8705_v6 = vmax.f32 %v3145_v17, 0.0  ;;  %v3083_v43 = vmul.f32 2.0, %v5827_v16  ;;  %v9880_v16 = vld [vmem:[#allocation8_spill] sm:$0xff]  ;;  %vm9896_vm3 = vmmov %vm9863_vm0 }
 0x289   :  { %v1557_v61 = vpop.f32.mrb[28].mxu1  ;;  %4064 = vmax.xlane.f32.xlu0 %v4063_v51  ;;  %v3023_v31 = vadd.f32 %v8526_v10, %v9880_v16  ;;  %vm9909_vm15 = vmmov %vm9896_vm3 }
 0x28a   :  { %v3147_v44 = vsub.f32 %v3019_v11, %v3083_v43  ;;  %v5828_v33 = vadd.f32 %v2665_v47, %v1557_v61  ;;  %v1559_v52 = vpop.f32.mrb[29].mxu1  ;;  %v3810_v22 = vsel %vm8711_vm5, %v8705_v6, 0.0  ;;  %v2679_v43 = vpop.f32.mrb[32].mxu0  ;;  %vm9892_vm5 = vmmov %vm9863_vm0 }
 0x28b   :  { %4067 = vmax.xlane.f32.xlu1 %v4066_v63 }
 0x28c   :  { %v8720_v23 = vmax.f32 %v3147_v44, 0.0  ;;  %v3085_v50 = vmul.f32 2.0, %v5828_v33  ;;  %v2681_v44 = vpop.f32.mrb[33].mxu0  ;;  %v3614_v33 = vsel %vm9884_vm11, %v8669_v9, 0.0  ;;  %v3616_v9 = vsel %vm9889_vm4, %v8684_v15, 0.0 }
 0x28d   :  { %v1565_v27 = vpop.f32.mrb[30].mxu1  ;;  %3974 = vadd.xlane.f32.xlu0 %v3612_v46  ;;  %v4072_v63 = vmax.f32 %v3614_v33, 0.0  ;;  %v3883_v46 = vmax.f32 %v3808_v2, 0.0  ;;  %vm9907_vm11 = vnez %v9753_v38  ;;  %vm9913_vm4 = vnez %v9761_v24 }
 0x28e   :  { %v3149_v42 = vsub.f32 %v3021_v41, %v3085_v50  ;;  %v5829_v8 = vadd.f32 %v2672_v4, %v1565_v27  ;;  %v1567_v20 = vpop.f32.mrb[31].mxu1  ;;  %v3812_v17 = vsel %vm8726_vm13, %v8720_v23, 0.0  ;;  %v2686_v41 = vpop.f32.mrb[34].mxu0  ;;  %vm9900_vm13 = vmmov %vm9863_vm0 }
 0x28f   :  { %3977 = vadd.xlane.f32.xlu1 %v3614_v33  ;;  %v2688_v50 = vpop.f32.mrb[35].mxu0 }
 0x290   :  { %v8735_v13 = vmax.f32 %v3149_v42, 0.0  ;;  %v3087_v29 = vmul.f32 2.0, %v5829_v8  ;;  %v2693_v4 = vpop.f32.mrb[36].mxu0 }
 0x291   :  { %v1573_v11 = vpop.f32.mrb[32].mxu1  ;;  %3878 = vmax.xlane.f32.xlu0 %v3877_v1  ;;  %v2695_v8 = vpop.f32.mrb[37].mxu0  ;;  %v4075_v1 = vmax.f32 %v3616_v9, 0.0 }
 0x292   :  { %v3151_v61 = vsub.f32 %v3023_v31, %v3087_v29  ;;  %v5830_v47 = vadd.f32 %v2679_v43, %v1573_v11  ;;  %v1575_v39 = vpop.f32.mrb[33].mxu1  ;;  %v3814_v52 = vsel %vm8744_vm8, %v8735_v13, 0.0  ;;  %v2700_v20 = vpop.f32.mrb[38].mxu0  ;;  %v3618_v29 = vsel %vm9890_vm14, %v8705_v6, 0.0  ;;  %vm9906_vm8 = vmmov %vm9896_vm3 }
 0x293   :  { %3881 = vmax.xlane.f32.xlu1 %v3880_v14  ;;  %v2702_v31 = vpop.f32.mrb[39].mxu0  ;;  %v3620_v6 = vsel %vm9891_vm6, %v8720_v23, 0.0  ;;  %vm9915_vm14 = vmmov %vm9896_vm3  ;;  %vm9916_vm6 = vnez %v9755_v32 }
 0x294   :  { %v8758_v18 = vmax.f32 %v3151_v61, 0.0  ;;  %v2707_v43 = vpop.f32.mrb[40].mxu0  ;;  %v3886_v61 = vmax.f32 %v3810_v22, 0.0  ;;  %v4081_v25 = vmax.f32 %v3620_v6, 0.0 }
 0x295   :  { %v1581_v28 = vpop.f32.mrb[34].mxu1  ;;  %4070 = vmax.xlane.f32.xlu0 %v4069_v48  ;;  %v2709_v33 = vpop.f32.mrb[41].mxu0 }
 0x296   :  { %v8772_v21 = vadd.f32 %v2686_v41, %v1581_v28  ;;  %v1583_v49 = vpop.f32.mrb[35].mxu1  ;;  %v3816_v54 = vsel %vm8764_vm7, %v8758_v18, 0.0  ;;  %v4078_v28 = vmax.f32 %v3618_v29, 0.0  ;;  %v2714_v0 = vpop.f32.mrb[42].mxu0  ;;  %v3624_v56 = vsel %vm9894_vm10, %v8758_v18, 0.0  ;;  %vm9912_vm7 = vmmov %vm9896_vm3 }
 0x297   :  { %4073 = vmax.xlane.f32.xlu1 %v4072_v63  ;;  %v2716_v14 = vpop.f32.mrb[43].mxu0  ;;  %v3089_v49 = vmul.f32 2.0, %v5830_v47  ;;  %v3892_v47 = vmax.f32 %v3814_v52, 0.0  ;;  %v9895_v52 = vld [vmem:[#allocation31_spill] sm:$0xff]  ;;  %vm9919_vm10 = vnez %v9766_v19 }
 0x298   :  { %v2721_v22 = vpop.f32.mrb[44].mxu0  ;;  %v3027_v33 = vadd.f32 %v8526_v10, %v9895_v52 }
 0x299   :  { %v1589_v27 = vpop.f32.mrb[36].mxu1  ;;  %3980 = vadd.xlane.f32.xlu0 %v3616_v9  ;;  %v2723_v63 = vpop.f32.mrb[45].mxu0 }
 0x29a   :  { %v8777_v42 = vadd.f32 %v2693_v4, %v1589_v27  ;;  %v1591_v30 = vpop.f32.mrb[37].mxu1  ;;  %v3622_v27 = vsel %vm9892_vm5, %v8735_v13, 0.0  ;;  %v3889_v4 = vmax.f32 %v3812_v17, 0.0  ;;  %v3091_v13 = vmul.f32 2.0, %v8772_v21  ;;  %vm9918_vm5 = vmmov %vm9896_vm3 }
 0x29b   :  { %3983 = vadd.xlane.f32.xlu1 %v3618_v29  ;;  %v9893_v30 = vld [vmem:[#allocation10_spill] sm:$0xff]  ;;  %v4084_v23 = vmax.f32 %v3622_v27, 0.0 }
 0x29c   :  { %v3025_v8 = vadd.f32 %v8526_v10, %v9893_v30 }
 0x29d   :  { %v1597_v53 = vpop.f32.mrb[38].mxu1  ;;  %3884 = vmax.xlane.f32.xlu0 %v3883_v46 }
 0x29e   :  { %v8782_v40 = vadd.f32 %v2700_v20, %v1597_v53  ;;  %v1599_v16 = vpop.f32.mrb[39].mxu1  ;;  %v2728_v53 = vpop.f32.mrb[46].mxu0  ;;  %v3153_v20 = vsub.f32 %v3025_v8, %v3089_v49 }
 0x29f   :  { %3887 = vmax.xlane.f32.xlu1 %v3886_v61  ;;  %v2730_v29 = vpop.f32.mrb[47].mxu0 }
 0x2a0   :  { %v2735_v46 = vpop.f32.mrb[48].mxu0 }
 0x2a1   :  { %v1605_v11 = vpop.f32.mrb[40].mxu1  ;;  %4076 = vmax.xlane.f32.xlu0 %v4075_v1 }
 0x2a2   :  { %v8795_v39 = vadd.f32 %v2707_v43, %v1605_v11  ;;  %v1607_v44 = vpop.f32.mrb[41].mxu1  ;;  %v3217_v11 = vmax.f32 %v3153_v20, 0.0 }
 0x2a3   :  { %4079 = vmax.xlane.f32.xlu1 %v4078_v28  ;;  %v2737_v44 = vpop.f32.mrb[49].mxu0 }
 0x2a4   :  { %v2742_v28 = vpop.f32.mrb[50].mxu0  ;;  %v3818_v21 = vsel %vm8279_vm12, %v3217_v11, 0.0  ;;  %vm9898_vm12 = vmmov %vm9863_vm0  ;;  %vm9901_vm0 = vnez %v9748_v45 }
 0x2a5   :  { %v1613_v41 = vpop.f32.mrb[42].mxu1  ;;  %3986 = vadd.xlane.f32.xlu0 %v3620_v6  ;;  %v2744_v14 = vpop.f32.mrb[51].mxu0  ;;  %v3626_v6 = vsel %vm9896_vm3, %v3217_v11, 0.0  ;;  %vm9921_vm3 = vcmask 7168  }
 0x2a6   :  { %v8797_v15 = vadd.f32 %v2714_v0, %v1613_v41  ;;  %v1615_v2 = vpop.f32.mrb[43].mxu1  ;;  %v3093_v41 = vmul.f32 2.0, %v8777_v42  ;;  %v3155_v42 = vsub.f32 %v3027_v33, %v3091_v13  ;;  %v2749_v63 = vpop.f32.mrb[52].mxu0  ;;  %v4090_v51 = vmax.f32 %v3626_v6, 0.0 }
 0x2a7   :  { %3989 = vadd.xlane.f32.xlu1 %v3622_v27  ;;  %v3898_v27 = vmax.f32 %v3818_v21, 0.0  ;;  %v2751_v57 = vpop.f32.mrb[53].mxu0  ;;  %v3097_v13 = vmul.f32 2.0, %v8795_v39 }
 0x2a8   :  { %v2756_v18 = vpop.f32.mrb[54].mxu0 }
 0x2a9   :  { %v1621_v26 = vpop.f32.mrb[44].mxu1  ;;  %3890 = vmax.xlane.f32.xlu0 %v3889_v4  ;;  %v2758_v29 = vpop.f32.mrb[55].mxu0 }
 0x2aa   :  { %v8802_v50 = vadd.f32 %v2721_v22, %v1621_v26  ;;  %v1623_v48 = vpop.f32.mrb[45].mxu1  ;;  %v3895_v26 = vmax.f32 %v3816_v54, 0.0  ;;  %v9897_v22 = vld [vmem:[#allocation32_spill] sm:$0xff]  ;;  %v2763_v44 = vpop.f32.mrb[56].mxu0 }
 0x2ab   :  { %3893 = vmax.xlane.f32.xlu1 %v3892_v47  ;;  %v3029_v49 = vadd.f32 %v8526_v10, %v9897_v22  ;;  %v2765_v33 = vpop.f32.mrb[57].mxu0 }
 0x2ad   :  { %v1629_v9 = vpop.f32.mrb[46].mxu1  ;;  %4082 = vmax.xlane.f32.xlu0 %v4081_v25  ;;  %v3157_v4 = vsub.f32 %v3029_v49, %v3093_v41  ;;  %v3095_v25 = vmul.f32 2.0, %v8782_v40 }
 0x2ae   :  { %v8817_v16 = vadd.f32 %v2728_v53, %v1629_v9  ;;  %v1631_v31 = vpop.f32.mrb[47].mxu1  ;;  %v4087_v9 = vmax.f32 %v3624_v56, 0.0  ;;  %v3219_v53 = vmax.f32 %v3155_v42, 0.0 }
 0x2af   :  { %4085 = vmax.xlane.f32.xlu1 %v4084_v23  ;;  %v3221_v54 = vmax.f32 %v3157_v4, 0.0 }
 0x2b0   :  { %v3628_v23 = vsel %vm9898_vm12, %v3219_v53, 0.0  ;;  %vm9922_vm12 = vmmov %vm9921_vm3 }
 0x2b1   :  { %v1637_v17 = vpop.f32.mrb[48].mxu1  ;;  %3992 = vadd.xlane.f32.xlu0 %v3624_v56  ;;  %v3630_v40 = vsel %vm9900_vm13, %v3221_v54, 0.0  ;;  %v4093_v42 = vmax.f32 %v3628_v23, 0.0  ;;  %vm9923_vm13 = vmmov %vm9921_vm3 }
 0x2b2   :  { %v8819_v43 = vadd.f32 %v2735_v46, %v1637_v17  ;;  %v1639_v61 = vpop.f32.mrb[49].mxu1  ;;  %v3820_v17 = vsel %vm8242_vm9, %v3219_v53, 0.0  ;;  %v9899_v46 = vld [vmem:[#allocation11_spill] sm:$0xff]  ;;  %v4096_v45 = vmax.f32 %v3630_v40, 0.0  ;;  %v3099_v53 = vmul.f32 2.0, %v8797_v15  ;;  %vm9903_vm9 = vmmov %vm9881_vm1 }
 0x2b3   :  { %3995 = vadd.xlane.f32.xlu1 %v3626_v6  ;;  %v3031_v11 = vadd.f32 %v8526_v10, %v9899_v46  ;;  %v3901_v3 = vmax.f32 %v3820_v17, 0.0  ;;  %v2770_v6 = vpop.f32.mrb[58].mxu0  ;;  %vm9904_vm1 = vnez %v9743_v5 }
 0x2b4   :  { %v2772_v49 = vpop.f32.mrb[59].mxu0 }
 0x2b5   :  { %v1645_v1 = vpop.f32.mrb[50].mxu1  ;;  %3896 = vmax.xlane.f32.xlu0 %v3895_v26 }
 0x2b6   :  { %v8828_v0 = vadd.f32 %v2742_v28, %v1645_v1  ;;  %v1647_v2 = vpop.f32.mrb[51].mxu1  ;;  %v3822_v1 = vsel %vm9901_vm0, %v3221_v54, 0.0  ;;  %v9902_v28 = vld [vmem:[#allocation36_spill] sm:$0xff]  ;;  %vm9924_vm0 = vmmov %vm9918_vm5 }
 0x2b7   :  { %3899 = vmax.xlane.f32.xlu1 %v3898_v27  ;;  %v3033_v41 = vadd.f32 %v8526_v10, %v9902_v28  ;;  %v3159_v2 = vsub.f32 %v3031_v11, %v3095_v25  ;;  %v3904_v39 = vmax.f32 %v3822_v1, 0.0  ;;  %v2777_v27 = vpop.f32.mrb[60].mxu0  ;;  %v3101_v25 = vmul.f32 2.0, %v8802_v50 }
 0x2b8   :  { %v3103_v28 = vmul.f32 2.0, %v8817_v16 }
 0x2b9   :  { %v1653_v48 = vpop.f32.mrb[52].mxu1  ;;  %4088 = vmax.xlane.f32.xlu0 %v4087_v9  ;;  %v3161_v21 = vsub.f32 %v3033_v41, %v3097_v13  ;;  %v2779_v9 = vpop.f32.mrb[61].mxu0 }
 0x2ba   :  { %v8840_v30 = vadd.f32 %v2749_v63, %v1653_v48  ;;  %v1655_v8 = vpop.f32.mrb[53].mxu1  ;;  %v3223_v48 = vmax.f32 %v3159_v2, 0.0  ;;  %v2784_v29 = vpop.f32.mrb[62].mxu0  ;;  %v9911_v2 = vld [vmem:[#allocation12_spill] sm:$0xff]  ;;  %v9917_v9 = vld [vmem:[#allocation39_spill] sm:$0xff] }
 0x2bb   :  { %4091 = vmax.xlane.f32.xlu1 %v4090_v51  ;;  %v3225_v4 = vmax.f32 %v3161_v21, 0.0  ;;  %v2786_v46 = vpop.f32.mrb[63].mxu0 }
 0x2bc   :  { %v3632_v51 = vsel %vm9903_vm9, %v3223_v48, 0.0  ;;  %vm9925_vm9 = vnez %v9758_v55 }
 0x2bd   :  { %v1661_v47 = vpop.f32.mrb[54].mxu1  ;;  %3998 = vadd.xlane.f32.xlu0 %v3628_v23  ;;  %v3634_v15 = vsel %vm9906_vm8, %v3225_v4, 0.0  ;;  %v3826_v11 = vsel %vm9907_vm11, %v3225_v4, 0.0  ;;  %v4099_v50 = vmax.f32 %v3632_v51, 0.0  ;;  %v3107_v4 = vmul.f32 2.0, %v8828_v0  ;;  %vm9928_vm8 = vmmov %vm9924_vm0 }
 0x2be   :  { %v8842_v20 = vadd.f32 %v2756_v18, %v1661_v47  ;;  %v1663_v31 = vpop.f32.mrb[55].mxu1  ;;  %v3824_v47 = vsel %vm9904_vm1, %v3223_v48, 0.0  ;;  %v9905_v18 = vld [vmem:[#allocation34_spill] sm:$0xff]  ;;  %v4102_v1 = vmax.f32 %v3634_v15, 0.0  ;;  %vm9926_vm1 = vmmov %vm9921_vm3  ;;  %vm9929_vm11 = vnez %v9771_v7 }
 0x2bf   :  { %4001 = vadd.xlane.f32.xlu1 %v3630_v40  ;;  %v3035_v54 = vadd.f32 %v8526_v10, %v9905_v18  ;;  %v3907_v5 = vmax.f32 %v3824_v47, 0.0  ;;  %v4459_v18 = vld [vmem:[#allocation3] sm:$0xff] }
 0x2c1   :  { %v1669_v61 = vpop.f32.mrb[56].mxu1  ;;  %3902 = vmax.xlane.f32.xlu0 %v3901_v3  ;;  %v3163_v13 = vsub.f32 %v3035_v54, %v3099_v53  ;;  %v3043_v53 = vadd.f32 %v8526_v10, %v9917_v9 }
 0x2c2   :  { %v8852_v56 = vadd.f32 %v2763_v44, %v1669_v61  ;;  %v1671_v52 = vpop.f32.mrb[57].mxu1  ;;  %v9908_v61 = vld [vmem:[#allocation13_spill] sm:$0xff] }
 0x2c3   :  { %3905 = vmax.xlane.f32.xlu1 %v3904_v39  ;;  %v3037_v44 = vadd.f32 %v8526_v10, %v9908_v61  ;;  %v3910_v52 = vmax.f32 %v3826_v11, 0.0  ;;  %v3227_v40 = vmax.f32 %v3163_v13, 0.0  ;;  %v3171_v32 = vsub.f32 %v3043_v53, %v3107_v4 }
 0x2c5   :  { %v1677_v14 = vpop.f32.mrb[58].mxu1  ;;  %4094 = vmax.xlane.f32.xlu0 %v4093_v42  ;;  %v3165_v33 = vsub.f32 %v3037_v44, %v3101_v25  ;;  %v3636_v38 = vsel %vm9909_vm15, %v3227_v40, 0.0  ;;  %v3828_v41 = vsel %vm9910_vm2, %v3227_v40, 0.0  ;;  %v3235_v19 = vmax.f32 %v3171_v32, 0.0  ;;  %vm9930_vm15 = vmmov %vm9926_vm1 }
 0x2c6   :  { %v8860_v26 = vadd.f32 %v2770_v6, %v1677_v14  ;;  %v1679_v22 = vpop.f32.mrb[59].mxu1  ;;  %v3039_v14 = vadd.f32 %v8526_v10, %v9911_v2  ;;  %v3105_v6 = vmul.f32 2.0, %v8819_v43  ;;  %v3913_v16 = vmax.f32 %v3828_v41, 0.0  ;;  %vm9932_vm2 = vmmov %vm9926_vm1 }
 0x2c7   :  { %4097 = vmax.xlane.f32.xlu1 %v4096_v45  ;;  %v3229_v3 = vmax.f32 %v3165_v33, 0.0  ;;  %v9914_v22 = vld [vmem:[#allocation41_spill] sm:$0xff]  ;;  %v4105_v45 = vmax.f32 %v3636_v38, 0.0  ;;  %v3644_v2 = vsel %vm9924_vm0, %v3235_v19, 0.0 }
 0x2c8   :  { %v3041_v49 = vadd.f32 %v8526_v10, %v9914_v22  ;;  %v3167_v42 = vsub.f32 %v3039_v14, %v3103_v28  ;;  %v4556_v14 = vld [vmem:[#allocation4 + $0x8] sm:$0xff]  ;;  %v3113_v22 = vmul.f32 2.0, %v8852_v56  ;;  %v4364_v56 = vld [vmem:[#allocation2 + $0x10] sm:$0xff] }
 0x2c9   :  { %v1685_v63 = vpop.f32.mrb[60].mxu1  ;;  %4004 = vadd.xlane.f32.xlu0 %v3632_v51  ;;  %v3638_v39 = vsel %vm9912_vm7, %v3229_v3, 0.0  ;;  %v3830_v21 = vsel %vm9913_vm4, %v3229_v3, 0.0  ;;  %v3109_v51 = vmul.f32 2.0, %v8840_v30  ;;  %v4363_v3 = vld [vmem:[#allocation2 + $0x8] sm:$0xff]  ;;  %vm9933_vm7 = vmmov %vm9926_vm1 }
 0x2ca   :  { %v8862_v8 = vadd.f32 %v2777_v27, %v1685_v63  ;;  %v1687_v57 = vpop.f32.mrb[61].mxu1  ;;  %v3916_v62 = vmax.f32 %v3830_v21, 0.0  ;;  %v3169_v48 = vsub.f32 %v3041_v49, %v3105_v6  ;;  %v3231_v63 = vmax.f32 %v3167_v42, 0.0  ;;  %v9927_v21 = vld [vmem:[#allocation15_spill] sm:$0xff]  ;;  %v4461_v42 = vld [vmem:[#allocation3 + $0x10] sm:$0xff]  ;;  %vm9934_vm4 = vmmov %vm9926_vm1 }
 0x2cb   :  { %4007 = vadd.xlane.f32.xlu1 %v3634_v15  ;;  %v4108_v27 = vmax.f32 %v3638_v39, 0.0  ;;  %v3836_v6 = vsel %vm9925_vm9, %v3235_v19, 0.0  ;;  %vm9943_vm9 = vnez %v9773_v36 }
 0x2cc   :  { %v3233_v43 = vmax.f32 %v3169_v48, 0.0  ;;  %v3640_v24 = vsel %vm9915_vm14, %v3231_v63, 0.0  ;;  %v3832_v57 = vsel %vm9916_vm6, %v3231_v63, 0.0  ;;  %v3925_v48 = vmax.f32 %v3836_v6, 0.0  ;;  %vm9935_vm14 = vmmov %vm9926_vm1 }
 0x2cd   :  { %v1693_v31 = vpop.f32.mrb[62].mxu1  ;;  %3908 = vmax.xlane.f32.xlu0 %v3907_v5  ;;  %v3919_v0 = vmax.f32 %v3832_v57, 0.0  ;;  %v4555_v5 = vld [vmem:[#allocation4] sm:$0xff]  ;;  %v4111_v61 = vmax.f32 %v3640_v24, 0.0  ;;  %vm9936_vm6 = vmmov %vm9926_vm1 }
 0x2ce   :  { %v8872_v23 = vadd.f32 %v2784_v29, %v1693_v31  ;;  %v1695_v17 = vpop.f32.mrb[63].mxu1  ;;  %v3642_v47 = vsel %vm9918_vm5, %v3233_v43, 0.0  ;;  %v3834_v54 = vsel %vm9919_vm10, %v3233_v43, 0.0  ;;  %v9920_v31 = vld [vmem:[#allocation43_spill] sm:$0xff]  ;;  %v4878_v57 = vld [vmem:[#allocation5] sm:$0xff]  ;;  %vm9937_vm5 = vmmov %vm9926_vm1 }
 0x2cf   :  { %3911 = vmax.xlane.f32.xlu1 %v3910_v52  ;;  %v3045_v29 = vadd.f32 %v8526_v10, %v9920_v31  ;;  %v4362_v17 = vld [vmem:[#allocation2] sm:$0xff]  ;;  %v3922_v15 = vmax.f32 %v3834_v54, 0.0  ;;  %v4460_v52 = vld [vmem:[#allocation3 + $0x8] sm:$0xff]  ;;  %v4114_v33 = vmax.f32 %v3642_v47, 0.0  ;;  %v4117_v54 = vmax.f32 %v3644_v2, 0.0  ;;  %vm9938_vm10 = vmmov %vm9924_vm0 }
 0x2d1   :  { %4100 = vmax.xlane.f32.xlu0 %v4099_v50  ;;  %v3173_v11 = vsub.f32 %v3045_v29, %v3109_v51 }
 0x2d3   :  { %4103 = vmax.xlane.f32.xlu1 %v4102_v1  ;;  %v3237_v40 = vmax.f32 %v3173_v11, 0.0 }
 0x2d5   :  { %4010 = vadd.xlane.f32.xlu0 %v3636_v38  ;;  %v3111_v38 = vmul.f32 2.0, %v8842_v20  ;;  %v3646_v20 = vsel %vm9928_vm8, %v3237_v40, 0.0  ;;  %vm9945_vm8 = vmmov %vm9926_vm1 }
 0x2d7   :  { %4013 = vadd.xlane.f32.xlu1 %v3638_v39 }
 0x2d9   :  { %3914 = vmax.xlane.f32.xlu0 %v3913_v16  ;;  %v3047_v16 = vadd.f32 %v8526_v10, %v9927_v21 }
 0x2db   :  { %3917 = vmax.xlane.f32.xlu1 %v3916_v62  ;;  %v3948_v25 = vpop.xlane.xlu1 %3947  ;;  %v3838_v62 = vsel %vm9929_vm11, %v3237_v40, 0.0  ;;  %vm9946_vm11 = vmmov %vm9926_vm1 }
 0x2dc   :  { %v4491_v46 = vadd.f32 %v4459_v18, %v3948_v25  ;;  %v3852_v30 = vpop.xlane.xlu0 %3851  ;;  %v4462_v25 = vld [vmem:[#allocation3 + $0x18] sm:$0xff] }
 0x2dd   :  { %4106 = vmax.xlane.f32.xlu0 %v4105_v45  ;;  %v4394_v44 = vmax.f32 %v4362_v17, %v3852_v30  ;;  %v9931_v45 = vld [vmem:[#allocation45_spill] sm:$0xff] }
 0x2de   :  { %4523 = vst.msk [vmem:[#allocation3] sm:$0xff] %vm9921_vm3, %v4491_v46  ;;  %v3049_v63 = vadd.f32 %v8526_v10, %v9931_v45  ;;  %v4120_v46 = vmax.f32 %v3646_v20, 0.0  ;;  %vm9939_vm3 = vnez %v9763_v12 }
 0x2df   :  { %4109 = vmax.xlane.f32.xlu1 %v4108_v27  ;;  %v4044_v13 = vpop.xlane.xlu1 %4043  ;;  %4427 = vst.msk [vmem:[#allocation2] sm:$0xff] %vm9922_vm12, %v4394_v44  ;;  %v3175_v27 = vsub.f32 %v3047_v16, %v3111_v38  ;;  %vm9940_vm12 = vmmov %vm9926_vm1 }
 0x2e0   :  { %v4587_v50 = vmax.f32 %v4555_v5, %v4044_v13  ;;  %v3951_v1 = vpop.xlane.xlu0 %3950  ;;  %v3177_v9 = vsub.f32 %v3049_v63, %v3113_v22  ;;  %v4879_v13 = vld [vmem:[#allocation5 + $0x8] sm:$0xff] }
 0x2e1   :  { %4016 = vadd.xlane.f32.xlu0 %v3640_v24  ;;  %v4492_v28 = vadd.f32 %v4460_v52, %v3951_v1  ;;  %v3928_v24 = vmax.f32 %v3838_v62, 0.0  ;;  %v3239_v31 = vmax.f32 %v3175_v27, 0.0  ;;  %v3115_v52 = vmul.f32 2.0, %v8860_v26  ;;  %v4365_v1 = vld [vmem:[#allocation2 + $0x18] sm:$0xff]  ;;  %v9942_v26 = vld [vmem:[#allocation16_spill] sm:$0xff] }
 0x2e2   :  { %4619 = vst.msk [vmem:[#allocation4] sm:$0xff] %vm9923_vm13, %v4587_v50  ;;  %v3241_v11 = vmax.f32 %v3177_v9, 0.0  ;;  %vm9941_vm13 = vmmov %vm9926_vm1  ;;  %v4880_v27 = vld [vmem:[#allocation5 + $0x10] sm:$0xff] }
 0x2e3   :  { %4019 = vadd.xlane.f32.xlu1 %v3642_v47  ;;  %v3855_v41 = vpop.xlane.xlu1 %3854  ;;  %4524 = vst.msk [vmem:[#allocation3 + $0x8] sm:$0xff] %vm9926_vm1, %v4492_v28  ;;  %v4557_v47 = vld [vmem:[#allocation4 + $0x10] sm:$0xff]  ;;  %v3648_v40 = vsel %vm9938_vm10, %v3239_v31, 0.0  ;;  %vm9953_vm10 = vmmov %vm9924_vm0 }
 0x2e4   :  { %v4395_v39 = vmax.f32 %v4363_v3, %v3855_v41  ;;  %v3840_v3 = vsel %vm9939_vm3, %v3239_v31, 0.0  ;;  %v3051_v41 = vadd.f32 %v8526_v10, %v9942_v26  ;;  %v3650_v12 = vsel %vm9924_vm0, %v3241_v11, 0.0 }
 0x2e5   :  { %3920 = vmax.xlane.f32.xlu0 %v3919_v0  ;;  %v4814_v29 = vld [vmem:[#allocation3] sm:$0xff]  ;;  %v3842_v21 = vsel %vm9943_vm9, %v3241_v11, 0.0 }
 0x2e6   :  { %4428 = vst.msk [vmem:[#allocation2 + $0x8] sm:$0xff] %vm9930_vm15, %v4395_v39  ;;  %v4750_v43 = vld [vmem:[#allocation2] sm:$0xff]  ;;  %v3179_v62 = vsub.f32 %v3051_v41, %v3115_v52  ;;  %v3934_v63 = vmax.f32 %v3842_v21, 0.0  ;;  %vm9947_vm15 = vmmov %vm9926_vm1  ;;  %v4560_v41 = vld [vmem:[#allocation4 + $0x28] sm:$0xff] }
 0x2e7   :  { %3923 = vmax.xlane.f32.xlu1 %v3922_v15  ;;  %4782 = vst.msk [vmem:[%s9333_s6] sm:$0xff] %vm9932_vm2, %v4750_v43  ;;  %v4366_v39 = vld [vmem:[#allocation2 + $0x20] sm:$0xff]  ;;  %vm9948_vm2 = vmmov %vm9926_vm1 }
 0x2e9   :  { %4112 = vmax.xlane.f32.xlu0 %v4111_v61  ;;  %v4047_v49 = vpop.xlane.xlu0 %4046  ;;  %v4846_v53 = vld [vmem:[#allocation4] sm:$0xff] }
 0x2ea   :  { %v4588_v55 = vmax.f32 %v4556_v14, %v4047_v49  ;;  %v4910_v18 = vmul.f32 %v4878_v57, %v4846_v53  ;;  %v4463_v61 = vld [vmem:[#allocation3 + $0x20] sm:$0xff]  ;;  %v4815_v14 = vld [vmem:[#allocation3 + $0x8] sm:$0xff]  ;;  %v3931_v49 = vmax.f32 %v3840_v3, 0.0  ;;  %v4123_v57 = vmax.f32 %v3648_v40, 0.0 }
 0x2eb   :  { %4115 = vmax.xlane.f32.xlu1 %v4114_v33  ;;  %v3243_v53 = vmax.f32 %v3179_v62, 0.0 }
 0x2ec   :  { %4620 = vst.msk [vmem:[#allocation4 + $0x8] sm:$0xff] %vm9933_vm7, %v4588_v55  ;;  %v4942_v17 = vadd.f32 %v4910_v18, %v4814_v29  ;;  %v4464_v18 = vld [vmem:[#allocation3 + $0x28] sm:$0xff]  ;;  %vm9949_vm7 = vmmov %vm9926_vm1 }
 0x2ed   :  { %4022 = vadd.xlane.f32.xlu0 %v3644_v2  ;;  %v4751_v30 = vld [vmem:[#allocation2 + $0x8] sm:$0xff]  ;;  %v3117_v2 = vmul.f32 2.0, %v8862_v8 }
 0x2ee   :  { %v4974_v44 = vmul.f32 0.125, %v4942_v17  ;;  %4783 = vst.msk [vmem:[%s9333_s6 + $0x8] sm:$0xff] %vm9936_vm6, %v4751_v30  ;;  %vm9951_vm6 = vmmov %vm9924_vm0 }
 0x2ef   :  { %4025 = vadd.xlane.f32.xlu1 %v3646_v20  ;;  %v9944_v20 = vld [vmem:[#allocation46_spill] sm:$0xff]  ;;  %vm9958_vm0 = vmmov %vm9926_vm1 }
 0x2f0   :  { %v3954_v4 = vpop.xlane.xlu1 %3953  ;;  %5006 = vst.msk [vmem:[%s9334_s7] sm:$0xff] %vm9940_vm12, %v4974_v44  ;;  %vm9956_vm12 = vmmov %vm9926_vm1 }
 0x2f1   :  { %v4493_v7 = vadd.f32 %v4461_v42, %v3954_v4  ;;  %3926 = vmax.xlane.f32.xlu0 %v3925_v48  ;;  %v3053_v42 = vadd.f32 %v8526_v10, %v9944_v20  ;;  %v4558_v48 = vld [vmem:[#allocation4 + $0x18] sm:$0xff]  ;;  %vm9960_vm9 = vmmov %vm9951_vm6 }
 0x2f2   :  { %v3858_v51 = vpop.xlane.xlu0 %3857 }
 0x2f3   :  { %4525 = vst.msk [vmem:[#allocation3 + $0x10] sm:$0xff] %vm9934_vm4, %v4493_v7  ;;  %v4396_v0 = vmax.f32 %v4364_v56, %v3858_v51  ;;  %3929 = vmax.xlane.f32.xlu1 %v3928_v24  ;;  %v4847_v33 = vld [vmem:[#allocation4 + $0x8] sm:$0xff]  ;;  %v3181_v43 = vsub.f32 %v3053_v42, %v3117_v2  ;;  %v4559_v7 = vld [vmem:[#allocation4 + $0x20] sm:$0xff]  ;;  %vm3586_vm4 = vcmp.eq.s32.totalorder %v8485_v35, %v7682_v60 }
 0x2f4   :  { %v4050_v32 = vpop.xlane.xlu1 %4049  ;;  %v4911_v28 = vmul.f32 %v4879_v13, %v4847_v33  ;;  %vm8980_vm3 = vmand %vm3586_vm4, %vm9953_vm10  ;;  %v4882_v2 = vld [vmem:[#allocation5 + $0x20] sm:$0xff] }
 0x2f5   :  { %4429 = vst.msk [vmem:[#allocation2 + $0x10] sm:$0xff] %vm9935_vm14, %v4396_v0  ;;  %v4589_v15 = vmax.f32 %v4557_v47, %v4050_v32  ;;  %4118 = vmax.xlane.f32.xlu0 %v4117_v54  ;;  %v4126_v0 = vmax.f32 %v3650_v12, 0.0  ;;  %v3245_v29 = vmax.f32 %v3181_v43, 0.0  ;;  %vm9950_vm14 = vmmov %vm9926_vm1  ;;  %v4563_v35 = vld [vmem:[#allocation4 + $0x40] sm:$0xff] }
 0x2f6   :  { %v3957_v5 = vpop.xlane.xlu0 %3956  ;;  %v4943_v16 = vadd.f32 %v4911_v28, %v4815_v14  ;;  %vm9966_vm4 = vmmov %vm9951_vm6 }
 0x2f7   :  { %4621 = vst.msk [vmem:[#allocation4 + $0x10] sm:$0xff] %vm9937_vm5, %v4589_v15  ;;  %v4494_v19 = vadd.f32 %v4462_v25, %v3957_v5  ;;  %4121 = vmax.xlane.f32.xlu1 %v4120_v46  ;;  %v4465_v25 = vld [vmem:[#allocation3 + $0x30] sm:$0xff]  ;;  %v3119_v15 = vmul.f32 2.0, %v8872_v23  ;;  %v3652_v5 = vsel %vm9951_vm6, %v3243_v53, 0.0  ;;  %vm9952_vm5 = vnez %v9768_v58  ;;  %v9959_v23 = vld [vmem:[#allocation17_spill] sm:$0xff]  ;;  %vm9969_vm6 = vmmov %vm9958_vm0 }
 0x2f8   :  { %v3960_v50 = vpop.xlane.xlu1 %3959  ;;  %v4975_v45 = vmul.f32 0.125, %v4943_v16  ;;  %v3844_v44 = vsel %vm9952_vm5, %v3243_v53, 0.0  ;;  %v3654_v33 = vsel %vm9960_vm9, %v3245_v29, 0.0  ;;  %v4129_v42 = vmax.f32 %v3652_v5, 0.0  ;;  %vm9970_vm5 = vmmov %vm9958_vm0  ;;  %v4369_v53 = vld [vmem:[#allocation2 + $0x38] sm:$0xff] }
 0x2f9   :  { %4526 = vst.msk [vmem:[#allocation3 + $0x18] sm:$0xff] %vm9941_vm13, %v4494_v19  ;;  %v4495_v38 = vadd.f32 %v4463_v61, %v3960_v50  ;;  %4028 = vadd.xlane.f32.xlu0 %v3648_v40  ;;  %v4367_v61 = vld [vmem:[#allocation2 + $0x28] sm:$0xff]  ;;  %vm9957_vm13 = vmmov %vm9926_vm1  ;;  %v3055_v19 = vadd.f32 %v8526_v10, %v9959_v23  ;;  %v4368_v50 = vld [vmem:[#allocation2 + $0x30] sm:$0xff]  ;;  %v3846_v40 = vsel %vm8980_vm3, %v3245_v29, 0.0  ;;  %v3937_v3 = vmax.f32 %v3844_v44, 0.0 }
 0x2fa   :  { %v3861_v6 = vpop.xlane.xlu0 %3860  ;;  %5007 = vst.msk [vmem:[%s9334_s7 + $0x8] sm:$0xff] %vm9947_vm15, %v4975_v45  ;;  %v4816_v51 = vld [vmem:[#allocation3 + $0x10] sm:$0xff]  ;;  %v4881_v10 = vld [vmem:[#allocation5 + $0x18] sm:$0xff]  ;;  %vm9964_vm15 = vmmov %vm9958_vm0 }
 0x2fb   :  { %4527 = vst.msk [vmem:[#allocation3 + $0x20] sm:$0xff] %vm9926_vm1, %v4495_v38  ;;  %v4397_v22 = vmax.f32 %v4365_v1, %v3861_v6  ;;  %4031 = vadd.xlane.f32.xlu1 %v3650_v12  ;;  %vm9961_vm1 = vmmov %vm9958_vm0  ;;  %v3183_v28 = vsub.f32 %v3055_v19, %v3119_v15  ;;  %v3940_v12 = vmax.f32 %v3846_v40, 0.0  ;;  %v4466_v45 = vld [vmem:[#allocation3 + $0x38] sm:$0xff]  ;;  %v4884_v15 = vld [vmem:[#allocation5 + $0x30] sm:$0xff] }
 0x2fc   :  { %v4752_v8 = vld [vmem:[#allocation2 + $0x10] sm:$0xff]  ;;  %v3864_v55 = vpop.xlane.xlu1 %3863  ;;  %vm9971_vm10 = vmmov %vm9966_vm4 }
 0x2fd   :  { %4784 = vst.msk [vmem:[%s9333_s6 + $0x10] sm:$0xff] %vm9945_vm8, %v4752_v8  ;;  %v4398_v36 = vmax.f32 %v4366_v39, %v3864_v55  ;;  %3932 = vmax.xlane.f32.xlu0 %v3931_v49  ;;  %vm9962_vm8 = vmmov %vm9958_vm0  ;;  %v3247_v8 = vmax.f32 %v3183_v28, 0.0  ;;  %v4469_v28 = vld [vmem:[#allocation3 + $0x50] sm:$0xff] }
 0x2fe   :  { %4430 = vst.msk [vmem:[#allocation2 + $0x18] sm:$0xff] %vm9946_vm11, %v4397_v22  ;;  %v4848_v4 = vld [vmem:[#allocation4 + $0x10] sm:$0xff]  ;;  %v4053_v56 = vpop.xlane.xlu0 %4052  ;;  %vm9963_vm11 = vmmov %vm9958_vm0 }
 0x2ff   :  { %v4912_v24 = vmul.f32 %v4880_v27, %v4848_v4  ;;  %4431 = vst.msk [vmem:[#allocation2 + $0x20] sm:$0xff] %vm9948_vm2, %v4398_v36  ;;  %v4590_v9 = vmax.f32 %v4558_v48, %v4053_v56  ;;  %3935 = vmax.xlane.f32.xlu1 %v3934_v63  ;;  %v4561_v22 = vld [vmem:[#allocation4 + $0x30] sm:$0xff]  ;;  %vm3588_vm2 = vcmp.eq.s32.totalorder %v8491_v37, %v7682_v60  ;;  %v4132_v27 = vmax.f32 %v3654_v33, 0.0  ;;  %v4467_v56 = vld [vmem:[#allocation3 + $0x40] sm:$0xff]  ;;  %vm9974_vm9 = vmmov %vm9958_vm0 }
 0x300   :  { %v4056_v47 = vpop.xlane.xlu1 %4055  ;;  %v4817_v39 = vld [vmem:[#allocation3 + $0x18] sm:$0xff] }
 0x301   :  { %v4944_v54 = vadd.f32 %v4912_v24, %v4816_v51  ;;  %4622 = vst.msk [vmem:[#allocation4 + $0x18] sm:$0xff] %vm9949_vm7, %v4590_v9  ;;  %v4591_v31 = vmax.f32 %v4559_v7, %v4056_v47  ;;  %4124 = vmax.xlane.f32.xlu0 %v4123_v57  ;;  %vm9965_vm7 = vmmov %vm9958_vm0  ;;  %v3656_v9 = vsel %vm9971_vm10, %v3247_v8, 0.0 }
 0x302   :  { %v3963_v32 = vpop.xlane.xlu0 %3962  ;;  %v4818_v55 = vld [vmem:[#allocation3 + $0x20] sm:$0xff]  ;;  %v4135_v19 = vmax.f32 %v3656_v9, 0.0  ;;  %vm9986_vm10 = vmmov %vm9958_vm0 }
 0x303   :  { %v4976_v17 = vmul.f32 0.125, %v4944_v54  ;;  %4623 = vst.msk [vmem:[#allocation4 + $0x20] sm:$0xff] %vm9950_vm14, %v4591_v31  ;;  %v4496_v46 = vadd.f32 %v4464_v18, %v3963_v32  ;;  %4127 = vmax.xlane.f32.xlu1 %v4126_v0  ;;  %vm9011_vm14 = vmand %vm3588_vm2, %vm9966_vm4  ;;  %v4262_v54 = vsel %vm8980_vm3, 1.0, %v9690_v34  ;;  %v4370_v0 = vld [vmem:[#allocation2 + $0x40] sm:$0xff]  ;;  %v4883_v32 = vld [vmem:[#allocation5 + $0x28] sm:$0xff] }
 0x304   :  { %v3966_v30 = vpop.xlane.xlu1 %3965  ;;  %v3848_v51 = vsel %vm9011_vm14, %v3247_v8, 0.0  ;;  %vm9977_vm3 = vmmov %vm9958_vm0 }
 0x305   :  { %v4753_v11 = vld [vmem:[#allocation2 + $0x18] sm:$0xff]  ;;  %5008 = vst.msk [vmem:[%s9334_s7 + $0x10] sm:$0xff] %vm9956_vm12, %v4976_v17  ;;  %v4497_v58 = vadd.f32 %v4465_v25, %v3966_v30  ;;  %4034 = vadd.xlane.f32.xlu0 %v3652_v5  ;;  %vm9972_vm12 = vmmov %vm9958_vm0  ;;  %v3943_v29 = vmax.f32 %v3848_v51, 0.0 }
 0x306   :  { %4785 = vst.msk [vmem:[%s9333_s6 + $0x18] sm:$0xff] %vm9957_vm13, %v4753_v11  ;;  %v4754_v13 = vld [vmem:[#allocation2 + $0x20] sm:$0xff]  ;;  %v3867_v52 = vpop.xlane.xlu0 %3866  ;;  %vm9973_vm13 = vmmov %vm9958_vm0 }
 0x307   :  { %4528 = vst.msk [vmem:[#allocation3 + $0x28] sm:$0xff] %vm9958_vm0, %v4496_v46  ;;  %v4399_v1 = vmax.f32 %v4367_v61, %v3867_v52  ;;  %4037 = vadd.xlane.f32.xlu1 %v3654_v33  ;;  %v4562_v46 = vld [vmem:[#allocation4 + $0x38] sm:$0xff]  ;;  %vm9980_vm2 = vmmov %vm9958_vm0 }
 0x308   :  { %4786 = vst.msk [vmem:[%s9333_s6 + $0x20] sm:$0xff] %vm9961_vm1, %v4754_v13  ;;  %v4849_v38 = vld [vmem:[#allocation4 + $0x18] sm:$0xff]  ;;  %v3870_v26 = vpop.xlane.xlu1 %3869  ;;  %vm9975_vm1 = vmmov %vm9958_vm0 }
 0x309   :  { %4529 = vst.msk [vmem:[#allocation3 + $0x30] sm:$0xff] %vm9962_vm8, %v4497_v58  ;;  %v4913_v14 = vmul.f32 %v4881_v10, %v4849_v38  ;;  %v4400_v6 = vmax.f32 %v4368_v50, %v3870_v26  ;;  %3938 = vmax.xlane.f32.xlu0 %v3937_v3  ;;  %vm9976_vm8 = vmmov %vm9958_vm0  ;;  %v4468_v50 = vld [vmem:[#allocation3 + $0x48] sm:$0xff] }
 0x30a   :  { %4432 = vst.msk [vmem:[#allocation2 + $0x28] sm:$0xff] %vm9963_vm11, %v4399_v1  ;;  %v4850_v21 = vld [vmem:[#allocation4 + $0x20] sm:$0xff]  ;;  %v4059_v16 = vpop.xlane.xlu0 %4058  ;;  %vm9978_vm11 = vmmov %vm9958_vm0 }
 0x30b   :  { %v4945_v49 = vadd.f32 %v4913_v14, %v4817_v39  ;;  %v4914_v20 = vmul.f32 %v4882_v2, %v4850_v21  ;;  %4433 = vst.msk [vmem:[#allocation2 + $0x30] sm:$0xff] %vm9964_vm15, %v4400_v6  ;;  %v4592_v62 = vmax.f32 %v4560_v41, %v4059_v16  ;;  %3941 = vmax.xlane.f32.xlu1 %v3940_v12  ;;  %vm9979_vm15 = vmmov %vm9958_vm0  ;;  %v4264_v14 = vsel %vm9011_vm14, 1.0, %v9690_v34  ;;  %v4371_v6 = vld [vmem:[#allocation2 + $0x48] sm:$0xff]  ;;  %v4372_v16 = vld [vmem:[#allocation2 + $0x50] sm:$0xff] }
 0x30c   :  { %v4062_v48 = vpop.xlane.xlu1 %4061  ;;  %vm9982_vm4 = vmmov %vm9958_vm0 }
 0x30d   :  { %v4977_v36 = vmul.f32 0.125, %v4945_v49  ;;  %v4946_v63 = vadd.f32 %v4914_v20, %v4818_v55  ;;  %4624 = vst.msk [vmem:[#allocation4 + $0x28] sm:$0xff] %vm9965_vm7, %v4592_v62  ;;  %v4593_v43 = vmax.f32 %v4561_v22, %v4062_v48  ;;  %4130 = vmax.xlane.f32.xlu0 %v4129_v42  ;;  %vm9981_vm7 = vmmov %vm9958_vm0  ;;  %v4885_v22 = vld [vmem:[#allocation5 + $0x38] sm:$0xff]  ;;  %v4564_v42 = vld [vmem:[#allocation4 + $0x48] sm:$0xff] }
 0x30e   :  { %v3969_v4 = vpop.xlane.xlu0 %3968  ;;  %v4819_v5 = vld [vmem:[#allocation3 + $0x28] sm:$0xff]  ;;  %vm9985_vm14 = vmmov %vm9958_vm0  ;;  %v4886_v62 = vld [vmem:[#allocation5 + $0x40] sm:$0xff] }
 0x30f   :  { %5009 = vst.msk [vmem:[%s9334_s7 + $0x18] sm:$0xff] %vm9969_vm6, %v4977_v36  ;;  %v4978_v60 = vmul.f32 0.125, %v4946_v63  ;;  %v4498_v37 = vadd.f32 %v4466_v45, %v3969_v4  ;;  %4133 = vmax.xlane.f32.xlu1 %v4132_v27  ;;  %vm9983_vm6 = vmmov %vm9958_vm0  ;;  %v4565_v63 = vld [vmem:[#allocation4 + $0x50] sm:$0xff] }
 0x310   :  { %4625 = vst.msk [vmem:[#allocation4 + $0x30] sm:$0xff] %vm9970_vm5, %v4593_v43  ;;  %v3972_v57 = vpop.xlane.xlu1 %3971  ;;  %v4820_v52 = vld [vmem:[#allocation3 + $0x30] sm:$0xff]  ;;  %vm9984_vm5 = vmmov %vm9958_vm0 }
 0x311   :  { %v4755_v24 = vld [vmem:[#allocation2 + $0x28] sm:$0xff]  ;;  %5010 = vst.msk [vmem:[%s9334_s7 + $0x20] sm:$0xff] %vm9972_vm12, %v4978_v60  ;;  %v4499_v47 = vadd.f32 %v4467_v56, %v3972_v57  ;;  %4040 = vadd.xlane.f32.xlu0 %v3656_v9  ;;  %vm9987_vm12 = vmmov %vm9958_vm0  ;;  %v4470_v60 = vld [vmem:[#allocation3 + $0x58] sm:$0xff] }
 0x312   :  { %4787 = vst.msk [vmem:[%s9333_s6 + $0x28] sm:$0xff] %vm9973_vm13, %v4755_v24  ;;  %v4756_v59 = vld [vmem:[#allocation2 + $0x30] sm:$0xff]  ;;  %v3873_v18 = vpop.xlane.xlu0 %3872  ;;  %vm9988_vm13 = vmmov %vm9958_vm0 }
 0x313   :  { %4530 = vst.msk [vmem:[#allocation3 + $0x38] sm:$0xff] %vm9958_vm0, %v4498_v37  ;;  %v4401_v31 = vmax.f32 %v4369_v53, %v3873_v18  ;;  %4357 = vadd.xlane.f32.xlu1 %v4262_v54  ;;  %v4471_v53 = vld [vmem:[#allocation3 + $0x60] sm:$0xff]  ;;  %v4373_v54 = vld [vmem:[#allocation2 + $0x58] sm:$0xff] }
 0x314   :  { %4788 = vst.msk [vmem:[%s9333_s6 + $0x30] sm:$0xff] %vm9974_vm9, %v4756_v59  ;;  %v4851_v25 = vld [vmem:[#allocation4 + $0x28] sm:$0xff]  ;;  %v3876_v17 = vpop.xlane.xlu1 %3875  ;;  %vm9989_vm9 = vmmov %vm9958_vm0 }
 0x315   :  { %4531 = vst.msk [vmem:[#allocation3 + $0x40] sm:$0xff] %vm9975_vm1, %v4499_v47  ;;  %v4915_v11 = vmul.f32 %v4883_v32, %v4851_v25  ;;  %v4402_v30 = vmax.f32 %v4370_v0, %v3876_v17  ;;  %3944 = vmax.xlane.f32.xlu0 %v3943_v29  ;;  %vm9990_vm1 = vmmov %vm9958_vm0  ;;  %v4374_v32 = vld [vmem:[#allocation2 + $0x60] sm:$0xff]  ;;  %v4887_v17 = vld [vmem:[#allocation5 + $0x48] sm:$0xff] }
 0x316   :  { %4434 = vst.msk [vmem:[#allocation2 + $0x38] sm:$0xff] %vm9976_vm8, %v4401_v31  ;;  %v4065_v44 = vpop.xlane.xlu0 %4064  ;;  %vm9991_vm8 = vmmov %vm9958_vm0 }
 0x317   :  { %v4852_v61 = vld [vmem:[#allocation4 + $0x30] sm:$0xff]  ;;  %v4947_v58 = vadd.f32 %v4915_v11, %v4819_v5  ;;  %4435 = vst.msk [vmem:[#allocation2 + $0x40] sm:$0xff] %vm9977_vm3, %v4402_v30  ;;  %v4594_v13 = vmax.f32 %v4562_v46, %v4065_v44  ;;  %vm9992_vm3 = vmmov %vm9958_vm0  ;;  %v4566_v11 = vld [vmem:[#allocation4 + $0x58] sm:$0xff] }
 0x318   :  { %v4916_v23 = vmul.f32 %v4884_v15, %v4852_v61  ;;  %v4068_v33 = vpop.xlane.xlu1 %4067  ;;  %v4888_v30 = vld [vmem:[#allocation5 + $0x50] sm:$0xff] }
 0x319   :  { %v4979_v40 = vmul.f32 0.125, %v4947_v58  ;;  %4626 = vst.msk [vmem:[#allocation4 + $0x38] sm:$0xff] %vm9978_vm11, %v4594_v13  ;;  %v4595_v3 = vmax.f32 %v4563_v35, %v4068_v33  ;;  %4136 = vmax.xlane.f32.xlu0 %v4135_v19  ;;  %vm9993_vm11 = vmmov %vm9958_vm0 }
 0x31a   :  { %v4948_v1 = vadd.f32 %v4916_v23, %v4820_v52  ;;  %v3975_v10 = vpop.xlane.xlu0 %3974  ;;  %v4821_v48 = vld [vmem:[#allocation3 + $0x38] sm:$0xff]  ;;  %v4567_v23 = vld [vmem:[#allocation4 + $0x60] sm:$0xff] }
 0x31b   :  { %5011 = vst.msk [vmem:[%s9334_s7 + $0x28] sm:$0xff] %vm9979_vm15, %v4979_v40  ;;  %v4500_v26 = vadd.f32 %v4468_v50, %v3975_v10  ;;  %vm9994_vm15 = vmmov %vm9958_vm0  ;;  %v4472_v40 = vld [vmem:[#allocation3 + $0x68] sm:$0xff] }
 0x31c   :  { %v4980_v38 = vmul.f32 0.125, %v4948_v1  ;;  %4627 = vst.msk [vmem:[#allocation4 + $0x40] sm:$0xff] %vm9980_vm2, %v4595_v3  ;;  %v3978_v2 = vpop.xlane.xlu1 %3977  ;;  %v4822_v56 = vld [vmem:[#allocation3 + $0x40] sm:$0xff]  ;;  %vm9995_vm2 = vmmov %vm9958_vm0 }
 0x31d   :  { %v4757_v41 = vld [vmem:[#allocation2 + $0x38] sm:$0xff]  ;;  %4532 = vst.msk [vmem:[#allocation3 + $0x48] sm:$0xff] %vm9983_vm6, %v4500_v26  ;;  %v4501_v12 = vadd.f32 %v4469_v28, %v3978_v2  ;;  %4360 = vadd.xlane.f32.xlu0 %v4264_v14  ;;  %vm9998_vm6 = vmmov %vm9958_vm0 }
 0x31e   :  { %5012 = vst.msk [vmem:[%s9334_s7 + $0x30] sm:$0xff] %vm9981_vm7, %v4980_v38  ;;  %v4758_v39 = vld [vmem:[#allocation2 + $0x40] sm:$0xff]  ;;  %v3879_v21 = vpop.xlane.xlu0 %3878  ;;  %vm9996_vm7 = vmmov %vm9958_vm0  ;;  %v4473_v38 = vld [vmem:[#allocation3 + $0x70] sm:$0xff] }
 0x31f   :  { %4789 = vst.msk [vmem:[%s9333_s6 + $0x38] sm:$0xff] %vm9982_vm4, %v4757_v41  ;;  %v4403_v34 = vmax.f32 %v4371_v6, %v3879_v21  ;;  %vm9997_vm4 = vmmov %vm9958_vm0  ;;  %v4375_v6 = vld [vmem:[#allocation2 + $0x68] sm:$0xff] }
 0x320   :  { %4790 = vst.msk [vmem:[%s9333_s6 + $0x40] sm:$0xff] %vm9984_vm5, %v4758_v39  ;;  %v4853_v49 = vld [vmem:[#allocation4 + $0x38] sm:$0xff]  ;;  %v3882_v20 = vpop.xlane.xlu1 %3881  ;;  %vm9999_vm5 = vmmov %vm9958_vm0 }
 0x321   :  { %4533 = vst.msk [vmem:[#allocation3 + $0x50] sm:$0xff] %vm9985_vm14, %v4501_v12  ;;  %v4917_v8 = vmul.f32 %v4885_v22, %v4853_v49  ;;  %v4404_v55 = vmax.f32 %v4372_v16, %v3882_v20  ;;  %vm10000_vm14 = vmmov %vm9958_vm0  ;;  %v4376_v16 = vld [vmem:[#allocation2 + $0x70] sm:$0xff]  ;;  %v4889_v22 = vld [vmem:[#allocation5 + $0x58] sm:$0xff] }
 0x322   :  { %4436 = vst.msk [vmem:[#allocation2 + $0x48] sm:$0xff] %vm9986_vm10, %v4403_v34  ;;  %v4071_v36 = vpop.xlane.xlu0 %4070  ;;  %vm10001_vm10 = vmmov %vm9958_vm0 }
 0x323   :  { %v4854_v45 = vld [vmem:[#allocation4 + $0x40] sm:$0xff]  ;;  %v4949_v27 = vadd.f32 %v4917_v8, %v4821_v48  ;;  %4437 = vst.msk [vmem:[#allocation2 + $0x50] sm:$0xff] %vm9987_vm12, %v4404_v55  ;;  %v4596_v4 = vmax.f32 %v4564_v42, %v4071_v36  ;;  %vm10002_vm12 = vmmov %vm9958_vm0  ;;  %v4568_v42 = vld [vmem:[#allocation4 + $0x68] sm:$0xff] }
 0x324   :  { %v4918_v43 = vmul.f32 %v4886_v62, %v4854_v45  ;;  %v4074_v7 = vpop.xlane.xlu1 %4073  ;;  %v4823_v44 = vld [vmem:[#allocation3 + $0x48] sm:$0xff]  ;;  %v4890_v62 = vld [vmem:[#allocation5 + $0x60] sm:$0xff] }
 0x325   :  { %v4981_v37 = vmul.f32 0.125, %v4949_v27  ;;  %4628 = vst.msk [vmem:[#allocation4 + $0x48] sm:$0xff] %vm9988_vm13, %v4596_v4  ;;  %v4597_v57 = vmax.f32 %v4565_v63, %v4074_v7  ;;  %vm10003_vm13 = vmmov %vm9958_vm0  ;;  %v4569_v63 = vld [vmem:[#allocation4 + $0x70] sm:$0xff] }
 0x326   :  { %v4950_v24 = vadd.f32 %v4918_v43, %v4822_v56  ;;  %v3981_v9 = vpop.xlane.xlu0 %3980 }
 0x327   :  { %5013 = vst.msk [vmem:[%s9334_s7 + $0x38] sm:$0xff] %vm9958_vm0, %v4981_v37  ;;  %v4502_v47 = vadd.f32 %v4470_v60, %v3981_v9  ;;  %v4474_v60 = vld [vmem:[#allocation3 + $0x78] sm:$0xff] }
 0x328   :  { %v4982_v51 = vmul.f32 0.125, %v4950_v24  ;;  %4629 = vst.msk [vmem:[#allocation4 + $0x50] sm:$0xff] %vm9989_vm9, %v4597_v57  ;;  %v3984_v18 = vpop.xlane.xlu1 %3983  ;;  %v4824_v33 = vld [vmem:[#allocation3 + $0x50] sm:$0xff]  ;;  %vm10004_vm9 = vmmov %vm9958_vm0 }
 0x329   :  { %v4759_v59 = vld [vmem:[#allocation2 + $0x48] sm:$0xff]  ;;  %4534 = vst.msk [vmem:[#allocation3 + $0x58] sm:$0xff] %vm9992_vm3, %v4502_v47  ;;  %v4503_v0 = vadd.f32 %v4471_v53, %v3984_v18  ;;  %v4475_v53 = vld [vmem:[#allocation3 + $0x80] sm:$0xff]  ;;  %vm10007_vm3 = vmmov %vm9958_vm0 }
 0x32a   :  { %5014 = vst.msk [vmem:[%s9334_s7 + $0x40] sm:$0xff] %vm9990_vm1, %v4982_v51  ;;  %v4760_v31 = vld [vmem:[#allocation2 + $0x50] sm:$0xff]  ;;  %v3885_v29 = vpop.xlane.xlu0 %3884  ;;  %vm10005_vm1 = vmmov %vm9958_vm0 }
 0x32b   :  { %4791 = vst.msk [vmem:[%s9333_s6 + $0x48] sm:$0xff] %vm9991_vm8, %v4759_v59  ;;  %v4405_v25 = vmax.f32 %v4373_v54, %v3885_v29  ;;  %vm10006_vm8 = vmmov %vm9958_vm0  ;;  %v4377_v54 = vld [vmem:[#allocation2 + $0x78] sm:$0xff] }
 0x32c   :  { %4792 = vst.msk [vmem:[%s9333_s6 + $0x50] sm:$0xff] %vm9993_vm11, %v4760_v31  ;;  %v4855_v46 = vld [vmem:[#allocation4 + $0x48] sm:$0xff]  ;;  %v3888_v15 = vpop.xlane.xlu1 %3887  ;;  %vm10008_vm11 = vmmov %vm9958_vm0 }
 0x32d   :  { %4535 = vst.msk [vmem:[#allocation3 + $0x60] sm:$0xff] %vm9994_vm15, %v4503_v0  ;;  %v4919_v5 = vmul.f32 %v4887_v17, %v4855_v46  ;;  %v4406_v61 = vmax.f32 %v4374_v32, %v3888_v15  ;;  %vm10009_vm15 = vmmov %vm9958_vm0  ;;  %v4378_v32 = vld [vmem:[#allocation2 + $0x80] sm:$0xff]  ;;  %v4891_v17 = vld [vmem:[#allocation5 + $0x68] sm:$0xff] }
 0x32e   :  { %4438 = vst.msk [vmem:[#allocation2 + $0x58] sm:$0xff] %vm9995_vm2, %v4405_v25  ;;  %v4077_v58 = vpop.xlane.xlu0 %4076  ;;  %vm10010_vm2 = vmmov %vm9958_vm0 }
 0x32f   :  { %v4856_v35 = vld [vmem:[#allocation4 + $0x50] sm:$0xff]  ;;  %v4951_v19 = vadd.f32 %v4919_v5, %v4823_v44  ;;  %4439 = vst.msk [vmem:[#allocation2 + $0x60] sm:$0xff] %vm9996_vm7, %v4406_v61  ;;  %v4598_v52 = vmax.f32 %v4566_v11, %v4077_v58  ;;  %vm10011_vm7 = vmmov %vm9958_vm0  ;;  %v4570_v11 = vld [vmem:[#allocation4 + $0x78] sm:$0xff] }
 0x330   :  { %v4920_v13 = vmul.f32 %v4888_v30, %v4856_v35  ;;  %v4080_v50 = vpop.xlane.xlu1 %4079  ;;  %v4825_v48 = vld [vmem:[#allocation3 + $0x58] sm:$0xff]  ;;  %v4892_v30 = vld [vmem:[#allocation5 + $0x70] sm:$0xff] }
 0x331   :  { %v4983_v1 = vmul.f32 0.125, %v4951_v19  ;;  %4630 = vst.msk [vmem:[#allocation4 + $0x58] sm:$0xff] %vm9997_vm4, %v4598_v52  ;;  %v4599_v10 = vmax.f32 %v4567_v23, %v4080_v50  ;;  %vm10012_vm4 = vmmov %vm9958_vm0  ;;  %v4571_v23 = vld [vmem:[#allocation4 + $0x80] sm:$0xff] }
 0x332   :  { %v4952_v3 = vadd.f32 %v4920_v13, %v4824_v33  ;;  %v3987_v28 = vpop.xlane.xlu0 %3986 }
 0x333   :  { %5015 = vst.msk [vmem:[%s9334_s7 + $0x48] sm:$0xff] %vm9998_vm6, %v4983_v1  ;;  %v4504_v41 = vadd.f32 %v4472_v40, %v3987_v28  ;;  %vm10013_vm6 = vmmov %vm9958_vm0  ;;  %v4476_v40 = vld [vmem:[#allocation3 + $0x88] sm:$0xff] }
 0x334   :  { %v4984_v26 = vmul.f32 0.125, %v4952_v3  ;;  %4631 = vst.msk [vmem:[#allocation4 + $0x60] sm:$0xff] %vm9999_vm5, %v4599_v10  ;;  %v3990_v14 = vpop.xlane.xlu1 %3989  ;;  %v4826_v56 = vld [vmem:[#allocation3 + $0x60] sm:$0xff]  ;;  %vm10014_vm5 = vmmov %vm9958_vm0 }
 0x335   :  { %v4761_v2 = vld [vmem:[#allocation2 + $0x58] sm:$0xff]  ;;  %4536 = vst.msk [vmem:[#allocation3 + $0x68] sm:$0xff] %vm10002_vm12, %v4504_v41  ;;  %v4505_v12 = vadd.f32 %v4473_v38, %v3990_v14  ;;  %v4477_v38 = vld [vmem:[#allocation3 + $0x90] sm:$0xff]  ;;  %vm10017_vm12 = vmmov %vm9958_vm0 }
 0x336   :  { %5016 = vst.msk [vmem:[%s9334_s7 + $0x50] sm:$0xff] %vm10000_vm14, %v4984_v26  ;;  %v4762_v39 = vld [vmem:[#allocation2 + $0x60] sm:$0xff]  ;;  %v3891_v21 = vpop.xlane.xlu0 %3890  ;;  %vm10015_vm14 = vmmov %vm9958_vm0 }
 0x337   :  { %4793 = vst.msk [vmem:[%s9333_s6 + $0x58] sm:$0xff] %vm10001_vm10, %v4761_v2  ;;  %v4407_v34 = vmax.f32 %v4375_v6, %v3891_v21  ;;  %vm10016_vm10 = vmmov %vm9958_vm0  ;;  %v4379_v6 = vld [vmem:[#allocation2 + $0x88] sm:$0xff] }
 0x338   :  { %4794 = vst.msk [vmem:[%s9333_s6 + $0x60] sm:$0xff] %vm10003_vm13, %v4762_v39  ;;  %v4857_v49 = vld [vmem:[#allocation4 + $0x58] sm:$0xff]  ;;  %v3894_v20 = vpop.xlane.xlu1 %3893  ;;  %vm10018_vm13 = vmmov %vm9958_vm0 }
 0x339   :  { %4537 = vst.msk [vmem:[#allocation3 + $0x70] sm:$0xff] %vm9958_vm0, %v4505_v12  ;;  %v4921_v8 = vmul.f32 %v4889_v22, %v4857_v49  ;;  %v4408_v55 = vmax.f32 %v4376_v16, %v3894_v20  ;;  %v4380_v16 = vld [vmem:[#allocation2 + $0x90] sm:$0xff]  ;;  %v4893_v22 = vld [vmem:[#allocation5 + $0x78] sm:$0xff] }
 0x33a   :  { %4440 = vst.msk [vmem:[#allocation2 + $0x68] sm:$0xff] %vm10004_vm9, %v4407_v34  ;;  %v4083_v36 = vpop.xlane.xlu0 %4082  ;;  %vm10019_vm9 = vmmov %vm9958_vm0 }
 0x33b   :  { %v4858_v45 = vld [vmem:[#allocation4 + $0x60] sm:$0xff]  ;;  %v4953_v27 = vadd.f32 %v4921_v8, %v4825_v48  ;;  %4441 = vst.msk [vmem:[#allocation2 + $0x70] sm:$0xff] %vm10005_vm1, %v4408_v55  ;;  %v4600_v4 = vmax.f32 %v4568_v42, %v4083_v36  ;;  %vm10020_vm1 = vmmov %vm9958_vm0  ;;  %v4572_v42 = vld [vmem:[#allocation4 + $0x88] sm:$0xff] }
 0x33c   :  { %v4922_v43 = vmul.f32 %v4890_v62, %v4858_v45  ;;  %v4086_v7 = vpop.xlane.xlu1 %4085  ;;  %v4827_v44 = vld [vmem:[#allocation3 + $0x68] sm:$0xff]  ;;  %v4894_v62 = vld [vmem:[#allocation5 + $0x80] sm:$0xff] }
 0x33d   :  { %v4985_v37 = vmul.f32 0.125, %v4953_v27  ;;  %4632 = vst.msk [vmem:[#allocation4 + $0x68] sm:$0xff] %vm10006_vm8, %v4600_v4  ;;  %v4601_v57 = vmax.f32 %v4569_v63, %v4086_v7  ;;  %vm10021_vm8 = vmmov %vm9958_vm0  ;;  %v4573_v63 = vld [vmem:[#allocation4 + $0x90] sm:$0xff] }
 0x33e   :  { %v4954_v24 = vadd.f32 %v4922_v43, %v4826_v56  ;;  %v3993_v9 = vpop.xlane.xlu0 %3992 }
 0x33f   :  { %5017 = vst.msk [vmem:[%s9334_s7 + $0x58] sm:$0xff] %vm10007_vm3, %v4985_v37  ;;  %v4506_v47 = vadd.f32 %v4474_v60, %v3993_v9  ;;  %vm10022_vm3 = vmmov %vm9958_vm0  ;;  %v4478_v60 = vld [vmem:[#allocation3 + $0x98] sm:$0xff] }
 0x340   :  { %v4986_v51 = vmul.f32 0.125, %v4954_v24  ;;  %4633 = vst.msk [vmem:[#allocation4 + $0x70] sm:$0xff] %vm10008_vm11, %v4601_v57  ;;  %v3996_v18 = vpop.xlane.xlu1 %3995  ;;  %v4828_v33 = vld [vmem:[#allocation3 + $0x70] sm:$0xff]  ;;  %vm10023_vm11 = vmmov %vm9958_vm0 }
 0x341   :  { %v4763_v59 = vld [vmem:[#allocation2 + $0x68] sm:$0xff]  ;;  %4538 = vst.msk [vmem:[#allocation3 + $0x78] sm:$0xff] %vm10011_vm7, %v4506_v47  ;;  %v4507_v0 = vadd.f32 %v4475_v53, %v3996_v18  ;;  %v4479_v53 = vld [vmem:[#allocation3 + $0xa0] sm:$0xff]  ;;  %vm10026_vm7 = vmmov %vm9958_vm0 }
 0x342   :  { %5018 = vst.msk [vmem:[%s9334_s7 + $0x60] sm:$0xff] %vm10009_vm15, %v4986_v51  ;;  %v4764_v31 = vld [vmem:[#allocation2 + $0x70] sm:$0xff]  ;;  %v3897_v29 = vpop.xlane.xlu0 %3896  ;;  %vm10024_vm15 = vmmov %vm9958_vm0 }
 0x343   :  { %4795 = vst.msk [vmem:[%s9333_s6 + $0x68] sm:$0xff] %vm10010_vm2, %v4763_v59  ;;  %v4409_v25 = vmax.f32 %v4377_v54, %v3897_v29  ;;  %vm10025_vm2 = vmmov %vm9958_vm0  ;;  %v4381_v54 = vld [vmem:[#allocation2 + $0x98] sm:$0xff] }
 0x344   :  { %4796 = vst.msk [vmem:[%s9333_s6 + $0x70] sm:$0xff] %vm10012_vm4, %v4764_v31  ;;  %v4859_v46 = vld [vmem:[#allocation4 + $0x68] sm:$0xff]  ;;  %v3900_v15 = vpop.xlane.xlu1 %3899  ;;  %vm10027_vm4 = vmmov %vm9958_vm0 }
 0x345   :  { %4539 = vst.msk [vmem:[#allocation3 + $0x80] sm:$0xff] %vm10013_vm6, %v4507_v0  ;;  %v4923_v5 = vmul.f32 %v4891_v17, %v4859_v46  ;;  %v4410_v61 = vmax.f32 %v4378_v32, %v3900_v15  ;;  %vm10028_vm6 = vmmov %vm9958_vm0  ;;  %v4382_v32 = vld [vmem:[#allocation2 + $0xa0] sm:$0xff]  ;;  %v4895_v17 = vld [vmem:[#allocation5 + $0x88] sm:$0xff] }
 0x346   :  { %4442 = vst.msk [vmem:[#allocation2 + $0x78] sm:$0xff] %vm10014_vm5, %v4409_v25  ;;  %v4089_v58 = vpop.xlane.xlu0 %4088  ;;  %vm10029_vm5 = vmmov %vm9958_vm0 }
 0x347   :  { %v4860_v35 = vld [vmem:[#allocation4 + $0x70] sm:$0xff]  ;;  %v4955_v19 = vadd.f32 %v4923_v5, %v4827_v44  ;;  %4443 = vst.msk [vmem:[#allocation2 + $0x80] sm:$0xff] %vm10015_vm14, %v4410_v61  ;;  %v4602_v52 = vmax.f32 %v4570_v11, %v4089_v58  ;;  %vm10030_vm14 = vmmov %vm9958_vm0  ;;  %v4574_v11 = vld [vmem:[#allocation4 + $0x98] sm:$0xff] }
 0x348   :  { %v4924_v13 = vmul.f32 %v4892_v30, %v4860_v35  ;;  %v4092_v50 = vpop.xlane.xlu1 %4091  ;;  %v4829_v48 = vld [vmem:[#allocation3 + $0x78] sm:$0xff]  ;;  %v4896_v30 = vld [vmem:[#allocation5 + $0x90] sm:$0xff] }
 0x349   :  { %v4987_v1 = vmul.f32 0.125, %v4955_v19  ;;  %4634 = vst.msk [vmem:[#allocation4 + $0x78] sm:$0xff] %vm10016_vm10, %v4602_v52  ;;  %v4603_v10 = vmax.f32 %v4571_v23, %v4092_v50  ;;  %vm10031_vm10 = vmmov %vm9958_vm0  ;;  %v4575_v23 = vld [vmem:[#allocation4 + $0xa0] sm:$0xff] }
 0x34a   :  { %v4956_v3 = vadd.f32 %v4924_v13, %v4828_v33  ;;  %v3999_v28 = vpop.xlane.xlu0 %3998 }
 0x34b   :  { %5019 = vst.msk [vmem:[%s9334_s7 + $0x68] sm:$0xff] %vm10017_vm12, %v4987_v1  ;;  %v4508_v41 = vadd.f32 %v4476_v40, %v3999_v28  ;;  %vm10032_vm12 = vmmov %vm9958_vm0  ;;  %v4480_v40 = vld [vmem:[#allocation3 + $0xa8] sm:$0xff] }
 0x34c   :  { %v4988_v26 = vmul.f32 0.125, %v4956_v3  ;;  %4635 = vst.msk [vmem:[#allocation4 + $0x80] sm:$0xff] %vm10018_vm13, %v4603_v10  ;;  %v4002_v14 = vpop.xlane.xlu1 %4001  ;;  %v4830_v56 = vld [vmem:[#allocation3 + $0x80] sm:$0xff]  ;;  %vm10033_vm13 = vmmov %vm9958_vm0 }
 0x34d   :  { %v4765_v2 = vld [vmem:[#allocation2 + $0x78] sm:$0xff]  ;;  %4540 = vst.msk [vmem:[#allocation3 + $0x88] sm:$0xff] %vm10020_vm1, %v4508_v41  ;;  %v4509_v12 = vadd.f32 %v4477_v38, %v4002_v14  ;;  %v4481_v38 = vld [vmem:[#allocation3 + $0xb0] sm:$0xff]  ;;  %vm10035_vm1 = vmmov %vm9958_vm0 }
 0x34e   :  { %5020 = vst.msk [vmem:[%s9334_s7 + $0x70] sm:$0xff] %vm9958_vm0, %v4988_v26  ;;  %v4766_v39 = vld [vmem:[#allocation2 + $0x80] sm:$0xff]  ;;  %v3903_v21 = vpop.xlane.xlu0 %3902 }
 0x34f   :  { %4797 = vst.msk [vmem:[%s9333_s6 + $0x78] sm:$0xff] %vm10019_vm9, %v4765_v2  ;;  %v4411_v34 = vmax.f32 %v4379_v6, %v3903_v21  ;;  %vm10034_vm9 = vmmov %vm9958_vm0  ;;  %v4383_v6 = vld [vmem:[#allocation2 + $0xa8] sm:$0xff] }
 0x350   :  { %4798 = vst.msk [vmem:[%s9333_s6 + $0x80] sm:$0xff] %vm10021_vm8, %v4766_v39  ;;  %v4861_v49 = vld [vmem:[#allocation4 + $0x78] sm:$0xff]  ;;  %v3906_v20 = vpop.xlane.xlu1 %3905  ;;  %vm10036_vm8 = vmmov %vm9958_vm0 }
 0x351   :  { %4541 = vst.msk [vmem:[#allocation3 + $0x90] sm:$0xff] %vm10022_vm3, %v4509_v12  ;;  %v4925_v8 = vmul.f32 %v4893_v22, %v4861_v49  ;;  %v4412_v55 = vmax.f32 %v4380_v16, %v3906_v20  ;;  %vm10037_vm3 = vmmov %vm9958_vm0  ;;  %v4384_v16 = vld [vmem:[#allocation2 + $0xb0] sm:$0xff]  ;;  %v4897_v22 = vld [vmem:[#allocation5 + $0x98] sm:$0xff] }
 0x352   :  { %4444 = vst.msk [vmem:[#allocation2 + $0x88] sm:$0xff] %vm10023_vm11, %v4411_v34  ;;  %v4095_v36 = vpop.xlane.xlu0 %4094  ;;  %vm10038_vm11 = vmmov %vm9958_vm0 }
 0x353   :  { %v4862_v45 = vld [vmem:[#allocation4 + $0x80] sm:$0xff]  ;;  %v4957_v27 = vadd.f32 %v4925_v8, %v4829_v48  ;;  %4445 = vst.msk [vmem:[#allocation2 + $0x90] sm:$0xff] %vm10024_vm15, %v4412_v55  ;;  %v4604_v4 = vmax.f32 %v4572_v42, %v4095_v36  ;;  %vm10039_vm15 = vmmov %vm9958_vm0  ;;  %v4576_v42 = vld [vmem:[#allocation4 + $0xa8] sm:$0xff] }
 0x354   :  { %v4926_v43 = vmul.f32 %v4894_v62, %v4862_v45  ;;  %v4098_v7 = vpop.xlane.xlu1 %4097  ;;  %v4831_v44 = vld [vmem:[#allocation3 + $0x88] sm:$0xff]  ;;  %v4898_v62 = vld [vmem:[#allocation5 + $0xa0] sm:$0xff] }
 0x355   :  { %v4989_v37 = vmul.f32 0.125, %v4957_v27  ;;  %4636 = vst.msk [vmem:[#allocation4 + $0x88] sm:$0xff] %vm10025_vm2, %v4604_v4  ;;  %v4605_v57 = vmax.f32 %v4573_v63, %v4098_v7  ;;  %vm10040_vm2 = vmmov %vm9958_vm0  ;;  %v4577_v63 = vld [vmem:[#allocation4 + $0xb0] sm:$0xff] }
 0x356   :  { %v4958_v24 = vadd.f32 %v4926_v43, %v4830_v56  ;;  %v4005_v9 = vpop.xlane.xlu0 %4004 }
 0x357   :  { %5021 = vst.msk [vmem:[%s9334_s7 + $0x78] sm:$0xff] %vm10026_vm7, %v4989_v37  ;;  %v4510_v47 = vadd.f32 %v4478_v60, %v4005_v9  ;;  %vm10041_vm7 = vmmov %vm9958_vm0  ;;  %v4482_v60 = vld [vmem:[#allocation3 + $0xb8] sm:$0xff] }
 0x358   :  { %v4990_v51 = vmul.f32 0.125, %v4958_v24  ;;  %4637 = vst.msk [vmem:[#allocation4 + $0x90] sm:$0xff] %vm10027_vm4, %v4605_v57  ;;  %v4008_v18 = vpop.xlane.xlu1 %4007  ;;  %v4832_v33 = vld [vmem:[#allocation3 + $0x90] sm:$0xff]  ;;  %vm10042_vm4 = vmmov %vm9958_vm0 }
 0x359   :  { %v4767_v59 = vld [vmem:[#allocation2 + $0x88] sm:$0xff]  ;;  %4542 = vst.msk [vmem:[#allocation3 + $0x98] sm:$0xff] %vm10030_vm14, %v4510_v47  ;;  %v4511_v0 = vadd.f32 %v4479_v53, %v4008_v18  ;;  %v4483_v53 = vld [vmem:[#allocation3 + $0xc0] sm:$0xff]  ;;  %vm10045_vm14 = vmmov %vm9958_vm0 }
 0x35a   :  { %5022 = vst.msk [vmem:[%s9334_s7 + $0x80] sm:$0xff] %vm10028_vm6, %v4990_v51  ;;  %v4768_v31 = vld [vmem:[#allocation2 + $0x90] sm:$0xff]  ;;  %v3909_v29 = vpop.xlane.xlu0 %3908  ;;  %vm10043_vm6 = vmmov %vm9958_vm0 }
 0x35b   :  { %4799 = vst.msk [vmem:[%s9333_s6 + $0x88] sm:$0xff] %vm10029_vm5, %v4767_v59  ;;  %v4413_v25 = vmax.f32 %v4381_v54, %v3909_v29  ;;  %vm10044_vm5 = vmmov %vm9958_vm0  ;;  %v4385_v54 = vld [vmem:[#allocation2 + $0xb8] sm:$0xff] }
 0x35c   :  { %4800 = vst.msk [vmem:[%s9333_s6 + $0x90] sm:$0xff] %vm10031_vm10, %v4768_v31  ;;  %v4863_v46 = vld [vmem:[#allocation4 + $0x88] sm:$0xff]  ;;  %v3912_v15 = vpop.xlane.xlu1 %3911  ;;  %vm10046_vm10 = vmmov %vm9958_vm0 }
 0x35d   :  { %4543 = vst.msk [vmem:[#allocation3 + $0xa0] sm:$0xff] %vm10032_vm12, %v4511_v0  ;;  %v4927_v5 = vmul.f32 %v4895_v17, %v4863_v46  ;;  %v4414_v61 = vmax.f32 %v4382_v32, %v3912_v15  ;;  %vm10047_vm12 = vmmov %vm9958_vm0  ;;  %v4386_v32 = vld [vmem:[#allocation2 + $0xc0] sm:$0xff]  ;;  %v4899_v17 = vld [vmem:[#allocation5 + $0xa8] sm:$0xff] }
 0x35e   :  { %4446 = vst.msk [vmem:[#allocation2 + $0x98] sm:$0xff] %vm10033_vm13, %v4413_v25  ;;  %v4101_v58 = vpop.xlane.xlu0 %4100  ;;  %vm10048_vm13 = vmmov %vm9958_vm0 }
 0x35f   :  { %v4864_v35 = vld [vmem:[#allocation4 + $0x90] sm:$0xff]  ;;  %v4959_v19 = vadd.f32 %v4927_v5, %v4831_v44  ;;  %4447 = vst.msk [vmem:[#allocation2 + $0xa0] sm:$0xff] %vm9958_vm0, %v4414_v61  ;;  %v4606_v52 = vmax.f32 %v4574_v11, %v4101_v58  ;;  %v4578_v11 = vld [vmem:[#allocation4 + $0xb8] sm:$0xff] }
 0x360   :  { %v4928_v13 = vmul.f32 %v4896_v30, %v4864_v35  ;;  %v4104_v50 = vpop.xlane.xlu1 %4103  ;;  %v4833_v48 = vld [vmem:[#allocation3 + $0x98] sm:$0xff]  ;;  %v4900_v30 = vld [vmem:[#allocation5 + $0xb0] sm:$0xff] }
 0x361   :  { %v4991_v1 = vmul.f32 0.125, %v4959_v19  ;;  %4638 = vst.msk [vmem:[#allocation4 + $0x98] sm:$0xff] %vm10034_vm9, %v4606_v52  ;;  %v4607_v10 = vmax.f32 %v4575_v23, %v4104_v50  ;;  %vm10049_vm9 = vmmov %vm9958_vm0  ;;  %v4579_v23 = vld [vmem:[#allocation4 + $0xc0] sm:$0xff] }
 0x362   :  { %v4960_v3 = vadd.f32 %v4928_v13, %v4832_v33  ;;  %v4011_v28 = vpop.xlane.xlu0 %4010 }
 0x363   :  { %5023 = vst.msk [vmem:[%s9334_s7 + $0x88] sm:$0xff] %vm10035_vm1, %v4991_v1  ;;  %v4512_v41 = vadd.f32 %v4480_v40, %v4011_v28  ;;  %vm10050_vm1 = vmmov %vm9958_vm0  ;;  %v4484_v40 = vld [vmem:[#allocation3 + $0xc8] sm:$0xff] }
 0x364   :  { %v4992_v26 = vmul.f32 0.125, %v4960_v3  ;;  %4639 = vst.msk [vmem:[#allocation4 + $0xa0] sm:$0xff] %vm10036_vm8, %v4607_v10  ;;  %v4014_v14 = vpop.xlane.xlu1 %4013  ;;  %v4834_v56 = vld [vmem:[#allocation3 + $0xa0] sm:$0xff]  ;;  %vm10051_vm8 = vmmov %vm9958_vm0 }
 0x365   :  { %v4769_v2 = vld [vmem:[#allocation2 + $0x98] sm:$0xff]  ;;  %4544 = vst.msk [vmem:[#allocation3 + $0xa8] sm:$0xff] %vm10039_vm15, %v4512_v41  ;;  %v4513_v12 = vadd.f32 %v4481_v38, %v4014_v14  ;;  %v4485_v38 = vld [vmem:[#allocation3 + $0xd0] sm:$0xff]  ;;  %vm10054_vm15 = vmmov %vm9958_vm0 }
 0x366   :  { %5024 = vst.msk [vmem:[%s9334_s7 + $0x90] sm:$0xff] %vm10037_vm3, %v4992_v26  ;;  %v4770_v39 = vld [vmem:[#allocation2 + $0xa0] sm:$0xff]  ;;  %v3915_v21 = vpop.xlane.xlu0 %3914  ;;  %vm10052_vm3 = vmmov %vm9958_vm0 }
 0x367   :  { %4801 = vst.msk [vmem:[%s9333_s6 + $0x98] sm:$0xff] %vm10038_vm11, %v4769_v2  ;;  %v4415_v34 = vmax.f32 %v4383_v6, %v3915_v21  ;;  %vm10053_vm11 = vmmov %vm9958_vm0  ;;  %v4387_v6 = vld [vmem:[#allocation2 + $0xc8] sm:$0xff] }
 0x368   :  { %4802 = vst.msk [vmem:[%s9333_s6 + $0xa0] sm:$0xff] %vm10040_vm2, %v4770_v39  ;;  %v4865_v49 = vld [vmem:[#allocation4 + $0x98] sm:$0xff]  ;;  %v3918_v20 = vpop.xlane.xlu1 %3917  ;;  %vm10055_vm2 = vmmov %vm9958_vm0 }
 0x369   :  { %4545 = vst.msk [vmem:[#allocation3 + $0xb0] sm:$0xff] %vm10041_vm7, %v4513_v12  ;;  %v4929_v8 = vmul.f32 %v4897_v22, %v4865_v49  ;;  %v4416_v55 = vmax.f32 %v4384_v16, %v3918_v20  ;;  %vm10056_vm7 = vmmov %vm9958_vm0  ;;  %v4388_v16 = vld [vmem:[#allocation2 + $0xd0] sm:$0xff]  ;;  %v4901_v22 = vld [vmem:[#allocation5 + $0xb8] sm:$0xff] }
 0x36a   :  { %4448 = vst.msk [vmem:[#allocation2 + $0xa8] sm:$0xff] %vm10042_vm4, %v4415_v34  ;;  %v4107_v36 = vpop.xlane.xlu0 %4106  ;;  %vm10057_vm4 = vmmov %vm9958_vm0 }
 0x36b   :  { %v4866_v45 = vld [vmem:[#allocation4 + $0xa0] sm:$0xff]  ;;  %v4961_v27 = vadd.f32 %v4929_v8, %v4833_v48  ;;  %4449 = vst.msk [vmem:[#allocation2 + $0xb0] sm:$0xff] %vm10043_vm6, %v4416_v55  ;;  %v4608_v4 = vmax.f32 %v4576_v42, %v4107_v36  ;;  %vm10058_vm6 = vmmov %vm9958_vm0  ;;  %v4580_v42 = vld [vmem:[#allocation4 + $0xc8] sm:$0xff] }
 0x36c   :  { %v4930_v43 = vmul.f32 %v4898_v62, %v4866_v45  ;;  %v4110_v7 = vpop.xlane.xlu1 %4109  ;;  %v4835_v44 = vld [vmem:[#allocation3 + $0xa8] sm:$0xff]  ;;  %v4902_v62 = vld [vmem:[#allocation5 + $0xc0] sm:$0xff] }
 0x36d   :  { %v4993_v37 = vmul.f32 0.125, %v4961_v27  ;;  %4640 = vst.msk [vmem:[#allocation4 + $0xa8] sm:$0xff] %vm10044_vm5, %v4608_v4  ;;  %v4609_v57 = vmax.f32 %v4577_v63, %v4110_v7  ;;  %vm10059_vm5 = vmmov %vm9958_vm0  ;;  %v4581_v63 = vld [vmem:[#allocation4 + $0xd0] sm:$0xff] }
 0x36e   :  { %v4962_v24 = vadd.f32 %v4930_v43, %v4834_v56  ;;  %v4017_v9 = vpop.xlane.xlu0 %4016 }
 0x36f   :  { %5025 = vst.msk [vmem:[%s9334_s7 + $0x98] sm:$0xff] %vm10045_vm14, %v4993_v37  ;;  %v4514_v47 = vadd.f32 %v4482_v60, %v4017_v9  ;;  %vm10060_vm14 = vmmov %vm9958_vm0  ;;  %v4486_v60 = vld [vmem:[#allocation3 + $0xd8] sm:$0xff] }
 0x370   :  { %v4994_v51 = vmul.f32 0.125, %v4962_v24  ;;  %4641 = vst.msk [vmem:[#allocation4 + $0xb0] sm:$0xff] %vm10046_vm10, %v4609_v57  ;;  %v4020_v18 = vpop.xlane.xlu1 %4019  ;;  %v4836_v33 = vld [vmem:[#allocation3 + $0xb0] sm:$0xff]  ;;  %vm10061_vm10 = vmmov %vm9958_vm0 }
 0x371   :  { %v4771_v59 = vld [vmem:[#allocation2 + $0xa8] sm:$0xff]  ;;  %4546 = vst.msk [vmem:[#allocation3 + $0xb8] sm:$0xff] %vm9958_vm0, %v4514_v47  ;;  %v4515_v0 = vadd.f32 %v4483_v53, %v4020_v18  ;;  %v4487_v53 = vld [vmem:[#allocation3 + $0xe0] sm:$0xff] }
 0x372   :  { %5026 = vst.msk [vmem:[%s9334_s7 + $0xa0] sm:$0xff] %vm10047_vm12, %v4994_v51  ;;  %v4772_v31 = vld [vmem:[#allocation2 + $0xb0] sm:$0xff]  ;;  %v3921_v29 = vpop.xlane.xlu0 %3920  ;;  %vm10062_vm12 = vmmov %vm9958_vm0 }
 0x373   :  { %4803 = vst.msk [vmem:[%s9333_s6 + $0xa8] sm:$0xff] %vm10048_vm13, %v4771_v59  ;;  %v4417_v25 = vmax.f32 %v4385_v54, %v3921_v29  ;;  %vm10063_vm13 = vmmov %vm9958_vm0  ;;  %v4389_v54 = vld [vmem:[#allocation2 + $0xd8] sm:$0xff] }
 0x374   :  { %4804 = vst.msk [vmem:[%s9333_s6 + $0xb0] sm:$0xff] %vm10049_vm9, %v4772_v31  ;;  %v4867_v46 = vld [vmem:[#allocation4 + $0xa8] sm:$0xff]  ;;  %v3924_v15 = vpop.xlane.xlu1 %3923  ;;  %vm10064_vm9 = vmmov %vm9958_vm0 }
 0x375   :  { %4547 = vst.msk [vmem:[#allocation3 + $0xc0] sm:$0xff] %vm10050_vm1, %v4515_v0  ;;  %v4931_v5 = vmul.f32 %v4899_v17, %v4867_v46  ;;  %v4418_v61 = vmax.f32 %v4386_v32, %v3924_v15  ;;  %vm10065_vm1 = vmmov %vm9958_vm0  ;;  %v4390_v32 = vld [vmem:[#allocation2 + $0xe0] sm:$0xff]  ;;  %v4903_v17 = vld [vmem:[#allocation5 + $0xc8] sm:$0xff] }
 0x376   :  { %4450 = vst.msk [vmem:[#allocation2 + $0xb8] sm:$0xff] %vm10051_vm8, %v4417_v25  ;;  %v4113_v58 = vpop.xlane.xlu0 %4112  ;;  %vm10066_vm8 = vmmov %vm9958_vm0 }
 0x377   :  { %v4868_v35 = vld [vmem:[#allocation4 + $0xb0] sm:$0xff]  ;;  %v4963_v19 = vadd.f32 %v4931_v5, %v4835_v44  ;;  %4451 = vst.msk [vmem:[#allocation2 + $0xc0] sm:$0xff] %vm10052_vm3, %v4418_v61  ;;  %v4610_v52 = vmax.f32 %v4578_v11, %v4113_v58  ;;  %vm10067_vm3 = vmmov %vm9958_vm0  ;;  %v4582_v11 = vld [vmem:[#allocation4 + $0xd8] sm:$0xff] }
 0x378   :  { %v4932_v13 = vmul.f32 %v4900_v30, %v4868_v35  ;;  %v4116_v50 = vpop.xlane.xlu1 %4115  ;;  %v4837_v48 = vld [vmem:[#allocation3 + $0xb8] sm:$0xff]  ;;  %v4904_v30 = vld [vmem:[#allocation5 + $0xd0] sm:$0xff] }
 0x379   :  { %v4995_v1 = vmul.f32 0.125, %v4963_v19  ;;  %4642 = vst.msk [vmem:[#allocation4 + $0xb8] sm:$0xff] %vm10053_vm11, %v4610_v52  ;;  %v4611_v10 = vmax.f32 %v4579_v23, %v4116_v50  ;;  %vm10068_vm11 = vmmov %vm9958_vm0  ;;  %v4583_v23 = vld [vmem:[#allocation4 + $0xe0] sm:$0xff] }
 0x37a   :  { %v4964_v3 = vadd.f32 %v4932_v13, %v4836_v33  ;;  %v4023_v28 = vpop.xlane.xlu0 %4022 }
 0x37b   :  { %5027 = vst.msk [vmem:[%s9334_s7 + $0xa8] sm:$0xff] %vm10054_vm15, %v4995_v1  ;;  %v4516_v41 = vadd.f32 %v4484_v40, %v4023_v28  ;;  %vm10069_vm15 = vmmov %vm9958_vm0  ;;  %v4488_v40 = vld [vmem:[#allocation3 + $0xe8] sm:$0xff] }
 0x37c   :  { %v4996_v26 = vmul.f32 0.125, %v4964_v3  ;;  %4643 = vst.msk [vmem:[#allocation4 + $0xc0] sm:$0xff] %vm10055_vm2, %v4611_v10  ;;  %v4026_v14 = vpop.xlane.xlu1 %4025  ;;  %v4838_v56 = vld [vmem:[#allocation3 + $0xc0] sm:$0xff]  ;;  %vm10070_vm2 = vmmov %vm9958_vm0 }
 0x37d   :  { %v4773_v2 = vld [vmem:[#allocation2 + $0xb8] sm:$0xff]  ;;  %4548 = vst.msk [vmem:[#allocation3 + $0xc8] sm:$0xff] %vm10058_vm6, %v4516_v41  ;;  %v4517_v12 = vadd.f32 %v4485_v38, %v4026_v14  ;;  %v4489_v38 = vld [vmem:[#allocation3 + $0xf0] sm:$0xff]  ;;  %vm10073_vm6 = vmmov %vm9958_vm0 }
 0x37e   :  { %5028 = vst.msk [vmem:[%s9334_s7 + $0xb0] sm:$0xff] %vm10056_vm7, %v4996_v26  ;;  %v4774_v39 = vld [vmem:[#allocation2 + $0xc0] sm:$0xff]  ;;  %v3927_v21 = vpop.xlane.xlu0 %3926  ;;  %vm10071_vm7 = vmmov %vm9958_vm0 }
 0x37f   :  { %4805 = vst.msk [vmem:[%s9333_s6 + $0xb8] sm:$0xff] %vm10057_vm4, %v4773_v2  ;;  %v4419_v34 = vmax.f32 %v4387_v6, %v3927_v21  ;;  %vm10072_vm4 = vmmov %vm9958_vm0  ;;  %v4391_v6 = vld [vmem:[#allocation2 + $0xe8] sm:$0xff] }
 0x380   :  { %4806 = vst.msk [vmem:[%s9333_s6 + $0xc0] sm:$0xff] %vm10059_vm5, %v4774_v39  ;;  %v4869_v49 = vld [vmem:[#allocation4 + $0xb8] sm:$0xff]  ;;  %v3930_v20 = vpop.xlane.xlu1 %3929  ;;  %vm10074_vm5 = vmmov %vm9958_vm0 }
 0x381   :  { %4549 = vst.msk [vmem:[#allocation3 + $0xd0] sm:$0xff] %vm10060_vm14, %v4517_v12  ;;  %v4933_v8 = vmul.f32 %v4901_v22, %v4869_v49  ;;  %v4420_v55 = vmax.f32 %v4388_v16, %v3930_v20  ;;  %vm10075_vm14 = vmmov %vm9958_vm0  ;;  %v4392_v16 = vld [vmem:[#allocation2 + $0xf0] sm:$0xff]  ;;  %v4905_v22 = vld [vmem:[#allocation5 + $0xd8] sm:$0xff] }
 0x382   :  { %4452 = vst.msk [vmem:[#allocation2 + $0xc8] sm:$0xff] %vm10061_vm10, %v4419_v34  ;;  %v4119_v36 = vpop.xlane.xlu0 %4118  ;;  %vm10076_vm10 = vmmov %vm9958_vm0 }
 0x383   :  { %v4870_v45 = vld [vmem:[#allocation4 + $0xc0] sm:$0xff]  ;;  %v4965_v27 = vadd.f32 %v4933_v8, %v4837_v48  ;;  %4453 = vst.msk [vmem:[#allocation2 + $0xd0] sm:$0xff] %vm10062_vm12, %v4420_v55  ;;  %v4612_v4 = vmax.f32 %v4580_v42, %v4119_v36  ;;  %vm10077_vm12 = vmmov %vm9958_vm0  ;;  %v4584_v42 = vld [vmem:[#allocation4 + $0xe8] sm:$0xff] }
 0x384   :  { %v4934_v43 = vmul.f32 %v4902_v62, %v4870_v45  ;;  %v4122_v7 = vpop.xlane.xlu1 %4121  ;;  %v4839_v44 = vld [vmem:[#allocation3 + $0xc8] sm:$0xff]  ;;  %v4906_v62 = vld [vmem:[#allocation5 + $0xe0] sm:$0xff] }
 0x385   :  { %v4997_v37 = vmul.f32 0.125, %v4965_v27  ;;  %4644 = vst.msk [vmem:[#allocation4 + $0xc8] sm:$0xff] %vm10063_vm13, %v4612_v4  ;;  %v4613_v57 = vmax.f32 %v4581_v63, %v4122_v7  ;;  %vm10078_vm13 = vmmov %vm9958_vm0  ;;  %v4585_v63 = vld [vmem:[#allocation4 + $0xf0] sm:$0xff] }
 0x386   :  { %v4966_v24 = vadd.f32 %v4934_v43, %v4838_v56  ;;  %v4029_v9 = vpop.xlane.xlu0 %4028 }
 0x387   :  { %5029 = vst.msk [vmem:[%s9334_s7 + $0xb8] sm:$0xff] %vm9958_vm0, %v4997_v37  ;;  %v4518_v47 = vadd.f32 %v4486_v60, %v4029_v9  ;;  %v4490_v60 = vld [vmem:[#allocation3 + $0xf8] sm:$0xff] }
 0x388   :  { %v4998_v51 = vmul.f32 0.125, %v4966_v24  ;;  %4645 = vst.msk [vmem:[#allocation4 + $0xd0] sm:$0xff] %vm10064_vm9, %v4613_v57  ;;  %v4032_v18 = vpop.xlane.xlu1 %4031  ;;  %v4840_v33 = vld [vmem:[#allocation3 + $0xd0] sm:$0xff]  ;;  %vm10079_vm9 = vmmov %vm9958_vm0 }
 0x389   :  { %v4775_v59 = vld [vmem:[#allocation2 + $0xc8] sm:$0xff]  ;;  %4550 = vst.msk [vmem:[#allocation3 + $0xd8] sm:$0xff] %vm10067_vm3, %v4518_v47  ;;  %v4519_v0 = vadd.f32 %v4487_v53, %v4032_v18  ;;  %v4681_v53 = vld [vmem:[#allocation5 + $0xf0] sm:$0xff]  ;;  %vm10082_vm3 = vmmov %vm9958_vm0 }
 0x38a   :  { %5030 = vst.msk [vmem:[%s9334_s7 + $0xc0] sm:$0xff] %vm10065_vm1, %v4998_v51  ;;  %v4776_v31 = vld [vmem:[#allocation2 + $0xd0] sm:$0xff]  ;;  %v3933_v29 = vpop.xlane.xlu0 %3932  ;;  %vm10080_vm1 = vmmov %vm9958_vm0 }
 0x38b   :  { %4807 = vst.msk [vmem:[%s9333_s6 + $0xc8] sm:$0xff] %vm10066_vm8, %v4775_v59  ;;  %v4421_v25 = vmax.f32 %v4389_v54, %v3933_v29  ;;  %vm10081_vm8 = vmmov %vm9958_vm0  ;;  %v4393_v54 = vld [vmem:[#allocation2 + $0xf8] sm:$0xff] }
 0x38c   :  { %4808 = vst.msk [vmem:[%s9333_s6 + $0xd0] sm:$0xff] %vm10068_vm11, %v4776_v31  ;;  %v4871_v46 = vld [vmem:[#allocation4 + $0xc8] sm:$0xff]  ;;  %v3936_v15 = vpop.xlane.xlu1 %3935  ;;  %vm10083_vm11 = vmmov %vm9958_vm0 }
 0x38d   :  { %4551 = vst.msk [vmem:[#allocation3 + $0xe0] sm:$0xff] %vm10069_vm15, %v4519_v0  ;;  %v4935_v5 = vmul.f32 %v4903_v17, %v4871_v46  ;;  %v4422_v61 = vmax.f32 %v4390_v32, %v3936_v15  ;;  %vm10084_vm15 = vmmov %vm9958_vm0  ;;  %v4586_v46 = vld [vmem:[#allocation4 + $0xf8] sm:$0xff] }
 0x38e   :  { %4454 = vst.msk [vmem:[#allocation2 + $0xd8] sm:$0xff] %vm10070_vm2, %v4421_v25  ;;  %v4125_v58 = vpop.xlane.xlu0 %4124  ;;  %vm10085_vm2 = vmmov %vm9958_vm0  ;;  %v4907_v25 = vld [vmem:[#allocation5 + $0xe8] sm:$0xff] }
 0x38f   :  { %v4872_v35 = vld [vmem:[#allocation4 + $0xd0] sm:$0xff]  ;;  %v4967_v19 = vadd.f32 %v4935_v5, %v4839_v44  ;;  %4455 = vst.msk [vmem:[#allocation2 + $0xe0] sm:$0xff] %vm10071_vm7, %v4422_v61  ;;  %v4614_v52 = vmax.f32 %v4582_v11, %v4125_v58  ;;  %vm10086_vm7 = vmmov %vm9958_vm0  ;;  %v4682_v44 = vld [vmem:[#allocation5 + $0xf8] sm:$0xff] }
 0x390   :  { %v4936_v13 = vmul.f32 %v4904_v30, %v4872_v35  ;;  %v4128_v50 = vpop.xlane.xlu1 %4127  ;;  %v4841_v48 = vld [vmem:[#allocation3 + $0xd8] sm:$0xff] }
 0x391   :  { %v4999_v1 = vmul.f32 0.125, %v4967_v19  ;;  %4646 = vst.msk [vmem:[#allocation4 + $0xd8] sm:$0xff] %vm10072_vm4, %v4614_v52  ;;  %v4615_v10 = vmax.f32 %v4583_v23, %v4128_v50  ;;  %vm10087_vm4 = vmmov %vm9958_vm0 }
 0x392   :  { %v4968_v3 = vadd.f32 %v4936_v13, %v4840_v33  ;;  %v4035_v28 = vpop.xlane.xlu0 %4034 }
 0x393   :  { %5031 = vst.msk [vmem:[%s9334_s7 + $0xc8] sm:$0xff] %vm10073_vm6, %v4999_v1  ;;  %v4520_v41 = vadd.f32 %v4488_v40, %v4035_v28  ;;  %vm10088_vm6 = vmmov %vm9958_vm0 }
 0x394   :  { %v5000_v26 = vmul.f32 0.125, %v4968_v3  ;;  %4647 = vst.msk [vmem:[#allocation4 + $0xe0] sm:$0xff] %vm10074_vm5, %v4615_v10  ;;  %v4038_v14 = vpop.xlane.xlu1 %4037  ;;  %v4842_v56 = vld [vmem:[#allocation3 + $0xe0] sm:$0xff]  ;;  %vm10089_vm5 = vmmov %vm9958_vm0 }
 0x395   :  { %v4777_v2 = vld [vmem:[#allocation2 + $0xd8] sm:$0xff]  ;;  %4552 = vst.msk [vmem:[#allocation3 + $0xe8] sm:$0xff] %vm10077_vm12, %v4520_v41  ;;  %v4521_v12 = vadd.f32 %v4489_v38, %v4038_v14  ;;  %vm10092_vm12 = vmmov %vm9958_vm0 }
 0x396   :  { %5032 = vst.msk [vmem:[%s9334_s7 + $0xd0] sm:$0xff] %vm10075_vm14, %v5000_v26  ;;  %v4778_v39 = vld [vmem:[#allocation2 + $0xe0] sm:$0xff]  ;;  %v3939_v21 = vpop.xlane.xlu0 %3938  ;;  %vm10090_vm14 = vmmov %vm9958_vm0 }
 0x397   :  { %4809 = vst.msk [vmem:[%s9333_s6 + $0xd8] sm:$0xff] %vm10076_vm10, %v4777_v2  ;;  %v4423_v34 = vmax.f32 %v4391_v6, %v3939_v21  ;;  %vm10091_vm10 = vmmov %vm9958_vm0 }
 0x398   :  { %4810 = vst.msk [vmem:[%s9333_s6 + $0xe0] sm:$0xff] %vm10078_vm13, %v4778_v39  ;;  %v4873_v49 = vld [vmem:[#allocation4 + $0xd8] sm:$0xff]  ;;  %v3942_v20 = vpop.xlane.xlu1 %3941  ;;  %vm10093_vm13 = vmmov %vm9958_vm0 }
 0x399   :  { %4553 = vst.msk [vmem:[#allocation3 + $0xf0] sm:$0xff] %vm9958_vm0, %v4521_v12  ;;  %v4937_v8 = vmul.f32 %v4905_v22, %v4873_v49  ;;  %v4424_v55 = vmax.f32 %v4392_v16, %v3942_v20 }
 0x39a   :  { %4456 = vst.msk [vmem:[#allocation2 + $0xe8] sm:$0xff] %vm10079_vm9, %v4423_v34  ;;  %v4131_v36 = vpop.xlane.xlu0 %4130  ;;  %vm10094_vm9 = vmmov %vm9958_vm0 }
 0x39b   :  { %v4874_v45 = vld [vmem:[#allocation4 + $0xe0] sm:$0xff]  ;;  %v4969_v27 = vadd.f32 %v4937_v8, %v4841_v48  ;;  %4457 = vst.msk [vmem:[#allocation2 + $0xf0] sm:$0xff] %vm10080_vm1, %v4424_v55  ;;  %v4616_v4 = vmax.f32 %v4584_v42, %v4131_v36 }
 0x39c   :  { %v4938_v43 = vmul.f32 %v4906_v62, %v4874_v45  ;;  %v4134_v7 = vpop.xlane.xlu1 %4133  ;;  %v4843_v11 = vld [vmem:[#allocation3 + $0xe8] sm:$0xff] }
 0x39d   :  { %v5001_v37 = vmul.f32 0.125, %v4969_v27  ;;  %4648 = vst.msk [vmem:[#allocation4 + $0xe8] sm:$0xff] %vm10081_vm8, %v4616_v4  ;;  %v4617_v57 = vmax.f32 %v4585_v63, %v4134_v7 }
 0x39e   :  { %v4970_v24 = vadd.f32 %v4938_v43, %v4842_v56  ;;  %v4041_v9 = vpop.xlane.xlu0 %4040 }
 0x39f   :  { %5033 = vst.msk [vmem:[%s9334_s7 + $0xd8] sm:$0xff] %vm10082_vm3, %v5001_v37  ;;  %v4522_v47 = vadd.f32 %v4490_v60, %v4041_v9 }
 0x3a0   :  { %v5002_v51 = vmul.f32 0.125, %v4970_v24  ;;  %4649 = vst.msk [vmem:[#allocation4 + $0xf0] sm:$0xff] %vm10083_vm11, %v4617_v57  ;;  %v4358_v18 = vpop.xlane.xlu1 %4357  ;;  %v4844_v33 = vld [vmem:[#allocation3 + $0xf0] sm:$0xff] }
 0x3a1   :  { %v4779_v59 = vld [vmem:[#allocation2 + $0xe8] sm:$0xff]  ;;  %4554 = vst.msk [vmem:[#allocation3 + $0xf8] sm:$0xff] %vm10086_vm7, %v4522_v47  ;;  %v4713_v0 = vadd.f32 %v4681_v53, %v4358_v18 }
 0x3a2   :  { %5034 = vst.msk [vmem:[%s9334_s7 + $0xe0] sm:$0xff] %vm10084_vm15, %v5002_v51  ;;  %v4780_v31 = vld [vmem:[#allocation2 + $0xf0] sm:$0xff]  ;;  %v3945_v29 = vpop.xlane.xlu0 %3944 }
 0x3a3   :  { %4811 = vst.msk [vmem:[%s9333_s6 + $0xe8] sm:$0xff] %vm10085_vm2, %v4779_v59  ;;  %v4425_v32 = vmax.f32 %v4393_v54, %v3945_v29 }
 0x3a4   :  { %4812 = vst.msk [vmem:[%s9333_s6 + $0xf0] sm:$0xff] %vm10087_vm4, %v4780_v31  ;;  %v4875_v17 = vld [vmem:[#allocation4 + $0xe8] sm:$0xff] }
 0x3a5   :  { %4745 = vst.msk [vmem:[#allocation5 + $0xf0] sm:$0xff] %vm10088_vm6, %v4713_v0  ;;  %v4939_v15 = vmul.f32 %v4907_v25, %v4875_v17 }
 0x3a6   :  { %4458 = vst.msk [vmem:[#allocation2 + $0xf8] sm:$0xff] %vm10089_vm5, %v4425_v32  ;;  %v4137_v30 = vpop.xlane.xlu0 %4136 }
 0x3a7   :  { %v4971_v5 = vadd.f32 %v4939_v15, %v4843_v11  ;;  %v4618_v61 = vmax.f32 %v4586_v46, %v4137_v30  ;;  %v4876_v58 = vld [vmem:[#allocation4 + $0xf0] sm:$0xff] }
 0x3a8   :  { %v4845_v38 = vld [vmem:[#allocation3 + $0xf8] sm:$0xff] }
 0x3a9   :  { %v5003_v35 = vmul.f32 0.125, %v4971_v5  ;;  %4650 = vst.msk [vmem:[#allocation4 + $0xf8] sm:$0xff] %vm10090_vm14, %v4618_v61 }
 0x3aa   :  { %v4361_v19 = vpop.xlane.xlu0 %4360 }
 0x3ab   :  { %5035 = vst.msk [vmem:[%s9334_s7 + $0xe8] sm:$0xff] %vm10091_vm10, %v5003_v35  ;;  %v4714_v52 = vadd.f32 %v4682_v44, %v4361_v19 }
 0x3ac   :  { %v4908_v23 = vld [vmem:[#allocation5 + $0xf0] sm:$0xff] }
 0x3ad   :  { %v4940_v13 = vmul.f32 %v4908_v23, %v4876_v58  ;;  %v4781_v50 = vld [vmem:[#allocation2 + $0xf8] sm:$0xff]  ;;  %4746 = vst.msk [vmem:[#allocation5 + $0xf8] sm:$0xff] %vm10093_vm13, %v4714_v52 }
 0x3ae   :  { %4813 = vst.msk [vmem:[%s9333_s6 + $0xf8] sm:$0xff] %vm10092_vm12, %v4781_v50 }
 0x3af   :  { %v4972_v40 = vadd.f32 %v4940_v13, %v4844_v33 }
 0x3b0   :  { %v4877_v3 = vld [vmem:[#allocation4 + $0xf8] sm:$0xff] }
 0x3b1   :  { %v5004_v1 = vmul.f32 0.125, %v4972_v40 }
 0x3b3   :  { %5036 = vst.msk [vmem:[%s9334_s7 + $0xf0] sm:$0xff] %vm9958_vm0, %v5004_v1 }
 0x3b4   :  { %v4909_v10 = vld [vmem:[#allocation5 + $0xf8] sm:$0xff] }
 0x3b5   :  { %v4941_v28 = vmul.f32 %v4909_v10, %v4877_v3 }
 0x3b7   :  { %v4973_v26 = vadd.f32 %v4941_v28, %v4845_v38 }
 0x3b9   :  { %v5005_v41 = vmul.f32 0.125, %v4973_v26 }
 0x3bb   :  { %5037 = vst.msk [vmem:[%s9334_s7 + $0xf8] sm:$0xff] %vm10094_vm9, %v5005_v41 }

</bundles_post_ra>
